<compile_context>
chip_gen: v5e
topology: v5e:2x2
jax: 0.10.0
libtpu: 0.0.40
codegen_flags: <defaults>
</compile_context>

<pallas_src>
import typing

import jax
import jax.numpy as jnp
from jax.experimental import pallas as pl
from jax.experimental.pallas import tpu as pltpu


_LANES = 128                       # TPU vreg lane count
_SUBLANES = 8                      # TPU vreg sublane count (32-bit)
_ROW_QUANTUM = _LANES * _SUBLANES  # 1024 rows -> output blocks stay (8,128)-aligned


def _argmax_kernel(e_ref, idx_ref):
    """Per-row argmax. e_ref: (G, 128, C); idx_ref: (G, 128) int32 (lane-dense)."""
    e = e_ref[...].astype(jnp.float32)            # upcast: bf16 inputs supported
    c = e.shape[-1]
    m = jnp.max(e, axis=-1, keepdims=True)        # (G, 128, 1) per-row max
    cls = jax.lax.broadcasted_iota(jnp.int32, e.shape, dimension=2)
    # first occurrence of the max (matches torch.argmax's deterministic pick)
    cand = jnp.where(e == m, cls, c)
    idx = jnp.min(cand, axis=-1)                  # (G, 128) int32
    # An all-NaN row would otherwise yield the out-of-range index C; clamp in-range.
    idx_ref[...] = jnp.minimum(idx, c - 1).astype(jnp.int32)


def _choose_tile_rows(rows: int, row_bytes: int, *, target_block_bytes: int = 2 << 20) -> int:
    """Rows per grid step: multiple of 1024 (keeps the output block sublane-aligned),
    sized for ~target_block_bytes of input per block, never more than the padded rows."""
    want = max(1, target_block_bytes // max(row_bytes, 1))
    tile = pl.cdiv(want, _ROW_QUANTUM) * _ROW_QUANTUM
    rows_q = pl.cdiv(rows, _ROW_QUANTUM) * _ROW_QUANTUM
    return min(tile, rows_q)


def ctc_greedy_indices(emission: jax.Array) -> jax.Array:
    """Argmax over the class axis of (T, N, C) logits -> (T, N) int32 indices."""
    T, N, C = emission.shape
    rows = T * N
    itemsize = jnp.dtype(emission.dtype).itemsize
    tile_rows = _choose_tile_rows(rows, C * itemsize)

    rows_padded = pl.cdiv(rows, tile_rows) * tile_rows
    flat = emission.reshape(rows, C)
    if rows_padded != rows:
        # Pad so the grid tiles evenly; padded rows are sliced off below, so the
        # pad value never influences real outputs.
        flat = jnp.pad(flat, ((0, rows_padded - rows), (0, 0)))

    # Free reshape (only splits the leading dim): 128 consecutive rows map onto the
    # lane axis of the output, so index stores are lane-dense.
    packed = flat.reshape(rows_padded // _LANES, _LANES, C)
    G = tile_rows // _LANES  # sublane-blocks per grid step (always a multiple of 8)

    block_in = tile_rows * C * itemsize
    block_out = tile_rows * 4
    # Double-buffered in + out plus slack; capped at ~48 MiB so it fits v7x's 64 MiB VMEM
    # while still unlocking large tiles on v5e (16 MiB scoped default).
    # TODO(synk): for very large C (block > ~24 MiB at 1024 rows) split the class axis
    # across the grid and merge partial argmaxes instead of growing the block.
    vmem_limit = min(max(2 * (block_in + block_out) + (8 << 20), 32 << 20), 48 << 20)

    out = pl.pallas_call(
        _argmax_kernel,
        out_shape=jax.ShapeDtypeStruct((rows_padded // _LANES, _LANES), jnp.int32),
        grid=(rows_padded // tile_rows,),
        in_specs=[pl.BlockSpec((G, _LANES, C), lambda i: (i, 0, 0))],
        out_specs=pl.BlockSpec((G, _LANES), lambda i: (i, 0)),
        compiler_params=pltpu.CompilerParams(
            dimension_semantics=("parallel",),   # sharded across both TCs on v7x
            vmem_limit_bytes=vmem_limit,
        ),
    )(packed)
    return out.reshape(rows_padded)[:rows].reshape(T, N)


def _indices_and_keep(emission: jax.Array, blank) -> typing.Tuple[jax.Array, jax.Array]:
    """Device-side argmax + repeat-collapse/blank mask (vectorised, no host loop)."""
    idx = ctc_greedy_indices(emission)                                   # (T, N) int32
    n = idx.shape[1]
    change = jnp.concatenate(
        [jnp.ones((1, n), dtype=jnp.bool_), idx[1:] != idx[:-1]], axis=0)
    keep = change & (idx != blank)
    return idx, keep


_INDICES_AND_KEEP = jax.jit(_indices_and_keep)


class FakeTokenizer:
    """Deterministic in-script tokenizer standing in for a HF tokenizer."""

    def __init__(self, vocab_tokens):
        self._vocab = {tok: i for i, tok in enumerate(vocab_tokens)}

    @property
    def vocab_size(self) -> int:
        return len(self._vocab)

    def get_vocab(self):
        return dict(self._vocab)

    def decode(self, encoding, skip_special_tokens=True):
        inv = {v: k for k, v in self._vocab.items()}
        return "".join(inv.get(int(i), "") for i in encoding)


class CTCDecoder:
    """JAX/Pallas port of hebrewASR CTCDecoder (greedy best-path decoding)."""

    def __init__(self, tokenizer):
        self.tokenizer = tokenizer
        self.blank = self.tokenizer.vocab_size
        self.tokens = (
            list(tokenizer.get_vocab().keys())
            + ["-", "|"]
            + ["־", "`", "'"]
            + [f"{i}" for i in range(10)]
        )

    def get_blank(self):
        return self.blank

    def forward(self, emission: jax.Array) -> typing.List[str]:
        """emission: logits of shape (T, N, C). Returns one transcript per batch."""
        idx, keep = _INDICES_AND_KEEP(emission, self.blank)   # Pallas kernel inside
        idx_host, keep_host = jax.device_get((idx, keep))
        transcripts: typing.List[str] = []
        n_tokens = len(self.tokens)
        for n in range(idx_host.shape[1]):
            sel = idx_host[keep_host[:, n], n]                # collapsed, blank-free
            transcripts.append("".join(self.tokens[int(i)] for i in sel if i < n_tokens))
        return transcripts

    __call__ = forward

    def decode(self, encoding) -> str:
        return self.tokenizer.decode(encoding, skip_special_tokens=True)


if __name__ == "__main__":
    # Deterministic small setup: vocab_size=31 -> C = vocab_size + 1 = 32 classes.
    vocab_tokens = [chr(ord("a") + i) for i in range(26)] + ["א", "ב", "ג", "ד", " "]
    tokenizer = FakeTokenizer(vocab_tokens)
    decoder = CTCDecoder(tokenizer)

    T, N = 16, 2
    C = tokenizer.vocab_size + 1                      # classes incl. blank
    key = jax.random.PRNGKey(0)
    emission = jax.random.normal(key, (T, N, C), dtype=jnp.float32)

    # Run the Pallas kernel and verify against a pure-JAX reference (f32 path).
    idx_kernel = jax.block_until_ready(ctc_greedy_indices(emission))
    idx_ref = jnp.argmax(emission, axis=-1).astype(jnp.int32)
    assert bool(jnp.all(idx_kernel == idx_ref)), "Pallas argmax mismatch vs reference (f32)"

    # bf16 path: halves HBM read traffic; kernel upcasts to f32 internally.
    em_bf16 = emission.astype(jnp.bfloat16)
    idx_bf16 = jax.block_until_ready(ctc_greedy_indices(em_bf16))
    ref_bf16 = jnp.argmax(em_bf16, axis=-1).astype(jnp.int32)
    assert bool(jnp.all(idx_bf16 == ref_bf16)), "Pallas argmax mismatch vs reference (bf16)"

    transcripts = decoder(emission)
    assert isinstance(transcripts, list) and len(transcripts) == N

    print("KERNEL_OK")
</pallas_src>

<mosaic_0001>
module attributes {stable_mosaic.version = 11 : i64} {
  func.func @_argmax_kernel(%arg0: i32, %arg1: memref<8x128x32xf32, #tpu.memory_space<vmem>>, %arg2: memref<8x128xi32, #tpu.memory_space<vmem>>) attributes {dimension_semantics = [#tpu.dimension_semantics<parallel>], iteration_bounds = array<i64: 1>, scalar_prefetch = 0 : i64, scratch_operands = 0 : i64, tpu.core_type = #tpu.core_type<tc>, window_params = [{transform_indices = @transform_0, window_bounds = array<i64: 8, 128, 32>}, {transform_indices = @transform_1, window_bounds = array<i64: 8, 128>}]} {
    %c0 = arith.constant 0 : index
    %c0_0 = arith.constant 0 : index
    %c0_1 = arith.constant 0 : index
    %0 = vector.load %arg1[%c0, %c0_0, %c0_1] : memref<8x128x32xf32, #tpu.memory_space<vmem>>, vector<8x128x32xf32>
    %cst = arith.constant dense<0xFF800000> : vector<8x128xf32>
    %1 = vector.multi_reduction <maximumf>, %0, %cst [2] : vector<8x128x32xf32> to vector<8x128xf32>
    %2 = vector.shape_cast %1 : vector<8x128xf32> to vector<8x128x1xf32>
    %3 = tpu.iota {dimensions = array<i32: 2>} : vector<8x128x32xi32>
    %4 = vector.broadcast %2 : vector<8x128x1xf32> to vector<8x128x32xf32>
    %5 = arith.cmpf oeq, %0, %4 : vector<8x128x32xf32>
    %c32_i32 = arith.constant 32 : i32
    %6 = vector.broadcast %c32_i32 : i32 to vector<8x128x32xi32>
    %7 = arith.select %5, %3, %6 : vector<8x128x32xi1>, vector<8x128x32xi32>
    %cst_2 = arith.constant dense<2147483647> : vector<8x128xi32>
    %8 = vector.multi_reduction <minsi>, %7, %cst_2 [2] : vector<8x128x32xi32> to vector<8x128xi32>
    %c31_i32 = arith.constant 31 : i32
    %9 = vector.broadcast %c31_i32 : i32 to vector<8x128xi32>
    %10 = arith.minsi %8, %9 : vector<8x128xi32>
    %c0_3 = arith.constant 0 : index
    %c0_4 = arith.constant 0 : index
    %11 = vector.load %arg2[%c0_3, %c0_4] : memref<8x128xi32, #tpu.memory_space<vmem>>, vector<8x128xi32>
    tpu.vector_store %arg2[%c0_3, %c0_4], %10 {strides = array<i32>} : memref<8x128xi32, #tpu.memory_space<vmem>>, vector<8x128xi32>,
    return
  }
  func.func @transform_0(%arg0: i32) -> (i32, i32, i32) {
    %c0_i32 = arith.constant 0 : i32
    %c0_i32_0 = arith.constant 0 : i32
    %c0_i32_1 = arith.constant 0 : i32
    return %arg0, %c0_i32, %c0_i32_0 : i32, i32, i32
  }
  func.func @transform_1(%arg0: i32) -> (i32, i32) {
    %c0_i32 = arith.constant 0 : i32
    %c0_i32_0 = arith.constant 0 : i32
    return %arg0, %c0_i32 : i32, i32
  }
}

</mosaic_0001>

<bundles_post_ra>
// kernel: tpu_custom_call.1
= control target key start
LH: loop header
LB: loop body
LE: loop exit
PB: predicated region body
PF: predicated region fallthrough
CT: control target
= control target key end

     0   :  { %vm137_vm0 = vcmask 261120   ;;  %s6030_s0 = inlined_call_operand.vmem [shape: f32[8,128,32], index: 0, kind: input, shape index: {}]   ;;  %s6031_s1 = inlined_call_operand.hbm [shape: s32[8,128], index: 1, kind: output, shape index: {}]  }
   0x1   :  { %v13_v0 = vld [vmem:[%s6030_s0 + $0x20] sm:$0xff]  ;;  %v11_v1 = vld [vmem:[%s6030_s0 + $0x10] sm:$0xff]  ;;  %v14_v4 = vld [vmem:[%s6030_s0 + $0x28] sm:$0xff] }
   0x2   :  { %v150_v2 = vsel %vm137_vm0, %v13_v0, -inf  ;;  %v144_v3 = vsel %vm137_vm0, %v11_v1, -inf  ;;  %v12_v5 = vld [vmem:[%s6030_s0 + $0x18] sm:$0xff] }
   0x3   :  { %151 = vmax.xlane.f32.xlu2 %v150_v2  ;;  %145 = vmax.xlane.f32.xlu1 %v144_v3 }
   0x4   :  { %6 = vsyncpa [#allocation3], 0  ;;  %v153_v6 = vsel %vm137_vm0, %v14_v4, -inf  ;;  %v147_v7 = vsel %vm137_vm0, %v12_v5, -inf  ;;  %v17_v8 = vld [vmem:[%s6030_s0 + $0x40] sm:$0xff]  ;;  %v16_v9 = vld [vmem:[%s6030_s0 + $0x38] sm:$0xff] }
   0x5   :  { %v162_v10 = vsel %vm137_vm0, %v17_v8, -inf  ;;  %v159_v11 = vsel %vm137_vm0, %v16_v9, -inf  ;;  %v20_v12 = vld [vmem:[%s6030_s0 + $0x58] sm:$0xff]  ;;  %v19_v13 = vld [vmem:[%s6030_s0 + $0x50] sm:$0xff]  ;;  %v22_v17 = vld [vmem:[%s6030_s0 + $0x68] sm:$0xff]  ;;  %s3256_s22 = sshll.u32 %s6031_s1, 4  ;;  %s3257_s22 = int_to_ptr.hbm [resolvable:$true] %s3256_s22 }
   0x6   :  { %v171_v14 = vsel %vm137_vm0, %v20_v12, -inf  ;;  %v168_v15 = vsel %vm137_vm0, %v19_v13, -inf  ;;  %v23_v16 = vld [vmem:[%s6030_s0 + $0x70] sm:$0xff]  ;;  %v177_v19 = vsel %vm137_vm0, %v22_v17, -inf  ;;  %v26_v20 = vld [vmem:[%s6030_s0 + $0x88] sm:$0xff]  ;;  %v25_v21 = vld [vmem:[%s6030_s0 + $0x80] sm:$0xff] }
   0x7   :  { %v180_v18 = vsel %vm137_vm0, %v23_v16, -inf  ;;  %v189_v22 = vsel %vm137_vm0, %v26_v20, -inf  ;;  %v186_v23 = vsel %vm137_vm0, %v25_v21, -inf  ;;  %v29_v24 = vld [vmem:[%s6030_s0 + $0xa0] sm:$0xff]  ;;  %v28_v25 = vld [vmem:[%s6030_s0 + $0x98] sm:$0xff]  ;;  %v31_v29 = vld [vmem:[%s6030_s0 + $0xb0] sm:$0xff] }
   0x8   :  { %v198_v26 = vsel %vm137_vm0, %v29_v24, -inf  ;;  %v195_v27 = vsel %vm137_vm0, %v28_v25, -inf  ;;  %v32_v28 = vld [vmem:[%s6030_s0 + $0xb8] sm:$0xff]  ;;  %v204_v31 = vsel %vm137_vm0, %v31_v29, -inf  ;;  %v35_v32 = vld [vmem:[%s6030_s0 + $0xd0] sm:$0xff]  ;;  %v34_v33 = vld [vmem:[%s6030_s0 + $0xc8] sm:$0xff] }
   0x9   :  { %v207_v30 = vsel %vm137_vm0, %v32_v28, -inf  ;;  %v216_v34 = vsel %vm137_vm0, %v35_v32, -inf  ;;  %v213_v35 = vsel %vm137_vm0, %v34_v33, -inf  ;;  %v38_v36 = vld [vmem:[%s6030_s0 + $0xe8] sm:$0xff]  ;;  %v37_v37 = vld [vmem:[%s6030_s0 + $0xe0] sm:$0xff]  ;;  %v40_v43 = vld [vmem:[%s6030_s0 + $0xf8] sm:$0xff] }
   0xa   :  { %v225_v38 = vsel %vm137_vm0, %v38_v36, -inf  ;;  %v222_v39 = vsel %vm137_vm0, %v37_v37, -inf  ;;  %v3511_v40 = vld [vmem:[%s6030_s0] sm:$0xff]  ;;  %v231_v45 = vsel %vm137_vm0, %v40_v43, -inf  ;;  %v44_v46 = vld [vmem:[%s6030_s0 + $0x118] sm:$0xff]  ;;  %v43_v47 = vld [vmem:[%s6030_s0 + $0x110] sm:$0xff] }
   0xb   :  { %154 = vmax.xlane.f32.xlu2 %v153_v6  ;;  %148 = vmax.xlane.f32.xlu1 %v147_v7  ;;  %v138_v41 = vsel %vm137_vm0, %v3511_v40, -inf  ;;  %v41_v42 = vld [vmem:[%s6030_s0 + $0x100] sm:$0xff]  ;;  %v3532_v48 = vld [vmem:[%s6030_s0 + $0x8] sm:$0xff]  ;;  %v243_v49 = vsel %vm137_vm0, %v44_v46, -inf  ;;  %v240_v50 = vsel %vm137_vm0, %v43_v47, -inf  ;;  %v47_v52 = vld [vmem:[%s6030_s0 + $0x130] sm:$0xff] }
   0xc   :  { %139 = vmax.xlane.f32.xlu0 %v138_v41  ;;  %v234_v44 = vsel %vm137_vm0, %v41_v42, -inf  ;;  %v141_v51 = vsel %vm137_vm0, %v3532_v48, -inf  ;;  %v46_v53 = vld [vmem:[%s6030_s0 + $0x128] sm:$0xff]  ;;  %v3547_v54 = vld [vmem:[%s6030_s0 + $0x30] sm:$0xff]  ;;  %v252_v55 = vsel %vm137_vm0, %v47_v52, -inf  ;;  %v49_v59 = vld [vmem:[%s6030_s0 + $0x140] sm:$0xff] }
   0xd   :  { %v249_v56 = vsel %vm137_vm0, %v46_v53, -inf  ;;  %v156_v57 = vsel %vm137_vm0, %v3547_v54, -inf  ;;  %v50_v58 = vld [vmem:[%s6030_s0 + $0x148] sm:$0xff]  ;;  %v258_v62 = vsel %vm137_vm0, %v49_v59, -inf  ;;  %v53_v0 = vld [vmem:[%s6030_s0 + $0x160] sm:$0xff]  ;;  %v52_v1 = vld [vmem:[%s6030_s0 + $0x158] sm:$0xff] }
   0xe   :  { %v18_v60 = vld [vmem:[%s6030_s0 + $0x48] sm:$0xff]  ;;  %v261_v61 = vsel %vm137_vm0, %v50_v58, -inf  ;;  %v21_v2 = vld [vmem:[%s6030_s0 + $0x60] sm:$0xff]  ;;  %v270_v3 = vsel %vm137_vm0, %v53_v0, -inf  ;;  %v267_v4 = vsel %vm137_vm0, %v52_v1, -inf  ;;  %v56_v6 = vld [vmem:[%s6030_s0 + $0x178] sm:$0xff] }
   0xf   :  { %v165_v63 = vsel %vm137_vm0, %v18_v60, -inf  ;;  %v174_v5 = vsel %vm137_vm0, %v21_v2, -inf  ;;  %v55_v7 = vld [vmem:[%s6030_s0 + $0x170] sm:$0xff]  ;;  %v36_v43 = vld [vmem:[%s6030_s0 + $0xd8] sm:$0xff]  ;;  %v73_v58 = vld [vmem:[%s6030_s0 + $0x200] sm:$0xff] }
  0x10   :  { %v276_v12 = vsel %vm137_vm0, %v55_v7, -inf  ;;  %v219_v46 = vsel %vm137_vm0, %v36_v43, -inf  ;;  %v71_v47 = vld [vmem:[%s6030_s0 + $0x1f0] sm:$0xff]  ;;  %v77_v1 = vld [vmem:[%s6030_s0 + $0x220] sm:$0xff]  ;;  %v76_v2 = vld [vmem:[%s6030_s0 + $0x218] sm:$0xff] }
  0x11   :  { %v39_v52 = vld [vmem:[%s6030_s0 + $0xf0] sm:$0xff]  ;;  %v324_v53 = vsel %vm137_vm0, %v71_v47, -inf  ;;  %v339_v7 = vsel %vm137_vm0, %v76_v2, -inf  ;;  %v88_v47 = vld [vmem:[%s6030_s0 + $0x278] sm:$0xff] }
  0x13   :  { %163 = vmax.xlane.f32.xlu2 %v162_v10  ;;  %160 = vmax.xlane.f32.xlu1 %v159_v11  ;;  %v24_v10 = vld [vmem:[%s6030_s0 + $0x78] sm:$0xff]  ;;  %v279_v11 = vsel %vm137_vm0, %v56_v6, -inf  ;;  %v342_v6 = vsel %vm137_vm0, %v77_v1, -inf }
  0x14   :  { %142 = vmax.xlane.f32.xlu0 %v141_v51  ;;  %v183_v13 = vsel %vm137_vm0, %v24_v10, -inf  ;;  %v60_v1 = vld [vmem:[%s6030_s0 + $0x198] sm:$0xff] }
  0x1b   :  { %172 = vmax.xlane.f32.xlu2 %v171_v14  ;;  %169 = vmax.xlane.f32.xlu1 %v168_v15  ;;  %v59_v14 = vld [vmem:[%s6030_s0 + $0x190] sm:$0xff]  ;;  %v58_v15 = vld [vmem:[%s6030_s0 + $0x188] sm:$0xff] }
  0x1c   :  { %157 = vmax.xlane.f32.xlu0 %v156_v57  ;;  %v285_v20 = vsel %vm137_vm0, %v58_v15, -inf  ;;  %v74_v57 = vld [vmem:[%s6030_s0 + $0x208] sm:$0xff]  ;;  %v48_v15 = vld [vmem:[%s6030_s0 + $0x138] sm:$0xff] }
  0x23   :  { %181 = vmax.xlane.f32.xlu2 %v180_v18  ;;  %178 = vmax.xlane.f32.xlu1 %v177_v19  ;;  %v27_v18 = vld [vmem:[%s6030_s0 + $0x90] sm:$0xff]  ;;  %v288_v19 = vsel %vm137_vm0, %v59_v14, -inf }
  0x24   :  { %166 = vmax.xlane.f32.xlu0 %v165_v63  ;;  %v192_v21 = vsel %vm137_vm0, %v27_v18, -inf  ;;  %v330_v63 = vsel %vm137_vm0, %v73_v58, -inf }
  0x2b   :  { %190 = vmax.xlane.f32.xlu2 %v189_v22  ;;  %187 = vmax.xlane.f32.xlu1 %v186_v23  ;;  %v62_v22 = vld [vmem:[%s6030_s0 + $0x1a8] sm:$0xff]  ;;  %v61_v23 = vld [vmem:[%s6030_s0 + $0x1a0] sm:$0xff] }
  0x2c   :  { %175 = vmax.xlane.f32.xlu0 %v174_v5  ;;  %v294_v28 = vsel %vm137_vm0, %v61_v23, -inf  ;;  %v45_v5 = vld [vmem:[%s6030_s0 + $0x120] sm:$0xff] }
  0x2d   :  { %v246_v10 = vsel %vm137_vm0, %v45_v5, -inf }
  0x33   :  { %199 = vmax.xlane.f32.xlu2 %v198_v26  ;;  %196 = vmax.xlane.f32.xlu1 %v195_v27  ;;  %v30_v26 = vld [vmem:[%s6030_s0 + $0xa8] sm:$0xff]  ;;  %v297_v27 = vsel %vm137_vm0, %v62_v22, -inf }
  0x34   :  { %184 = vmax.xlane.f32.xlu0 %v183_v13  ;;  %v201_v29 = vsel %vm137_vm0, %v30_v26, -inf  ;;  %v82_v22 = vld [vmem:[%s6030_s0 + $0x248] sm:$0xff] }
  0x3b   :  { %208 = vmax.xlane.f32.xlu2 %v207_v30  ;;  %205 = vmax.xlane.f32.xlu1 %v204_v31  ;;  %v65_v30 = vld [vmem:[%s6030_s0 + $0x1c0] sm:$0xff]  ;;  %v64_v31 = vld [vmem:[%s6030_s0 + $0x1b8] sm:$0xff] }
  0x3c   :  { %193 = vmax.xlane.f32.xlu0 %v192_v21  ;;  %v303_v36 = vsel %vm137_vm0, %v64_v31, -inf  ;;  %v83_v21 = vld [vmem:[%s6030_s0 + $0x250] sm:$0xff] }
  0x43   :  { %217 = vmax.xlane.f32.xlu2 %v216_v34  ;;  %214 = vmax.xlane.f32.xlu1 %v213_v35  ;;  %v33_v34 = vld [vmem:[%s6030_s0 + $0xc0] sm:$0xff]  ;;  %v306_v35 = vsel %vm137_vm0, %v65_v30, -inf }
  0x44   :  { %202 = vmax.xlane.f32.xlu0 %v201_v29  ;;  %v210_v37 = vsel %vm137_vm0, %v33_v34, -inf  ;;  %v357_v29 = vsel %vm137_vm0, %v82_v22, -inf  ;;  %v86_v34 = vld [vmem:[%s6030_s0 + $0x268] sm:$0xff] }
  0x4b   :  { %226 = vmax.xlane.f32.xlu2 %v225_v38  ;;  %223 = vmax.xlane.f32.xlu1 %v222_v39  ;;  %v68_v38 = vld [vmem:[%s6030_s0 + $0x1d8] sm:$0xff]  ;;  %v67_v39 = vld [vmem:[%s6030_s0 + $0x1d0] sm:$0xff] }
  0x4c   :  { %211 = vmax.xlane.f32.xlu0 %v210_v37 }
  0x53   :  { %235 = vmax.xlane.f32.xlu2 %v234_v44  ;;  %232 = vmax.xlane.f32.xlu1 %v231_v45  ;;  %v315_v44 = vsel %vm137_vm0, %v68_v38, -inf  ;;  %v312_v45 = vsel %vm137_vm0, %v67_v39, -inf  ;;  %v54_v38 = vld [vmem:[%s6030_s0 + $0x168] sm:$0xff]  ;;  %v369_v39 = vsel %vm137_vm0, %v86_v34, -inf }
  0x54   :  { %220 = vmax.xlane.f32.xlu0 %v219_v46  ;;  %v89_v46 = vld [vmem:[%s6030_s0 + $0x280] sm:$0xff]  ;;  %v66_v34 = vld [vmem:[%s6030_s0 + $0x1c8] sm:$0xff] }
  0x5b   :  { %244 = vmax.xlane.f32.xlu2 %v243_v49  ;;  %241 = vmax.xlane.f32.xlu1 %v240_v50  ;;  %v70_v49 = vld [vmem:[%s6030_s0 + $0x1e8] sm:$0xff] }
  0x63   :  { %253 = vmax.xlane.f32.xlu2 %v252_v55  ;;  %250 = vmax.xlane.f32.xlu1 %v249_v56  ;;  %v321_v55 = vsel %vm137_vm0, %v70_v49, -inf  ;;  %v228_v56 = vsel %vm137_vm0, %v39_v52, -inf }
  0x64   :  { %229 = vmax.xlane.f32.xlu0 %v228_v56  ;;  %v375_v56 = vsel %vm137_vm0, %v88_v47, -inf }
  0x6b   :  { %262 = vmax.xlane.f32.xlu2 %v261_v61  ;;  %259 = vmax.xlane.f32.xlu1 %v258_v62  ;;  %v42_v61 = vld [vmem:[%s6030_s0 + $0x108] sm:$0xff]  ;;  %v333_v62 = vsel %vm137_vm0, %v74_v57, -inf }
  0x6c   :  { %v237_v0 = vsel %vm137_vm0, %v42_v61, -inf  ;;  %v92_v61 = vld [vmem:[%s6030_s0 + $0x298] sm:$0xff] }
  0x6d   :  { %238 = vmax.xlane.f32.xlu0 %v237_v0  ;;  %v387_v2 = vsel %vm137_vm0, %v92_v61, -inf }
  0x73   :  { %271 = vmax.xlane.f32.xlu2 %v270_v3  ;;  %268 = vmax.xlane.f32.xlu1 %v267_v4 }
  0x75   :  { %247 = vmax.xlane.f32.xlu0 %v246_v10  ;;  %v95_v10 = vld [vmem:[%s6030_s0 + $0x2b0] sm:$0xff] }
  0x76   :  { %v3583_v8 = vpop.xlane.xlu2 %151  ;;  %v3585_v9 = vpop.xlane.xlu1 %145 }
  0x7b   :  { %280 = vmax.xlane.f32.xlu2 %v279_v11  ;;  %277 = vmax.xlane.f32.xlu1 %v276_v12  ;;  %v80_v11 = vld [vmem:[%s6030_s0 + $0x238] sm:$0xff]  ;;  %v79_v12 = vld [vmem:[%s6030_s0 + $0x230] sm:$0xff] }
  0x7c   :  { %v351_v18 = vsel %vm137_vm0, %v80_v11, -inf  ;;  %v94_v11 = vld [vmem:[%s6030_s0 + $0x2a8] sm:$0xff] }
  0x7e   :  { %v3599_v16 = vpop.xlane.xlu2 %154  ;;  %v3601_v17 = vpop.xlane.xlu1 %148 }
  0x7f   :  { %v3737_v31 = vpop.xlane.xlu0 %139 }
  0x80   :  { %vm524_vm1 = vcmp.eq.f32.partialorder %v3511_v40, %v3737_v31  ;;  %v102_v40 = vld [vmem:[%s6030_s0 + $0x2e8] sm:$0xff] }
  0x83   :  { %289 = vmax.xlane.f32.xlu2 %v288_v19  ;;  %286 = vmax.xlane.f32.xlu1 %v285_v20  ;;  %v348_v19 = vsel %vm137_vm0, %v79_v12, -inf  ;;  %v255_v20 = vsel %vm137_vm0, %v48_v15, -inf }
  0x84   :  { %256 = vmax.xlane.f32.xlu0 %v255_v20  ;;  %v393_v20 = vsel %vm137_vm0, %v94_v11, -inf }
  0x86   :  { %v3615_v24 = vpop.xlane.xlu2 %163  ;;  %v3617_v25 = vpop.xlane.xlu1 %160 }
  0x8b   :  { %298 = vmax.xlane.f32.xlu2 %v297_v27  ;;  %295 = vmax.xlane.f32.xlu1 %v294_v28  ;;  %v51_v27 = vld [vmem:[%s6030_s0 + $0x150] sm:$0xff]  ;;  %v360_v28 = vsel %vm137_vm0, %v83_v21, -inf }
  0x8c   :  { %v264_v30 = vsel %vm137_vm0, %v51_v27, -inf  ;;  %v98_v27 = vld [vmem:[%s6030_s0 + $0x2c8] sm:$0xff] }
  0x8d   :  { %265 = vmax.xlane.f32.xlu0 %v264_v30 }
  0x8e   :  { %v3631_v32 = vpop.xlane.xlu2 %172  ;;  %v3633_v33 = vpop.xlane.xlu1 %169 }
  0x93   :  { %307 = vmax.xlane.f32.xlu2 %v306_v35  ;;  %304 = vmax.xlane.f32.xlu1 %v303_v36  ;;  %v85_v35 = vld [vmem:[%s6030_s0 + $0x260] sm:$0xff] }
  0x94   :  { %v366_v43 = vsel %vm137_vm0, %v85_v35, -inf  ;;  %v405_v35 = vsel %vm137_vm0, %v98_v27, -inf  ;;  %v106_v27 = vld [vmem:[%s6030_s0 + $0x308] sm:$0xff] }
  0x96   :  { %v3647_v41 = vpop.xlane.xlu2 %181  ;;  %v3649_v42 = vpop.xlane.xlu1 %178 }
  0x9b   :  { %316 = vmax.xlane.f32.xlu2 %v315_v44  ;;  %313 = vmax.xlane.f32.xlu1 %v312_v45  ;;  %v273_v44 = vsel %vm137_vm0, %v54_v38, -inf  ;;  %v3755_v45 = vpop.xlane.xlu0 %142 }
  0x9c   :  { %274 = vmax.xlane.f32.xlu0 %v273_v44  ;;  %v101_v44 = vld [vmem:[%s6030_s0 + $0x2e0] sm:$0xff]  ;;  %vm525_vm2 = vcmp.eq.f32.partialorder %v3532_v48, %v3755_v45 }
  0x9e   :  { %v3663_v50 = vpop.xlane.xlu2 %190  ;;  %v3665_v51 = vpop.xlane.xlu1 %187 }
  0xa3   :  { %325 = vmax.xlane.f32.xlu2 %v324_v53  ;;  %322 = vmax.xlane.f32.xlu1 %v321_v55  ;;  %v57_v53 = vld [vmem:[%s6030_s0 + $0x180] sm:$0xff]  ;;  %v378_v55 = vsel %vm137_vm0, %v89_v46, -inf  ;;  %v3773_v58 = vpop.xlane.xlu0 %157  ;;  %v100_v46 = vld [vmem:[%s6030_s0 + $0x2d8] sm:$0xff] }
  0xa4   :  { %v282_v57 = vsel %vm137_vm0, %v57_v53, -inf  ;;  %vm530_vm11 = vcmp.eq.f32.partialorder %v3547_v54, %v3773_v58 }
  0xa5   :  { %283 = vmax.xlane.f32.xlu0 %v282_v57  ;;  %v411_v57 = vsel %vm137_vm0, %v100_v46, -inf }
  0xa6   :  { %v3679_v59 = vpop.xlane.xlu2 %199  ;;  %v3681_v60 = vpop.xlane.xlu1 %196 }
  0xab   :  { %334 = vmax.xlane.f32.xlu2 %v333_v62  ;;  %331 = vmax.xlane.f32.xlu1 %v330_v63  ;;  %v91_v62 = vld [vmem:[%s6030_s0 + $0x290] sm:$0xff] }
  0xac   :  { %v384_v5 = vsel %vm137_vm0, %v91_v62, -inf }
  0xae   :  { %v3695_v3 = vpop.xlane.xlu2 %208  ;;  %v3697_v4 = vpop.xlane.xlu1 %205 }
  0xb3   :  { %343 = vmax.xlane.f32.xlu2 %v342_v6  ;;  %340 = vmax.xlane.f32.xlu1 %v339_v7  ;;  %v291_v6 = vsel %vm137_vm0, %v60_v1, -inf  ;;  %v3791_v7 = vpop.xlane.xlu0 %166  ;;  %v104_v1 = vld [vmem:[%s6030_s0 + $0x2f8] sm:$0xff] }
  0xb4   :  { %292 = vmax.xlane.f32.xlu0 %v291_v6  ;;  %v423_v11 = vsel %vm137_vm0, %v104_v1, -inf  ;;  %v78_v1 = vld [vmem:[%s6030_s0 + $0x228] sm:$0xff] }
  0xb6   :  { %v3711_v13 = vpop.xlane.xlu2 %217  ;;  %v3713_v14 = vpop.xlane.xlu1 %214 }
  0xbb   :  { %352 = vmax.xlane.f32.xlu2 %v351_v18  ;;  %349 = vmax.xlane.f32.xlu1 %v348_v19  ;;  %v63_v18 = vld [vmem:[%s6030_s0 + $0x1b0] sm:$0xff]  ;;  %v396_v19 = vsel %vm137_vm0, %v95_v10, -inf  ;;  %v3809_v22 = vpop.xlane.xlu0 %175  ;;  %v72_v10 = vld [vmem:[%s6030_s0 + $0x1f8] sm:$0xff] }
  0xbc   :  { %v300_v21 = vsel %vm137_vm0, %v63_v18, -inf }
  0xbd   :  { %301 = vmax.xlane.f32.xlu0 %v300_v21  ;;  %v107_v21 = vld [vmem:[%s6030_s0 + $0x310] sm:$0xff] }
  0xbe   :  { %v3727_v23 = vpop.xlane.xlu2 %226  ;;  %v3729_v26 = vpop.xlane.xlu1 %223 }
  0xc3   :  { %361 = vmax.xlane.f32.xlu2 %v360_v28  ;;  %358 = vmax.xlane.f32.xlu1 %v357_v29  ;;  %v97_v28 = vld [vmem:[%s6030_s0 + $0x2c0] sm:$0xff] }
  0xc4   :  { %v402_v38 = vsel %vm137_vm0, %v97_v28, -inf }
  0xc6   :  { %v3745_v36 = vpop.xlane.xlu2 %235  ;;  %v3747_v37 = vpop.xlane.xlu1 %232 }
  0xcb   :  { %370 = vmax.xlane.f32.xlu2 %v369_v39  ;;  %367 = vmax.xlane.f32.xlu1 %v366_v43  ;;  %v309_v39 = vsel %vm137_vm0, %v66_v34, -inf  ;;  %v3827_v43 = vpop.xlane.xlu0 %184 }
  0xcc   :  { %310 = vmax.xlane.f32.xlu0 %v309_v39  ;;  %v429_v39 = vsel %vm137_vm0, %v106_v27, -inf }
  0xce   :  { %v3763_v49 = vpop.xlane.xlu2 %244  ;;  %v3765_v52 = vpop.xlane.xlu1 %241 }
  0xd3   :  { %379 = vmax.xlane.f32.xlu2 %v378_v55  ;;  %376 = vmax.xlane.f32.xlu1 %v375_v56  ;;  %v69_v55 = vld [vmem:[%s6030_s0 + $0x1e0] sm:$0xff]  ;;  %v414_v56 = vsel %vm137_vm0, %v101_v44, -inf  ;;  %v3845_v62 = vpop.xlane.xlu0 %193 }
  0xd4   :  { %v318_v61 = vsel %vm137_vm0, %v69_v55, -inf  ;;  %v110_v55 = vld [vmem:[%s6030_s0 + $0x328] sm:$0xff] }
  0xd5   :  { %319 = vmax.xlane.f32.xlu0 %v318_v61 }
  0xd6   :  { %v3781_v63 = vpop.xlane.xlu2 %253  ;;  %v3783_v0 = vpop.xlane.xlu1 %250 }
  0xdb   :  { %388 = vmax.xlane.f32.xlu2 %v387_v2  ;;  %385 = vmax.xlane.f32.xlu1 %v384_v5  ;;  %v103_v2 = vld [vmem:[%s6030_s0 + $0x2f0] sm:$0xff] }
  0xdc   :  { %v420_v18 = vsel %vm137_vm0, %v103_v2, -inf  ;;  %v441_v2 = vsel %vm137_vm0, %v110_v55, -inf }
  0xde   :  { %v3799_v12 = vpop.xlane.xlu2 %262  ;;  %v3801_v15 = vpop.xlane.xlu1 %259 }
  0xe3   :  { %397 = vmax.xlane.f32.xlu2 %v396_v19  ;;  %394 = vmax.xlane.f32.xlu1 %v393_v20  ;;  %v327_v19 = vsel %vm137_vm0, %v72_v10, -inf  ;;  %v3863_v20 = vpop.xlane.xlu0 %202 }
  0xe4   :  { %328 = vmax.xlane.f32.xlu0 %v327_v19  ;;  %v113_v19 = vld [vmem:[%s6030_s0 + $0x340] sm:$0xff] }
  0xe6   :  { %v3817_v29 = vpop.xlane.xlu2 %271  ;;  %v3819_v30 = vpop.xlane.xlu1 %268 }
  0xeb   :  { %406 = vmax.xlane.f32.xlu2 %v405_v35  ;;  %403 = vmax.xlane.f32.xlu1 %v402_v38  ;;  %v75_v35 = vld [vmem:[%s6030_s0 + $0x210] sm:$0xff]  ;;  %v432_v38 = vsel %vm137_vm0, %v107_v21, -inf  ;;  %v3881_v46 = vpop.xlane.xlu0 %211  ;;  %v112_v21 = vld [vmem:[%s6030_s0 + $0x338] sm:$0xff] }
  0xec   :  { %v336_v44 = vsel %vm137_vm0, %v75_v35, -inf }
  0xed   :  { %337 = vmax.xlane.f32.xlu0 %v336_v44  ;;  %v447_v44 = vsel %vm137_vm0, %v112_v21, -inf }
  0xee   :  { %v3835_v47 = vpop.xlane.xlu2 %280  ;;  %v3837_v53 = vpop.xlane.xlu1 %277 }
  0xf3   :  { %415 = vmax.xlane.f32.xlu2 %v414_v56  ;;  %412 = vmax.xlane.f32.xlu1 %v411_v57  ;;  %v109_v56 = vld [vmem:[%s6030_s0 + $0x320] sm:$0xff] }
  0xf4   :  { %v438_v10 = vsel %vm137_vm0, %v109_v56, -inf }
  0xf6   :  { %v3853_v5 = vpop.xlane.xlu2 %289  ;;  %v3855_v6 = vpop.xlane.xlu1 %286 }
  0xf7   :  { %6087 = vst [vmem:[#allocation5_spill] sm:$0xff] %v3853_v5 }
  0xf8   :  { %6088 = vst [vmem:[#allocation6_spill] sm:$0xff] %v3855_v6 }
  0xfb   :  { %424 = vmax.xlane.f32.xlu2 %v423_v11  ;;  %421 = vmax.xlane.f32.xlu1 %v420_v18  ;;  %v345_v11 = vsel %vm137_vm0, %v78_v1, -inf  ;;  %v3899_v18 = vpop.xlane.xlu0 %220  ;;  %v116_v1 = vld [vmem:[%s6030_s0 + $0x358] sm:$0xff] }
  0xfc   :  { %346 = vmax.xlane.f32.xlu0 %v345_v11  ;;  %v459_v21 = vsel %vm137_vm0, %v116_v1, -inf }
  0xfe   :  { %v3871_v28 = vpop.xlane.xlu2 %298  ;;  %v3873_v34 = vpop.xlane.xlu1 %295 }
  0xff   :  { %6089 = vst [vmem:[#allocation7_spill] sm:$0xff] %v3871_v28  ;;  %v134_v28 = vld [vmem:[%s6030_s0 + $0x3e8] sm:$0xff] }
 0x100   :  { %6090 = vst [vmem:[#allocation8_spill] sm:$0xff] %v3873_v34  ;;  %v513_v31 = vsel %vm137_vm0, %v134_v28, -inf }
 0x103   :  { %433 = vmax.xlane.f32.xlu2 %v432_v38  ;;  %430 = vmax.xlane.f32.xlu1 %v429_v39  ;;  %v81_v38 = vld [vmem:[%s6030_s0 + $0x240] sm:$0xff]  ;;  %v450_v39 = vsel %vm137_vm0, %v113_v19, -inf  ;;  %v3917_v56 = vpop.xlane.xlu0 %229  ;;  %v84_v19 = vld [vmem:[%s6030_s0 + $0x258] sm:$0xff] }
 0x104   :  { %v354_v55 = vsel %vm137_vm0, %v81_v38, -inf }
 0x105   :  { %355 = vmax.xlane.f32.xlu0 %v354_v55  ;;  %v119_v55 = vld [vmem:[%s6030_s0 + $0x370] sm:$0xff] }
 0x106   :  { %v3889_v57 = vpop.xlane.xlu2 %307  ;;  %v3891_v61 = vpop.xlane.xlu1 %304 }
 0x107   :  { %6091 = vst [vmem:[#allocation9_spill] sm:$0xff] %v3889_v57 }
 0x108   :  { %6092 = vst [vmem:[#allocation10_spill] sm:$0xff] %v3891_v61 }
 0x10b   :  { %442 = vmax.xlane.f32.xlu2 %v441_v2  ;;  %439 = vmax.xlane.f32.xlu1 %v438_v10  ;;  %v115_v2 = vld [vmem:[%s6030_s0 + $0x350] sm:$0xff] }
 0x10c   :  { %v456_v38 = vsel %vm137_vm0, %v115_v2, -inf  ;;  %v87_v2 = vld [vmem:[%s6030_s0 + $0x270] sm:$0xff] }
 0x10e   :  { %v3907_v27 = vpop.xlane.xlu2 %316  ;;  %v3909_v35 = vpop.xlane.xlu1 %313 }
 0x10f   :  { %6093 = vst [vmem:[#allocation11_spill] sm:$0xff] %v3907_v27 }
 0x110   :  { %6094 = vst [vmem:[#allocation12_spill] sm:$0xff] %v3909_v35 }
 0x113   :  { %451 = vmax.xlane.f32.xlu2 %v450_v39  ;;  %448 = vmax.xlane.f32.xlu1 %v447_v44  ;;  %v363_v39 = vsel %vm137_vm0, %v84_v19, -inf  ;;  %v3935_v44 = vpop.xlane.xlu0 %238  ;;  %v468_v19 = vsel %vm137_vm0, %v119_v55, -inf }
 0x114   :  { %364 = vmax.xlane.f32.xlu0 %v363_v39 }
 0x116   :  { %v3925_v10 = vpop.xlane.xlu2 %325  ;;  %v3927_v11 = vpop.xlane.xlu1 %322 }
 0x117   :  { %6095 = vst [vmem:[#allocation13_spill] sm:$0xff] %v3925_v10  ;;  %v118_v10 = vld [vmem:[%s6030_s0 + $0x368] sm:$0xff] }
 0x118   :  { %6096 = vst [vmem:[#allocation14_spill] sm:$0xff] %v3927_v11 }
 0x11b   :  { %460 = vmax.xlane.f32.xlu2 %v459_v21  ;;  %457 = vmax.xlane.f32.xlu1 %v456_v38  ;;  %v465_v21 = vsel %vm137_vm0, %v118_v10, -inf  ;;  %v372_v38 = vsel %vm137_vm0, %v87_v2, -inf  ;;  %v3953_v39 = vpop.xlane.xlu0 %247  ;;  %v90_v10 = vld [vmem:[%s6030_s0 + $0x288] sm:$0xff] }
 0x11c   :  { %373 = vmax.xlane.f32.xlu0 %v372_v38 }
 0x11e   :  { %v3943_v11 = vpop.xlane.xlu2 %334  ;;  %v3945_v1 = vpop.xlane.xlu1 %331 }
 0x11f   :  { %6097 = vst [vmem:[#allocation15_spill] sm:$0xff] %v3943_v11  ;;  %v122_v11 = vld [vmem:[%s6030_s0 + $0x388] sm:$0xff] }
 0x120   :  { %6098 = vst [vmem:[#allocation16_spill] sm:$0xff] %v3945_v1  ;;  %v121_v1 = vld [vmem:[%s6030_s0 + $0x380] sm:$0xff]  ;;  %v477_v2 = vsel %vm137_vm0, %v122_v11, -inf }
 0x123   :  { %469 = vmax.xlane.f32.xlu2 %v468_v19  ;;  %466 = vmax.xlane.f32.xlu1 %v465_v21  ;;  %v474_v19 = vsel %vm137_vm0, %v121_v1, -inf  ;;  %v381_v21 = vsel %vm137_vm0, %v90_v10, -inf  ;;  %v3971_v38 = vpop.xlane.xlu0 %256  ;;  %v93_v1 = vld [vmem:[%s6030_s0 + $0x2a0] sm:$0xff] }
 0x124   :  { %382 = vmax.xlane.f32.xlu0 %v381_v21 }
 0x126   :  { %v3961_v27 = vpop.xlane.xlu2 %343  ;;  %v3963_v55 = vpop.xlane.xlu1 %340 }
 0x127   :  { %6099 = vst [vmem:[#allocation17_spill] sm:$0xff] %v3961_v27  ;;  %v125_v27 = vld [vmem:[%s6030_s0 + $0x3a0] sm:$0xff] }
 0x128   :  { %6100 = vst [vmem:[#allocation18_spill] sm:$0xff] %v3963_v55  ;;  %v124_v55 = vld [vmem:[%s6030_s0 + $0x398] sm:$0xff]  ;;  %v486_v10 = vsel %vm137_vm0, %v125_v27, -inf }
 0x12b   :  { %478 = vmax.xlane.f32.xlu2 %v477_v2  ;;  %475 = vmax.xlane.f32.xlu1 %v474_v19  ;;  %v483_v2 = vsel %vm137_vm0, %v124_v55, -inf  ;;  %v390_v19 = vsel %vm137_vm0, %v93_v1, -inf  ;;  %v3989_v21 = vpop.xlane.xlu0 %265  ;;  %v96_v55 = vld [vmem:[%s6030_s0 + $0x2b8] sm:$0xff] }
 0x12c   :  { %391 = vmax.xlane.f32.xlu0 %v390_v19 }
 0x12e   :  { %v3979_v35 = vpop.xlane.xlu2 %352  ;;  %v3981_v11 = vpop.xlane.xlu1 %349 }
 0x12f   :  { %6101 = vst [vmem:[#allocation19_spill] sm:$0xff] %v3979_v35  ;;  %v128_v35 = vld [vmem:[%s6030_s0 + $0x3b8] sm:$0xff] }
 0x130   :  { %6102 = vst [vmem:[#allocation20_spill] sm:$0xff] %v3981_v11  ;;  %v127_v11 = vld [vmem:[%s6030_s0 + $0x3b0] sm:$0xff]  ;;  %v495_v1 = vsel %vm137_vm0, %v128_v35, -inf }
 0x133   :  { %487 = vmax.xlane.f32.xlu2 %v486_v10  ;;  %484 = vmax.xlane.f32.xlu1 %v483_v2  ;;  %v492_v10 = vsel %vm137_vm0, %v127_v11, -inf  ;;  %v399_v2 = vsel %vm137_vm0, %v96_v55, -inf  ;;  %v4007_v19 = vpop.xlane.xlu0 %274  ;;  %v99_v11 = vld [vmem:[%s6030_s0 + $0x2d0] sm:$0xff] }
 0x134   :  { %400 = vmax.xlane.f32.xlu0 %v399_v2  ;;  %v522_v2 = vlaneseq }
 0x136   :  { %v3997_v57 = vpop.xlane.xlu2 %361  ;;  %v3999_v27 = vpop.xlane.xlu1 %358 }
 0x137   :  { %6103 = vst [vmem:[#allocation21_spill] sm:$0xff] %v3997_v57  ;;  %v131_v57 = vld [vmem:[%s6030_s0 + $0x3d0] sm:$0xff] }
 0x138   :  { %6104 = vst [vmem:[#allocation22_spill] sm:$0xff] %v3999_v27  ;;  %v130_v27 = vld [vmem:[%s6030_s0 + $0x3c8] sm:$0xff]  ;;  %v504_v55 = vsel %vm137_vm0, %v131_v57, -inf  ;;  %v133_v57 = vld [vmem:[%s6030_s0 + $0x3e0] sm:$0xff] }
 0x13b   :  { %496 = vmax.xlane.f32.xlu2 %v495_v1  ;;  %493 = vmax.xlane.f32.xlu1 %v492_v10  ;;  %v501_v1 = vsel %vm137_vm0, %v130_v27, -inf  ;;  %v408_v10 = vsel %vm137_vm0, %v99_v11, -inf }
 0x13c   :  { %409 = vmax.xlane.f32.xlu0 %v408_v10  ;;  %v417_v10 = vsel %vm137_vm0, %v102_v40, -inf }
 0x13e   :  { %v4015_v61 = vpop.xlane.xlu2 %370  ;;  %v4017_v35 = vpop.xlane.xlu1 %367 }
 0x13f   :  { %6105 = vst [vmem:[#allocation23_spill] sm:$0xff] %v4015_v61  ;;  %v4027_v61 = vpop.xlane.xlu0 %283 }
 0x140   :  { %6106 = vst [vmem:[#allocation24_spill] sm:$0xff] %v4017_v35  ;;  %v4029_v35 = vand.u32 127, %v522_v2 }
 0x143   :  { %505 = vmax.xlane.f32.xlu2 %v504_v55  ;;  %502 = vmax.xlane.f32.xlu1 %v501_v1  ;;  %v652_v55 = vsel %vm524_vm1, %v4029_v35, 32  ;;  %v510_v1 = vsel %vm137_vm0, %v133_v57, -inf }
 0x144   :  { %418 = vmax.xlane.f32.xlu0 %v417_v10  ;;  %v4049_v2 = vsel %vm137_vm0, %v652_v55, 2147483647  ;;  %v653_v55 = vsel %vm525_vm2, %v4029_v35, 32 }
 0x145   :  { %v782_v28 = vshra.s32 %v4049_v2, 16  ;;  %v4072_v10 = vsel %vm137_vm0, %v653_v55, 2147483647 }
 0x146   :  { %v4037_v27 = vpop.xlane.xlu2 %379  ;;  %v4039_v11 = vpop.xlane.xlu1 %376 }
 0x147   :  { %6107 = vst [vmem:[#allocation25_spill] sm:$0xff] %v4037_v27  ;;  %v4053_v27 = vpop.xlane.xlu0 %292 }
 0x148   :  { %6108 = vst [vmem:[#allocation26_spill] sm:$0xff] %v4039_v11  ;;  %v136_v11 = vld [vmem:[%s6030_s0 + $0x3f8] sm:$0xff] }
 0x149   :  { %6109 = vst [vmem:[#allocation27_spill] sm:$0xff] %v4053_v27  ;;  %v519_v48 = vsel %vm137_vm0, %v136_v11, -inf  ;;  %v108_v11 = vld [vmem:[%s6030_s0 + $0x318] sm:$0xff] }
 0x14b   :  { %514 = vmax.xlane.f32.xlu2 %v513_v31  ;;  %511 = vmax.xlane.f32.xlu1 %v510_v1  ;;  %v105_v31 = vld [vmem:[%s6030_s0 + $0x300] sm:$0xff]  ;;  %v4069_v1 = vcvt.s32.f32 %v782_v28  ;;  %v435_v28 = vsel %vm137_vm0, %v108_v11, -inf }
 0x14c   :  { %v426_v45 = vsel %vm137_vm0, %v105_v31, -inf }
 0x14d   :  { %427 = vmax.xlane.f32.xlu0 %v426_v45 }
 0x14e   :  { %v4059_v57 = vpop.xlane.xlu2 %388  ;;  %v4061_v40 = vpop.xlane.xlu1 %385 }
 0x14f   :  { %6110 = vst [vmem:[#allocation28_spill] sm:$0xff] %v4059_v57  ;;  %v4075_v57 = vpop.xlane.xlu0 %301 }
 0x150   :  { %6111 = vst [vmem:[#allocation29_spill] sm:$0xff] %v4061_v40  ;;  %v797_v40 = vshra.s32 %v4072_v10, 16 }
 0x151   :  { %6112 = vst [vmem:[#allocation30_spill] sm:$0xff] %v4075_v57 }
 0x152   :  { %v4086_v31 = vcvt.s32.f32 %v797_v40 }
 0x153   :  { %520 = vmax.xlane.f32.xlu1 %v519_v48  ;;  %785 = vmin.xlane.f32.xlu2 %v4069_v1 }
 0x155   :  { %436 = vmax.xlane.f32.xlu0 %v435_v28  ;;  %v114_v28 = vld [vmem:[%s6030_s0 + $0x348] sm:$0xff] }
 0x156   :  { %v4078_v34 = vpop.xlane.xlu2 %397  ;;  %v4080_v27 = vpop.xlane.xlu1 %394 }
 0x157   :  { %6113 = vst [vmem:[#allocation31_spill] sm:$0xff] %v4078_v34  ;;  %v4089_v55 = vpop.xlane.xlu0 %310  ;;  %v111_v34 = vld [vmem:[%s6030_s0 + $0x330] sm:$0xff] }
 0x158   :  { %6114 = vst [vmem:[#allocation32_spill] sm:$0xff] %v4080_v27  ;;  %v444_v27 = vsel %vm137_vm0, %v111_v34, -inf  ;;  %v117_v34 = vld [vmem:[%s6030_s0 + $0x360] sm:$0xff] }
 0x159   :  { %6115 = vst [vmem:[#allocation33_spill] sm:$0xff] %v4089_v55 }
 0x15b   :  { %800 = vmin.xlane.f32.xlu1 %v4086_v31 }
 0x15d   :  { %445 = vmax.xlane.f32.xlu0 %v444_v27  ;;  %v462_v27 = vsel %vm137_vm0, %v117_v34, -inf  ;;  %v123_v34 = vld [vmem:[%s6030_s0 + $0x390] sm:$0xff] }
 0x15e   :  { %v4091_v48 = vpop.xlane.xlu2 %406  ;;  %v4093_v45 = vpop.xlane.xlu1 %403 }
 0x15f   :  { %6116 = vst [vmem:[#allocation34_spill] sm:$0xff] %v4091_v48  ;;  %v4099_v57 = vpop.xlane.xlu0 %319  ;;  %v453_v48 = vsel %vm137_vm0, %v114_v28, -inf }
 0x160   :  { %6117 = vst [vmem:[#allocation35_spill] sm:$0xff] %v4093_v45 }
 0x161   :  { %6118 = vst [vmem:[#allocation36_spill] sm:$0xff] %v4099_v57 }
 0x165   :  { %454 = vmax.xlane.f32.xlu0 %v453_v48  ;;  %v120_v48 = vld [vmem:[%s6030_s0 + $0x378] sm:$0xff] }
 0x166   :  { %v4101_v40 = vpop.xlane.xlu2 %415  ;;  %v4103_v11 = vpop.xlane.xlu1 %412  ;;  %v471_v28 = vsel %vm137_vm0, %v120_v48, -inf  ;;  %v126_v48 = vld [vmem:[%s6030_s0 + $0x3a8] sm:$0xff] }
 0x167   :  { %6119 = vst [vmem:[#allocation37_spill] sm:$0xff] %v4101_v40  ;;  %v4109_v45 = vpop.xlane.xlu0 %328 }
 0x168   :  { %6120 = vst [vmem:[#allocation38_spill] sm:$0xff] %v4103_v11 }
 0x169   :  { %6121 = vst [vmem:[#allocation39_spill] sm:$0xff] %v4109_v45 }
 0x16d   :  { %463 = vmax.xlane.f32.xlu0 %v462_v27  ;;  %v480_v27 = vsel %vm137_vm0, %v123_v34, -inf  ;;  %v129_v34 = vld [vmem:[%s6030_s0 + $0x3c0] sm:$0xff] }
 0x16e   :  { %v4111_v55 = vpop.xlane.xlu2 %424  ;;  %v4113_v5 = vpop.xlane.xlu1 %421 }
 0x16f   :  { %6122 = vst [vmem:[#allocation40_spill] sm:$0xff] %v4111_v55  ;;  %v4119_v40 = vpop.xlane.xlu0 %337 }
 0x170   :  { %6123 = vst [vmem:[#allocation41_spill] sm:$0xff] %v4113_v5 }
 0x171   :  { %6124 = vst [vmem:[#allocation42_spill] sm:$0xff] %v4119_v40 }
 0x175   :  { %472 = vmax.xlane.f32.xlu0 %v471_v28  ;;  %v489_v28 = vsel %vm137_vm0, %v126_v48, -inf  ;;  %v132_v48 = vld [vmem:[%s6030_s0 + $0x3d8] sm:$0xff] }
 0x176   :  { %v4121_v11 = vpop.xlane.xlu2 %433  ;;  %v4123_v57 = vpop.xlane.xlu1 %430 }
 0x177   :  { %6125 = vst [vmem:[#allocation43_spill] sm:$0xff] %v4121_v11  ;;  %v4129_v55 = vpop.xlane.xlu0 %346 }
 0x178   :  { %6126 = vst [vmem:[#allocation44_spill] sm:$0xff] %v4123_v57 }
 0x179   :  { %6127 = vst [vmem:[#allocation45_spill] sm:$0xff] %v4129_v55 }
 0x17d   :  { %481 = vmax.xlane.f32.xlu0 %v480_v27  ;;  %v498_v27 = vsel %vm137_vm0, %v129_v34, -inf  ;;  %v135_v34 = vld [vmem:[%s6030_s0 + $0x3f0] sm:$0xff] }
 0x17e   :  { %v4131_v5 = vpop.xlane.xlu2 %442  ;;  %v4133_v45 = vpop.xlane.xlu1 %439 }
 0x17f   :  { %6128 = vst [vmem:[#allocation46_spill] sm:$0xff] %v4131_v5  ;;  %v4139_v11 = vpop.xlane.xlu0 %355 }
 0x180   :  { %6129 = vst [vmem:[#allocation47_spill] sm:$0xff] %v4133_v45 }
 0x181   :  { %6130 = vst [vmem:[#allocation48_spill] sm:$0xff] %v4139_v11 }
 0x185   :  { %490 = vmax.xlane.f32.xlu0 %v489_v28  ;;  %v507_v28 = vsel %vm137_vm0, %v132_v48, -inf }
 0x186   :  { %v4141_v57 = vpop.xlane.xlu2 %451  ;;  %v4143_v40 = vpop.xlane.xlu1 %448 }
 0x187   :  { %6131 = vst [vmem:[#allocation49_spill] sm:$0xff] %v4141_v57  ;;  %v4149_v5 = vpop.xlane.xlu0 %364 }
 0x188   :  { %6132 = vst [vmem:[#allocation50_spill] sm:$0xff] %v4143_v40 }
 0x189   :  { %6133 = vst [vmem:[#allocation51_spill] sm:$0xff] %v4149_v5 }
 0x18d   :  { %499 = vmax.xlane.f32.xlu0 %v498_v27  ;;  %v516_v27 = vsel %vm137_vm0, %v135_v34, -inf }
 0x18e   :  { %v4151_v45 = vpop.xlane.xlu2 %460  ;;  %v4153_v55 = vpop.xlane.xlu1 %457 }
 0x18f   :  { %6134 = vst [vmem:[#allocation52_spill] sm:$0xff] %v4151_v45  ;;  %v4159_v57 = vpop.xlane.xlu0 %373 }
 0x190   :  { %6135 = vst [vmem:[#allocation53_spill] sm:$0xff] %v4153_v55 }
 0x191   :  { %6136 = vst [vmem:[#allocation54_spill] sm:$0xff] %v4159_v57 }
 0x195   :  { %508 = vmax.xlane.f32.xlu0 %v507_v28 }
 0x196   :  { %v4161_v40 = vpop.xlane.xlu2 %469  ;;  %v4163_v11 = vpop.xlane.xlu1 %466 }
 0x197   :  { %6137 = vst [vmem:[#allocation55_spill] sm:$0xff] %v4161_v40  ;;  %v4169_v45 = vpop.xlane.xlu0 %382 }
 0x198   :  { %6138 = vst [vmem:[#allocation56_spill] sm:$0xff] %v4163_v11 }
 0x199   :  { %6139 = vst [vmem:[#allocation57_spill] sm:$0xff] %v4169_v45 }
 0x19d   :  { %517 = vmax.xlane.f32.xlu0 %v516_v27 }
 0x19e   :  { %v4171_v55 = vpop.xlane.xlu2 %478  ;;  %v4173_v5 = vpop.xlane.xlu1 %475 }
 0x19f   :  { %6140 = vst [vmem:[#allocation58_spill] sm:$0xff] %v4171_v55  ;;  %v4179_v40 = vpop.xlane.xlu0 %391 }
 0x1a0   :  { %6141 = vst [vmem:[#allocation59_spill] sm:$0xff] %v4173_v5 }
 0x1a1   :  { %6142 = vst [vmem:[#allocation60_spill] sm:$0xff] %v4179_v40 }
 0x1a6   :  { %v4181_v11 = vpop.xlane.xlu2 %487  ;;  %v4183_v57 = vpop.xlane.xlu1 %484 }
 0x1a7   :  { %6143 = vst [vmem:[#allocation61_spill] sm:$0xff] %v4181_v11  ;;  %v4189_v55 = vpop.xlane.xlu0 %400  ;;  %v3266_v11 = vld [vmem:[%s6030_s0 + $0x10] sm:$0xff] }
 0x1a8   :  { %6144 = vst [vmem:[#allocation62_spill] sm:$0xff] %v4183_v57  ;;  %vm526_vm3 = vcmp.eq.f32.partialorder %v3266_v11, %v3585_v9  ;;  %v3267_v9 = vld [vmem:[%s6030_s0 + $0x18] sm:$0xff] }
 0x1a9   :  { %6147 = vst [vmem:[#allocation65_spill] sm:$0xff] %v4189_v55  ;;  %vm527_vm5 = vcmp.eq.f32.partialorder %v3267_v9, %v3601_v17 }
 0x1ae   :  { %v4185_v48 = vpop.xlane.xlu2 %496  ;;  %v4187_v28 = vpop.xlane.xlu1 %493 }
 0x1af   :  { %6145 = vst [vmem:[#allocation63_spill] sm:$0xff] %v4185_v48  ;;  %v4195_v6 = vpop.xlane.xlu0 %409  ;;  %v781_v48 = vand.u32 65535, %v4049_v2  ;;  %v796_v2 = vand.u32 65535, %v4072_v10 }
 0x1b0   :  { %6146 = vst [vmem:[#allocation64_spill] sm:$0xff] %v4187_v28 }
 0x1b1   :  { %6150 = vst [vmem:[#allocation68_spill] sm:$0xff] %v4195_v6  ;;  %v783_v6 = vcvt.s32.f32 %v781_v48  ;;  %v798_v48 = vcvt.s32.f32 %v796_v2 }
 0x1b6   :  { %v4191_v5 = vpop.xlane.xlu2 %505  ;;  %v4193_v45 = vpop.xlane.xlu1 %502 }
 0x1b7   :  { %6148 = vst [vmem:[#allocation66_spill] sm:$0xff] %v4191_v5  ;;  %v4206_v28 = vpop.xlane.xlu0 %418  ;;  %v654_v5 = vsel %vm526_vm3, %v4029_v35, 32 }
 0x1b8   :  { %6149 = vst [vmem:[#allocation67_spill] sm:$0xff] %v4193_v45 }
 0x1b9   :  { %6153 = vst [vmem:[#allocation71_spill] sm:$0xff] %v4206_v28 }
 0x1be   :  { %v4197_v34 = vpop.xlane.xlu2 %514  ;;  %v4199_v27 = vpop.xlane.xlu1 %511 }
 0x1bf   :  { %6151 = vst [vmem:[#allocation69_spill] sm:$0xff] %v4197_v34 }
 0x1c0   :  { %6152 = vst [vmem:[#allocation70_spill] sm:$0xff] %v4199_v27  ;;  %v810_v27 = vsel %vm137_vm0, %v654_v5, 2147483647  ;;  %v4224_v55 = vpop.xlane.xlu0 %427 }
 0x1c1   :  { %v812_v11 = vshra.s32 %v810_v27, 16  ;;  %6155 = vst [vmem:[#allocation73_spill] sm:$0xff] %v4224_v55 }
 0x1c6   :  { %v4209_v57 = vpop.xlane.xlu1 %520  ;;  %v4211_v45 = vpop.xlane.xlu2 %785 }
 0x1c7   :  { %6154 = vst [vmem:[#allocation72_spill] sm:$0xff] %v4209_v57  ;;  %vm787_vm4 = vcmp.eq.f32.partialorder %v4069_v1, %v4211_v45  ;;  %v655_v57 = vsel %vm527_vm5, %v4029_v35, 32 }
 0x1c8   :  { %v788_v34 = vsel %vm787_vm4, %v783_v6, inf  ;;  %v814_v6 = vcvt.s32.f32 %v812_v11  ;;  %v825_v1 = vsel %vm137_vm0, %v655_v57, 2147483647  ;;  %v4229_v10 = vpop.xlane.xlu0 %436 }
 0x1c9   :  { %789 = vmin.xlane.f32.xlu0 %v788_v34  ;;  %v827_v17 = vshra.s32 %v825_v1, 16  ;;  %6156 = vst [vmem:[#allocation74_spill] sm:$0xff] %v4229_v10 }
 0x1cb   :  { %v829_v34 = vcvt.s32.f32 %v827_v17 }
 0x1ce   :  { %v4222_v28 = vpop.xlane.xlu1 %800 }
 0x1cf   :  { %vm802_vm6 = vcmp.eq.f32.partialorder %v4086_v31, %v4222_v28 }
 0x1d0   :  { %v803_v5 = vsel %vm802_vm6, %v798_v48, inf  ;;  %v4231_v9 = vpop.xlane.xlu0 %445 }
 0x1d1   :  { %815 = vmin.xlane.f32.xlu0 %v814_v6  ;;  %804 = vmin.xlane.f32.xlu2 %v803_v5  ;;  %6157 = vst [vmem:[#allocation75_spill] sm:$0xff] %v4231_v9  ;;  %v3269_v9 = vld [vmem:[%s6030_s0 + $0x28] sm:$0xff] }
 0x1d2   :  { %vm529_vm9 = vcmp.eq.f32.partialorder %v3269_v9, %v3599_v16 }
 0x1d8   :  { %v4233_v40 = vpop.xlane.xlu0 %454 }
 0x1d9   :  { %830 = vmin.xlane.f32.xlu2 %v829_v34  ;;  %6158 = vst [vmem:[#allocation76_spill] sm:$0xff] %v4233_v40  ;;  %v3268_v40 = vld [vmem:[%s6030_s0 + $0x20] sm:$0xff] }
 0x1da   :  { %vm528_vm7 = vcmp.eq.f32.partialorder %v3268_v40, %v3583_v8  ;;  %v826_v8 = vand.u32 65535, %v825_v1  ;;  %v658_v1 = vsel %vm530_vm11, %v4029_v35, 32 }
 0x1e0   :  { %v4235_v2 = vpop.xlane.xlu0 %463 }
 0x1e1   :  { %6159 = vst [vmem:[#allocation77_spill] sm:$0xff] %v4235_v2  ;;  %v811_v2 = vand.u32 65535, %v810_v27  ;;  %v657_v27 = vsel %vm529_vm9, %v4029_v35, 32 }
 0x1e8   :  { %v4237_v11 = vpop.xlane.xlu0 %472 }
 0x1e9   :  { %6160 = vst [vmem:[#allocation78_spill] sm:$0xff] %v4237_v11  ;;  %v656_v11 = vsel %vm528_vm7, %v4029_v35, 32 }
 0x1f0   :  { %v4239_v55 = vpop.xlane.xlu0 %481 }
 0x1f1   :  { %6161 = vst [vmem:[#allocation79_spill] sm:$0xff] %v4239_v55 }
 0x1f8   :  { %v4241_v31 = vpop.xlane.xlu0 %490 }
 0x1f9   :  { %6162 = vst [vmem:[#allocation80_spill] sm:$0xff] %v4241_v31 }
 0x200   :  { %v4243_v57 = vpop.xlane.xlu0 %499 }
 0x201   :  { %6163 = vst [vmem:[#allocation81_spill] sm:$0xff] %v4243_v57  ;;  %v813_v57 = vcvt.s32.f32 %v811_v2 }
 0x208   :  { %v4245_v48 = vpop.xlane.xlu0 %508 }
 0x209   :  { %6164 = vst [vmem:[#allocation82_spill] sm:$0xff] %v4245_v48 }
 0x210   :  { %v4247_v5 = vpop.xlane.xlu0 %517 }
 0x211   :  { %6165 = vst [vmem:[#allocation83_spill] sm:$0xff] %v4247_v5  ;;  %v840_v5 = vsel %vm137_vm0, %v656_v11, 2147483647  ;;  %v855_v11 = vsel %vm137_vm0, %v657_v27, 2147483647  ;;  %v3270_v27 = vld [vmem:[%s6030_s0 + $0x38] sm:$0xff] }
 0x212   :  { %v842_v40 = vshra.s32 %v840_v5, 16  ;;  %v841_v16 = vand.u32 65535, %v840_v5  ;;  %vm531_vm13 = vcmp.eq.f32.partialorder %v3270_v27, %v3617_v25  ;;  %v856_v54 = vand.u32 65535, %v855_v11  ;;  %v3271_v25 = vld [vmem:[%s6030_s0 + $0x40] sm:$0xff] }
 0x213   :  { %v659_v5 = vsel %vm531_vm13, %v4029_v35, 32  ;;  %vm532_vm15 = vcmp.eq.f32.partialorder %v3271_v25, %v3615_v24 }
 0x214   :  { %v660_v27 = vsel %vm532_vm15, %v4029_v35, 32 }
 0x23c   :  { %v4249_v17 = vpop.xlane.xlu0 %789 }
 0x23d   :  { %6166 = vst [vmem:[#allocation84_spill] sm:$0xff] %v4249_v17 }
 0x244   :  { %v4256_v55 = vpop.xlane.xlu2 %804  ;;  %v4258_v31 = vpop.xlane.xlu0 %815 }
 0x245   :  { %6167 = vst [vmem:[#allocation85_spill] sm:$0xff] %v4256_v55  ;;  %vm817_vm8 = vcmp.eq.f32.partialorder %v814_v6, %v4258_v31  ;;  %v828_v55 = vcvt.s32.f32 %v826_v8  ;;  %v844_v6 = vcvt.s32.f32 %v842_v40  ;;  %v870_v40 = vsel %vm137_vm0, %v658_v1, 2147483647 }
 0x246   :  { %v818_v48 = vsel %vm817_vm8, %v813_v57, inf  ;;  %v857_v57 = vshra.s32 %v855_v11, 16  ;;  %v872_v58 = vshra.s32 %v870_v40, 16  ;;  %v885_v1 = vsel %vm137_vm0, %v659_v5, 2147483647 }
 0x247   :  { %819 = vmin.xlane.f32.xlu1 %v818_v48  ;;  %v871_v11 = vand.u32 65535, %v870_v40  ;;  %v886_v24 = vand.u32 65535, %v885_v1 }
 0x248   :  { %v859_v48 = vcvt.s32.f32 %v857_v57  ;;  %v858_v57 = vcvt.s32.f32 %v856_v54 }
 0x24c   :  { %v4267_v10 = vpop.xlane.xlu2 %830 }
 0x24d   :  { %vm832_vm10 = vcmp.eq.f32.partialorder %v829_v34, %v4267_v10 }
 0x24e   :  { %v833_v2 = vsel %vm832_vm10, %v828_v55, inf  ;;  %v843_v55 = vcvt.s32.f32 %v841_v16  ;;  %v874_v16 = vcvt.s32.f32 %v872_v58  ;;  %v873_v58 = vcvt.s32.f32 %v871_v11 }
 0x24f   :  { %834 = vmin.xlane.f32.xlu0 %v833_v2  ;;  %845 = vmin.xlane.f32.xlu1 %v844_v6 }
 0x257   :  { %860 = vmin.xlane.f32.xlu0 %v859_v48 }
 0x2ba   :  { %v4271_v17 = vpop.xlane.xlu1 %819 }
 0x2c2   :  { %v4276_v9 = vpop.xlane.xlu1 %845  ;;  %v4278_v34 = vpop.xlane.xlu0 %834 }
 0x2c3   :  { %6168 = vst [vmem:[#allocation86_spill] sm:$0xff] %v4278_v34  ;;  %vm847_vm12 = vcmp.eq.f32.partialorder %v844_v6, %v4276_v9 }
 0x2c4   :  { %v848_v8 = vsel %vm847_vm12, %v843_v55, inf  ;;  %v887_v55 = vshra.s32 %v885_v1, 16 }
 0x2c5   :  { %849 = vmin.xlane.f32.xlu2 %v848_v8 }
 0x2c6   :  { %v889_v8 = vcvt.s32.f32 %v887_v55 }
 0x2ca   :  { %v4287_v2 = vpop.xlane.xlu0 %860 }
 0x2cb   :  { %vm862_vm14 = vcmp.eq.f32.partialorder %v859_v48, %v4287_v2 }
 0x2cc   :  { %v863_v6 = vsel %vm862_vm14, %v858_v57, inf  ;;  %v900_v57 = vsel %vm137_vm0, %v660_v27, 2147483647 }
 0x2cd   :  { %875 = vmin.xlane.f32.xlu2 %v874_v16  ;;  %864 = vmin.xlane.f32.xlu1 %v863_v6  ;;  %v3272_v6 = vld [vmem:[%s6030_s0 + $0x48] sm:$0xff]  ;;  %v902_v40 = vshra.s32 %v900_v57, 16  ;;  %v901_v1 = vand.u32 65535, %v900_v57 }
 0x2ce   :  { %vm533_vm2 = vcmp.eq.f32.partialorder %v3272_v6, %v3791_v7  ;;  %v3273_v7 = vld [vmem:[%s6030_s0 + $0x50] sm:$0xff] }
 0x2cf   :  { %v661_v55 = vsel %vm533_vm2, %v4029_v35, 32  ;;  %v904_v11 = vcvt.s32.f32 %v902_v40  ;;  %vm534_vm4 = vcmp.eq.f32.partialorder %v3273_v7, %v3633_v33 }
 0x2d0   :  { %v915_v27 = vsel %vm137_vm0, %v661_v55, 2147483647  ;;  %v662_v6 = vsel %vm534_vm4, %v4029_v35, 32 }
 0x2d1   :  { %v930_v40 = vsel %vm137_vm0, %v662_v6, 2147483647  ;;  %v916_v33 = vand.u32 65535, %v915_v27 }
 0x2d2   :  { %v932_v57 = vshra.s32 %v930_v40, 16 }
 0x2d5   :  { %890 = vmin.xlane.f32.xlu1 %v889_v8 }
 0x338   :  { %v4291_v34 = vpop.xlane.xlu2 %849 }
 0x340   :  { %v4298_v48 = vpop.xlane.xlu2 %875  ;;  %v4300_v54 = vpop.xlane.xlu1 %864 }
 0x341   :  { %6169 = vst [vmem:[#allocation87_spill] sm:$0xff] %v4298_v48  ;;  %vm877_vm1 = vcmp.eq.f32.partialorder %v874_v16, %v4298_v48 }
 0x342   :  { %6170 = vst [vmem:[#allocation88_spill] sm:$0xff] %v4300_v54  ;;  %v878_v5 = vsel %vm877_vm1, %v873_v58, inf  ;;  %v888_v54 = vcvt.s32.f32 %v886_v24  ;;  %v917_v58 = vshra.s32 %v915_v27, 16  ;;  %v903_v24 = vcvt.s32.f32 %v901_v1 }
 0x343   :  { %879 = vmin.xlane.f32.xlu0 %v878_v5  ;;  %v931_v27 = vand.u32 65535, %v930_v40 }
 0x344   :  { %v919_v5 = vcvt.s32.f32 %v917_v58 }
 0x348   :  { %v4309_v25 = vpop.xlane.xlu1 %890 }
 0x349   :  { %vm892_vm3 = vcmp.eq.f32.partialorder %v889_v8, %v4309_v25 }
 0x34a   :  { %v893_v16 = vsel %vm892_vm3, %v888_v54, inf }
 0x34b   :  { %905 = vmin.xlane.f32.xlu0 %v904_v11  ;;  %894 = vmin.xlane.f32.xlu2 %v893_v16  ;;  %v3274_v16 = vld [vmem:[%s6030_s0 + $0x58] sm:$0xff] }
 0x34c   :  { %vm535_vm6 = vcmp.eq.f32.partialorder %v3274_v16, %v3631_v32  ;;  %v3275_v32 = vld [vmem:[%s6030_s0 + $0x60] sm:$0xff] }
 0x34d   :  { %v663_v58 = vsel %vm535_vm6, %v4029_v35, 32  ;;  %vm536_vm8 = vcmp.eq.f32.partialorder %v3275_v32, %v3809_v22 }
 0x34e   :  { %v945_v1 = vsel %vm137_vm0, %v663_v58, 2147483647 }
 0x34f   :  { %v946_v22 = vand.u32 65535, %v945_v1 }
 0x353   :  { %920 = vmin.xlane.f32.xlu2 %v919_v5 }
 0x3b6   :  { %v4313_v48 = vpop.xlane.xlu0 %879 }
 0x3be   :  { %v4320_v8 = vpop.xlane.xlu2 %894  ;;  %v4322_v54 = vpop.xlane.xlu0 %905 }
 0x3bf   :  { %6171 = vst [vmem:[#allocation89_spill] sm:$0xff] %v4320_v8  ;;  %vm907_vm5 = vcmp.eq.f32.partialorder %v904_v11, %v4322_v54  ;;  %v918_v8 = vcvt.s32.f32 %v916_v33  ;;  %v934_v11 = vcvt.s32.f32 %v932_v57 }
 0x3c0   :  { %6172 = vst [vmem:[#allocation90_spill] sm:$0xff] %v4322_v54  ;;  %v908_v55 = vsel %vm907_vm5, %v903_v24, inf  ;;  %v947_v24 = vshra.s32 %v945_v1, 16 }
 0x3c1   :  { %909 = vmin.xlane.f32.xlu1 %v908_v55 }
 0x3c2   :  { %v949_v55 = vcvt.s32.f32 %v947_v24 }
 0x3c6   :  { %v4331_v7 = vpop.xlane.xlu2 %920 }
 0x3c7   :  { %vm922_vm7 = vcmp.eq.f32.partialorder %v919_v5, %v4331_v7  ;;  %v664_v5 = vsel %vm536_vm8, %v4029_v35, 32 }
 0x3c8   :  { %v923_v6 = vsel %vm922_vm7, %v918_v8, inf  ;;  %v933_v8 = vcvt.s32.f32 %v931_v27  ;;  %v960_v57 = vsel %vm137_vm0, %v664_v5, 2147483647 }
 0x3c9   :  { %924 = vmin.xlane.f32.xlu0 %v923_v6  ;;  %935 = vmin.xlane.f32.xlu1 %v934_v11  ;;  %v3276_v6 = vld [vmem:[%s6030_s0 + $0x68] sm:$0xff]  ;;  %v962_v40 = vshra.s32 %v960_v57, 16  ;;  %v961_v1 = vand.u32 65535, %v960_v57 }
 0x3ca   :  { %vm537_vm10 = vcmp.eq.f32.partialorder %v3276_v6, %v3649_v42  ;;  %v3277_v42 = vld [vmem:[%s6030_s0 + $0x70] sm:$0xff] }
 0x3cb   :  { %v665_v24 = vsel %vm537_vm10, %v4029_v35, 32  ;;  %v964_v27 = vcvt.s32.f32 %v962_v40  ;;  %vm538_vm12 = vcmp.eq.f32.partialorder %v3277_v42, %v3647_v41 }
 0x3cc   :  { %v666_v6 = vsel %vm538_vm12, %v4029_v35, 32 }
 0x3cd   :  { %v990_v40 = vsel %vm137_vm0, %v666_v6, 2147483647 }
 0x3ce   :  { %v992_v57 = vshra.s32 %v990_v40, 16 }
 0x3d1   :  { %950 = vmin.xlane.f32.xlu0 %v949_v55 }
 0x434   :  { %v4335_v54 = vpop.xlane.xlu1 %909 }
 0x43c   :  { %v4342_v16 = vpop.xlane.xlu1 %935  ;;  %v4344_v33 = vpop.xlane.xlu0 %924 }
 0x43d   :  { %6173 = vst [vmem:[#allocation91_spill] sm:$0xff] %v4342_v16  ;;  %vm937_vm9 = vcmp.eq.f32.partialorder %v934_v11, %v4342_v16  ;;  %v975_v11 = vsel %vm137_vm0, %v665_v24, 2147483647 }
 0x43e   :  { %6174 = vst [vmem:[#allocation92_spill] sm:$0xff] %v4344_v33  ;;  %v938_v58 = vsel %vm937_vm9, %v933_v8, inf  ;;  %v948_v33 = vcvt.s32.f32 %v946_v22  ;;  %v977_v8 = vshra.s32 %v975_v11, 16  ;;  %v976_v41 = vand.u32 65535, %v975_v11 }
 0x43f   :  { %939 = vmin.xlane.f32.xlu2 %v938_v58  ;;  %v991_v11 = vand.u32 65535, %v990_v40 }
 0x440   :  { %v979_v58 = vcvt.s32.f32 %v977_v8 }
 0x444   :  { %v4353_v32 = vpop.xlane.xlu0 %950 }
 0x445   :  { %vm952_vm11 = vcmp.eq.f32.partialorder %v949_v55, %v4353_v32 }
 0x446   :  { %v953_v5 = vsel %vm952_vm11, %v948_v33, inf  ;;  %v963_v33 = vcvt.s32.f32 %v961_v1  ;;  %v994_v1 = vcvt.s32.f32 %v992_v57 }
 0x447   :  { %965 = vmin.xlane.f32.xlu2 %v964_v27  ;;  %954 = vmin.xlane.f32.xlu1 %v953_v5  ;;  %v3278_v5 = vld [vmem:[%s6030_s0 + $0x78] sm:$0xff] }
 0x448   :  { %vm539_vm14 = vcmp.eq.f32.partialorder %v3278_v5, %v3827_v43  ;;  %v3279_v43 = vld [vmem:[%s6030_s0 + $0x80] sm:$0xff] }
 0x449   :  { %v667_v8 = vsel %vm539_vm14, %v4029_v35, 32  ;;  %vm540_vm1 = vcmp.eq.f32.partialorder %v3279_v43, %v3665_v51 }
 0x44a   :  { %v668_v5 = vsel %vm540_vm1, %v4029_v35, 32 }
 0x44b   :  { %v1020_v57 = vsel %vm137_vm0, %v668_v5, 2147483647 }
 0x44c   :  { %v1022_v40 = vshra.s32 %v1020_v57, 16 }
 0x44f   :  { %980 = vmin.xlane.f32.xlu1 %v979_v58 }
 0x4b2   :  { %v4357_v16 = vpop.xlane.xlu2 %939 }
 0x4ba   :  { %v4364_v55 = vpop.xlane.xlu2 %965  ;;  %v4366_v22 = vpop.xlane.xlu1 %954 }
 0x4bb   :  { %6175 = vst [vmem:[#allocation93_spill] sm:$0xff] %v4364_v55  ;;  %vm967_vm13 = vcmp.eq.f32.partialorder %v964_v27, %v4364_v55  ;;  %v1005_v27 = vsel %vm137_vm0, %v667_v8, 2147483647 }
 0x4bc   :  { %6176 = vst [vmem:[#allocation94_spill] sm:$0xff] %v4366_v22  ;;  %v968_v24 = vsel %vm967_vm13, %v963_v33, inf  ;;  %v978_v22 = vcvt.s32.f32 %v976_v41  ;;  %v1007_v33 = vshra.s32 %v1005_v27, 16  ;;  %v1006_v51 = vand.u32 65535, %v1005_v27 }
 0x4bd   :  { %969 = vmin.xlane.f32.xlu0 %v968_v24  ;;  %v1021_v27 = vand.u32 65535, %v1020_v57 }
 0x4be   :  { %v1009_v24 = vcvt.s32.f32 %v1007_v33 }
 0x4c2   :  { %v4375_v42 = vpop.xlane.xlu1 %980 }
 0x4c3   :  { %vm982_vm15 = vcmp.eq.f32.partialorder %v979_v58, %v4375_v42 }
 0x4c4   :  { %v983_v6 = vsel %vm982_vm15, %v978_v22, inf  ;;  %v993_v22 = vcvt.s32.f32 %v991_v11 }
 0x4c5   :  { %995 = vmin.xlane.f32.xlu0 %v994_v1  ;;  %984 = vmin.xlane.f32.xlu2 %v983_v6  ;;  %v3280_v6 = vld [vmem:[%s6030_s0 + $0x88] sm:$0xff] }
 0x4c6   :  { %vm541_vm3 = vcmp.eq.f32.partialorder %v3280_v6, %v3663_v50  ;;  %v3281_v50 = vld [vmem:[%s6030_s0 + $0x90] sm:$0xff] }
 0x4c7   :  { %v669_v33 = vsel %vm541_vm3, %v4029_v35, 32  ;;  %vm542_vm5 = vcmp.eq.f32.partialorder %v3281_v50, %v3845_v62 }
 0x4c8   :  { %v1035_v11 = vsel %vm137_vm0, %v669_v33, 2147483647 }
 0x4c9   :  { %v1036_v62 = vand.u32 65535, %v1035_v11 }
 0x4cd   :  { %1010 = vmin.xlane.f32.xlu2 %v1009_v24 }
 0x530   :  { %v4379_v55 = vpop.xlane.xlu0 %969 }
 0x531   :  { %6177 = vst [vmem:[#allocation95_spill] sm:$0xff] %v4379_v55 }
 0x538   :  { %v4386_v58 = vpop.xlane.xlu2 %984  ;;  %v4388_v41 = vpop.xlane.xlu0 %995 }
 0x539   :  { %6178 = vst [vmem:[#allocation96_spill] sm:$0xff] %v4386_v58  ;;  %vm997_vm2 = vcmp.eq.f32.partialorder %v994_v1, %v4388_v41  ;;  %v1008_v58 = vcvt.s32.f32 %v1006_v51  ;;  %v1024_v1 = vcvt.s32.f32 %v1022_v40 }
 0x53a   :  { %6179 = vst [vmem:[#allocation97_spill] sm:$0xff] %v4388_v41  ;;  %v998_v8 = vsel %vm997_vm2, %v993_v22, inf  ;;  %v1037_v22 = vshra.s32 %v1035_v11, 16 }
 0x53b   :  { %999 = vmin.xlane.f32.xlu1 %v998_v8 }
 0x53c   :  { %v1039_v8 = vcvt.s32.f32 %v1037_v22 }
 0x540   :  { %v4397_v43 = vpop.xlane.xlu2 %1010 }
 0x541   :  { %6180 = vst [vmem:[#allocation98_spill] sm:$0xff] %v4397_v43  ;;  %vm1012_vm4 = vcmp.eq.f32.partialorder %v1009_v24, %v4397_v43  ;;  %v670_v24 = vsel %vm542_vm5, %v4029_v35, 32 }
 0x542   :  { %v1013_v5 = vsel %vm1012_vm4, %v1008_v58, inf  ;;  %v1023_v58 = vcvt.s32.f32 %v1021_v27  ;;  %v1050_v40 = vsel %vm137_vm0, %v670_v24, 2147483647 }
 0x543   :  { %1014 = vmin.xlane.f32.xlu0 %v1013_v5  ;;  %1025 = vmin.xlane.f32.xlu1 %v1024_v1  ;;  %v3282_v5 = vld [vmem:[%s6030_s0 + $0x98] sm:$0xff]  ;;  %v1052_v57 = vshra.s32 %v1050_v40, 16  ;;  %v1051_v11 = vand.u32 65535, %v1050_v40 }
 0x544   :  { %vm543_vm7 = vcmp.eq.f32.partialorder %v3282_v5, %v3681_v60  ;;  %v3283_v60 = vld [vmem:[%s6030_s0 + $0xa0] sm:$0xff] }
 0x545   :  { %v671_v22 = vsel %vm543_vm7, %v4029_v35, 32  ;;  %v1054_v27 = vcvt.s32.f32 %v1052_v57  ;;  %vm544_vm9 = vcmp.eq.f32.partialorder %v3283_v60, %v3679_v59 }
 0x546   :  { %v672_v5 = vsel %vm544_vm9, %v4029_v35, 32 }
 0x547   :  { %v1080_v57 = vsel %vm137_vm0, %v672_v5, 2147483647 }
 0x548   :  { %v1082_v40 = vshra.s32 %v1080_v57, 16 }
 0x54b   :  { %1040 = vmin.xlane.f32.xlu0 %v1039_v8 }
 0x5ae   :  { %v4401_v41 = vpop.xlane.xlu1 %999 }
 0x5af   :  { %6181 = vst [vmem:[#allocation99_spill] sm:$0xff] %v4401_v41 }
 0x5b6   :  { %v4408_v6 = vpop.xlane.xlu1 %1025  ;;  %v4410_v51 = vpop.xlane.xlu0 %1014 }
 0x5b7   :  { %6182 = vst [vmem:[#allocation100_spill] sm:$0xff] %v4410_v51  ;;  %vm1027_vm6 = vcmp.eq.f32.partialorder %v1024_v1, %v4408_v6  ;;  %v1038_v51 = vcvt.s32.f32 %v1036_v62  ;;  %v1065_v1 = vsel %vm137_vm0, %v671_v22, 2147483647 }
 0x5b8   :  { %v1028_v33 = vsel %vm1027_vm6, %v1023_v58, inf  ;;  %v1067_v58 = vshra.s32 %v1065_v1, 16  ;;  %v1066_v59 = vand.u32 65535, %v1065_v1  ;;  %v1081_v1 = vand.u32 65535, %v1080_v57 }
 0x5b9   :  { %1029 = vmin.xlane.f32.xlu2 %v1028_v33 }
 0x5ba   :  { %v1069_v33 = vcvt.s32.f32 %v1067_v58  ;;  %v1068_v41 = vcvt.s32.f32 %v1066_v59 }
 0x5be   :  { %v4419_v50 = vpop.xlane.xlu0 %1040 }
 0x5bf   :  { %vm1042_vm8 = vcmp.eq.f32.partialorder %v1039_v8, %v4419_v50 }
 0x5c0   :  { %v1043_v24 = vsel %vm1042_vm8, %v1038_v51, inf  ;;  %v1053_v51 = vcvt.s32.f32 %v1051_v11  ;;  %v1084_v11 = vcvt.s32.f32 %v1082_v40 }
 0x5c1   :  { %1055 = vmin.xlane.f32.xlu2 %v1054_v27  ;;  %1044 = vmin.xlane.f32.xlu1 %v1043_v24  ;;  %v3284_v24 = vld [vmem:[%s6030_s0 + $0xa8] sm:$0xff] }
 0x5c2   :  { %vm545_vm11 = vcmp.eq.f32.partialorder %v3284_v24, %v3863_v20  ;;  %v3285_v20 = vld [vmem:[%s6030_s0 + $0xb0] sm:$0xff] }
 0x5c3   :  { %v673_v58 = vsel %vm545_vm11, %v4029_v35, 32  ;;  %vm546_vm13 = vcmp.eq.f32.partialorder %v3285_v20, %v3697_v4 }
 0x5c4   :  { %v674_v24 = vsel %vm546_vm13, %v4029_v35, 32 }
 0x5c5   :  { %v1110_v40 = vsel %vm137_vm0, %v674_v24, 2147483647 }
 0x5c6   :  { %v1112_v57 = vshra.s32 %v1110_v40, 16 }
 0x5c9   :  { %1070 = vmin.xlane.f32.xlu1 %v1069_v33 }
 0x62c   :  { %v4423_v43 = vpop.xlane.xlu2 %1029 }
 0x634   :  { %v4430_v8 = vpop.xlane.xlu2 %1055  ;;  %v4432_v62 = vpop.xlane.xlu1 %1044 }
 0x635   :  { %vm1057_vm10 = vcmp.eq.f32.partialorder %v1054_v27, %v4430_v8  ;;  %v1095_v27 = vsel %vm137_vm0, %v673_v58, 2147483647 }
 0x636   :  { %v1058_v22 = vsel %vm1057_vm10, %v1053_v51, inf  ;;  %v1097_v51 = vshra.s32 %v1095_v27, 16  ;;  %v1096_v4 = vand.u32 65535, %v1095_v27  ;;  %v1111_v27 = vand.u32 65535, %v1110_v40 }
 0x637   :  { %1059 = vmin.xlane.f32.xlu0 %v1058_v22 }
 0x638   :  { %v1099_v22 = vcvt.s32.f32 %v1097_v51 }
 0x63c   :  { %v4441_v60 = vpop.xlane.xlu1 %1070 }
 0x63d   :  { %vm1072_vm12 = vcmp.eq.f32.partialorder %v1069_v33, %v4441_v60 }
 0x63e   :  { %v1073_v5 = vsel %vm1072_vm12, %v1068_v41, inf  ;;  %v1083_v41 = vcvt.s32.f32 %v1081_v1 }
 0x63f   :  { %1085 = vmin.xlane.f32.xlu0 %v1084_v11  ;;  %1074 = vmin.xlane.f32.xlu2 %v1073_v5  ;;  %v3286_v5 = vld [vmem:[%s6030_s0 + $0xb8] sm:$0xff] }
 0x640   :  { %vm547_vm15 = vcmp.eq.f32.partialorder %v3286_v5, %v3695_v3  ;;  %v3287_v3 = vld [vmem:[%s6030_s0 + $0xc0] sm:$0xff] }
 0x641   :  { %v675_v51 = vsel %vm547_vm15, %v4029_v35, 32  ;;  %vm548_vm2 = vcmp.eq.f32.partialorder %v3287_v3, %v3881_v46 }
 0x642   :  { %v1125_v1 = vsel %vm137_vm0, %v675_v51, 2147483647 }
 0x643   :  { %v1126_v46 = vand.u32 65535, %v1125_v1 }
 0x647   :  { %1100 = vmin.xlane.f32.xlu2 %v1099_v22 }
 0x6aa   :  { %v4445_v55 = vpop.xlane.xlu0 %1059 }
 0x6b2   :  { %v4452_v33 = vpop.xlane.xlu2 %1074  ;;  %v4454_v59 = vpop.xlane.xlu0 %1085 }
 0x6b3   :  { %6183 = vst [vmem:[#allocation101_spill] sm:$0xff] %v4452_v33  ;;  %vm1087_vm14 = vcmp.eq.f32.partialorder %v1084_v11, %v4454_v59  ;;  %v1098_v33 = vcvt.s32.f32 %v1096_v4  ;;  %v1114_v11 = vcvt.s32.f32 %v1112_v57 }
 0x6b4   :  { %6184 = vst [vmem:[#allocation102_spill] sm:$0xff] %v4454_v59  ;;  %v1088_v58 = vsel %vm1087_vm14, %v1083_v41, inf  ;;  %v1127_v41 = vshra.s32 %v1125_v1, 16 }
 0x6b5   :  { %1089 = vmin.xlane.f32.xlu1 %v1088_v58 }
 0x6b6   :  { %v1129_v58 = vcvt.s32.f32 %v1127_v41 }
 0x6ba   :  { %v4463_v20 = vpop.xlane.xlu2 %1100 }
 0x6bb   :  { %vm1102_vm1 = vcmp.eq.f32.partialorder %v1099_v22, %v4463_v20  ;;  %v676_v22 = vsel %vm548_vm2, %v4029_v35, 32 }
 0x6bc   :  { %v1103_v24 = vsel %vm1102_vm1, %v1098_v33, inf  ;;  %v1113_v33 = vcvt.s32.f32 %v1111_v27  ;;  %v1140_v57 = vsel %vm137_vm0, %v676_v22, 2147483647 }
 0x6bd   :  { %1104 = vmin.xlane.f32.xlu0 %v1103_v24  ;;  %1115 = vmin.xlane.f32.xlu1 %v1114_v11  ;;  %v3288_v24 = vld [vmem:[%s6030_s0 + $0xc8] sm:$0xff]  ;;  %v1142_v40 = vshra.s32 %v1140_v57, 16  ;;  %v1141_v1 = vand.u32 65535, %v1140_v57 }
 0x6be   :  { %vm549_vm4 = vcmp.eq.f32.partialorder %v3288_v24, %v3713_v14  ;;  %v3289_v14 = vld [vmem:[%s6030_s0 + $0xd0] sm:$0xff] }
 0x6bf   :  { %v677_v41 = vsel %vm549_vm4, %v4029_v35, 32  ;;  %v1144_v27 = vcvt.s32.f32 %v1142_v40  ;;  %vm550_vm6 = vcmp.eq.f32.partialorder %v3289_v14, %v3711_v13 }
 0x6c0   :  { %v678_v24 = vsel %vm550_vm6, %v4029_v35, 32 }
 0x6c1   :  { %v1170_v40 = vsel %vm137_vm0, %v678_v24, 2147483647 }
 0x6c2   :  { %v1172_v57 = vshra.s32 %v1170_v40, 16 }
 0x6c5   :  { %1130 = vmin.xlane.f32.xlu0 %v1129_v58 }
 0x728   :  { %v4467_v59 = vpop.xlane.xlu1 %1089 }
 0x730   :  { %v4474_v5 = vpop.xlane.xlu1 %1115  ;;  %v4476_v4 = vpop.xlane.xlu0 %1104 }
 0x731   :  { %6185 = vst [vmem:[#allocation103_spill] sm:$0xff] %v4474_v5  ;;  %vm1117_vm3 = vcmp.eq.f32.partialorder %v1114_v11, %v4474_v5  ;;  %v1155_v11 = vsel %vm137_vm0, %v677_v41, 2147483647 }
 0x732   :  { %6186 = vst [vmem:[#allocation104_spill] sm:$0xff] %v4476_v4  ;;  %v1118_v51 = vsel %vm1117_vm3, %v1113_v33, inf  ;;  %v1128_v4 = vcvt.s32.f32 %v1126_v46  ;;  %v1157_v33 = vshra.s32 %v1155_v11, 16  ;;  %v1156_v13 = vand.u32 65535, %v1155_v11 }
 0x733   :  { %1119 = vmin.xlane.f32.xlu2 %v1118_v51  ;;  %v1171_v11 = vand.u32 65535, %v1170_v40 }
 0x734   :  { %v1159_v51 = vcvt.s32.f32 %v1157_v33 }
 0x738   :  { %v4485_v3 = vpop.xlane.xlu0 %1130 }
 0x739   :  { %vm1132_vm5 = vcmp.eq.f32.partialorder %v1129_v58, %v4485_v3 }
 0x73a   :  { %v1133_v22 = vsel %vm1132_vm5, %v1128_v4, inf  ;;  %v1143_v4 = vcvt.s32.f32 %v1141_v1  ;;  %v1174_v1 = vcvt.s32.f32 %v1172_v57 }
 0x73b   :  { %1145 = vmin.xlane.f32.xlu2 %v1144_v27  ;;  %1134 = vmin.xlane.f32.xlu1 %v1133_v22  ;;  %v3290_v22 = vld [vmem:[%s6030_s0 + $0xd8] sm:$0xff] }
 0x73c   :  { %vm551_vm8 = vcmp.eq.f32.partialorder %v3290_v22, %v3899_v18  ;;  %v3291_v18 = vld [vmem:[%s6030_s0 + $0xe0] sm:$0xff] }
 0x73d   :  { %v679_v33 = vsel %vm551_vm8, %v4029_v35, 32  ;;  %vm552_vm10 = vcmp.eq.f32.partialorder %v3291_v18, %v3729_v26 }
 0x73e   :  { %v680_v22 = vsel %vm552_vm10, %v4029_v35, 32 }
 0x73f   :  { %v1200_v57 = vsel %vm137_vm0, %v680_v22, 2147483647 }
 0x740   :  { %v1202_v40 = vshra.s32 %v1200_v57, 16 }
 0x743   :  { %1160 = vmin.xlane.f32.xlu1 %v1159_v51 }
 0x7a6   :  { %v4489_v5 = vpop.xlane.xlu2 %1119 }
 0x7ae   :  { %v4496_v58 = vpop.xlane.xlu2 %1145  ;;  %v4498_v46 = vpop.xlane.xlu1 %1134 }
 0x7af   :  { %6187 = vst [vmem:[#allocation105_spill] sm:$0xff] %v4496_v58  ;;  %vm1147_vm7 = vcmp.eq.f32.partialorder %v1144_v27, %v4496_v58  ;;  %v1185_v27 = vsel %vm137_vm0, %v679_v33, 2147483647 }
 0x7b0   :  { %6188 = vst [vmem:[#allocation106_spill] sm:$0xff] %v4498_v46  ;;  %v1148_v41 = vsel %vm1147_vm7, %v1143_v4, inf  ;;  %v1158_v46 = vcvt.s32.f32 %v1156_v13  ;;  %v1187_v4 = vshra.s32 %v1185_v27, 16  ;;  %v1186_v26 = vand.u32 65535, %v1185_v27 }
 0x7b1   :  { %1149 = vmin.xlane.f32.xlu0 %v1148_v41  ;;  %v1201_v27 = vand.u32 65535, %v1200_v57 }
 0x7b2   :  { %v1189_v41 = vcvt.s32.f32 %v1187_v4 }
 0x7b6   :  { %v4507_v14 = vpop.xlane.xlu1 %1160 }
 0x7b7   :  { %vm1162_vm9 = vcmp.eq.f32.partialorder %v1159_v51, %v4507_v14 }
 0x7b8   :  { %v1163_v24 = vsel %vm1162_vm9, %v1158_v46, inf  ;;  %v1173_v46 = vcvt.s32.f32 %v1171_v11 }
 0x7b9   :  { %1175 = vmin.xlane.f32.xlu0 %v1174_v1  ;;  %1164 = vmin.xlane.f32.xlu2 %v1163_v24  ;;  %v3292_v24 = vld [vmem:[%s6030_s0 + $0xe8] sm:$0xff] }
 0x7ba   :  { %vm553_vm12 = vcmp.eq.f32.partialorder %v3292_v24, %v3727_v23  ;;  %v3293_v23 = vld [vmem:[%s6030_s0 + $0xf0] sm:$0xff] }
 0x7bb   :  { %v681_v4 = vsel %vm553_vm12, %v4029_v35, 32  ;;  %vm554_vm14 = vcmp.eq.f32.partialorder %v3293_v23, %v3917_v56 }
 0x7bc   :  { %v1215_v11 = vsel %vm137_vm0, %v681_v4, 2147483647 }
 0x7bd   :  { %v1216_v56 = vand.u32 65535, %v1215_v11 }
 0x7c1   :  { %1190 = vmin.xlane.f32.xlu2 %v1189_v41 }
 0x824   :  { %v4511_v58 = vpop.xlane.xlu0 %1149 }
 0x82c   :  { %v4518_v51 = vpop.xlane.xlu2 %1164  ;;  %v4520_v13 = vpop.xlane.xlu0 %1175 }
 0x82d   :  { %6189 = vst [vmem:[#allocation107_spill] sm:$0xff] %v4518_v51  ;;  %vm1177_vm11 = vcmp.eq.f32.partialorder %v1174_v1, %v4520_v13  ;;  %v1188_v51 = vcvt.s32.f32 %v1186_v26  ;;  %v1204_v1 = vcvt.s32.f32 %v1202_v40 }
 0x82e   :  { %6190 = vst [vmem:[#allocation108_spill] sm:$0xff] %v4520_v13  ;;  %v1178_v33 = vsel %vm1177_vm11, %v1173_v46, inf  ;;  %v1217_v46 = vshra.s32 %v1215_v11, 16 }
 0x82f   :  { %1179 = vmin.xlane.f32.xlu1 %v1178_v33 }
 0x830   :  { %v1219_v33 = vcvt.s32.f32 %v1217_v46 }
 0x834   :  { %v4529_v18 = vpop.xlane.xlu2 %1190 }
 0x835   :  { %6191 = vst [vmem:[#allocation109_spill] sm:$0xff] %v4529_v18  ;;  %vm1192_vm13 = vcmp.eq.f32.partialorder %v1189_v41, %v4529_v18  ;;  %v682_v41 = vsel %vm554_vm14, %v4029_v35, 32 }
 0x836   :  { %v1193_v22 = vsel %vm1192_vm13, %v1188_v51, inf  ;;  %v1203_v51 = vcvt.s32.f32 %v1201_v27  ;;  %v1230_v40 = vsel %vm137_vm0, %v682_v41, 2147483647 }
 0x837   :  { %1194 = vmin.xlane.f32.xlu0 %v1193_v22  ;;  %1205 = vmin.xlane.f32.xlu1 %v1204_v1  ;;  %v3294_v22 = vld [vmem:[%s6030_s0 + $0xf8] sm:$0xff]  ;;  %v1232_v57 = vshra.s32 %v1230_v40, 16  ;;  %v1231_v11 = vand.u32 65535, %v1230_v40 }
 0x838   :  { %vm555_vm1 = vcmp.eq.f32.partialorder %v3294_v22, %v3747_v37  ;;  %v3295_v37 = vld [vmem:[%s6030_s0 + $0x100] sm:$0xff] }
 0x839   :  { %v683_v46 = vsel %vm555_vm1, %v4029_v35, 32  ;;  %v1234_v27 = vcvt.s32.f32 %v1232_v57  ;;  %vm556_vm3 = vcmp.eq.f32.partialorder %v3295_v37, %v3745_v36 }
 0x83a   :  { %v684_v22 = vsel %vm556_vm3, %v4029_v35, 32 }
 0x83b   :  { %v1260_v57 = vsel %vm137_vm0, %v684_v22, 2147483647 }
 0x83c   :  { %v1262_v40 = vshra.s32 %v1260_v57, 16 }
 0x83f   :  { %1220 = vmin.xlane.f32.xlu0 %v1219_v33 }
 0x8a2   :  { %v4533_v13 = vpop.xlane.xlu1 %1179 }
 0x8a3   :  { %6192 = vst [vmem:[#allocation110_spill] sm:$0xff] %v4533_v13 }
 0x8aa   :  { %v4540_v24 = vpop.xlane.xlu1 %1205  ;;  %v4542_v26 = vpop.xlane.xlu0 %1194 }
 0x8ab   :  { %6193 = vst [vmem:[#allocation111_spill] sm:$0xff] %v4540_v24  ;;  %vm1207_vm15 = vcmp.eq.f32.partialorder %v1204_v1, %v4540_v24  ;;  %v1245_v1 = vsel %vm137_vm0, %v683_v46, 2147483647 }
 0x8ac   :  { %6194 = vst [vmem:[#allocation112_spill] sm:$0xff] %v4542_v26  ;;  %v1208_v4 = vsel %vm1207_vm15, %v1203_v51, inf  ;;  %v1218_v26 = vcvt.s32.f32 %v1216_v56  ;;  %v1247_v51 = vshra.s32 %v1245_v1, 16  ;;  %v1246_v36 = vand.u32 65535, %v1245_v1 }
 0x8ad   :  { %1209 = vmin.xlane.f32.xlu2 %v1208_v4  ;;  %v1261_v1 = vand.u32 65535, %v1260_v57 }
 0x8ae   :  { %v1249_v4 = vcvt.s32.f32 %v1247_v51 }
 0x8b2   :  { %v4551_v23 = vpop.xlane.xlu0 %1220 }
 0x8b3   :  { %6195 = vst [vmem:[#allocation113_spill] sm:$0xff] %v4551_v23  ;;  %vm1222_vm2 = vcmp.eq.f32.partialorder %v1219_v33, %v4551_v23 }
 0x8b4   :  { %v1223_v41 = vsel %vm1222_vm2, %v1218_v26, inf  ;;  %v1233_v26 = vcvt.s32.f32 %v1231_v11  ;;  %v1264_v11 = vcvt.s32.f32 %v1262_v40 }
 0x8b5   :  { %1235 = vmin.xlane.f32.xlu2 %v1234_v27  ;;  %1224 = vmin.xlane.f32.xlu1 %v1223_v41  ;;  %v3296_v41 = vld [vmem:[%s6030_s0 + $0x108] sm:$0xff] }
 0x8b6   :  { %vm557_vm5 = vcmp.eq.f32.partialorder %v3296_v41, %v3935_v44  ;;  %v3297_v44 = vld [vmem:[%s6030_s0 + $0x110] sm:$0xff] }
 0x8b7   :  { %v685_v51 = vsel %vm557_vm5, %v4029_v35, 32  ;;  %vm558_vm7 = vcmp.eq.f32.partialorder %v3297_v44, %v3765_v52 }
 0x8b8   :  { %v686_v41 = vsel %vm558_vm7, %v4029_v35, 32 }
 0x8b9   :  { %v1290_v40 = vsel %vm137_vm0, %v686_v41, 2147483647 }
 0x8ba   :  { %v1292_v57 = vshra.s32 %v1290_v40, 16 }
 0x8bd   :  { %1250 = vmin.xlane.f32.xlu1 %v1249_v4 }
 0x920   :  { %v4555_v24 = vpop.xlane.xlu2 %1209 }
 0x921   :  { %6196 = vst [vmem:[#allocation114_spill] sm:$0xff] %v4555_v24 }
 0x928   :  { %v4562_v33 = vpop.xlane.xlu2 %1235  ;;  %v4564_v56 = vpop.xlane.xlu1 %1224 }
 0x929   :  { %6197 = vst [vmem:[#allocation115_spill] sm:$0xff] %v4562_v33  ;;  %vm1237_vm4 = vcmp.eq.f32.partialorder %v1234_v27, %v4562_v33  ;;  %v1275_v27 = vsel %vm137_vm0, %v685_v51, 2147483647 }
 0x92a   :  { %6198 = vst [vmem:[#allocation116_spill] sm:$0xff] %v4564_v56  ;;  %v1238_v46 = vsel %vm1237_vm4, %v1233_v26, inf  ;;  %v1248_v56 = vcvt.s32.f32 %v1246_v36  ;;  %v1277_v26 = vshra.s32 %v1275_v27, 16  ;;  %v1276_v52 = vand.u32 65535, %v1275_v27 }
 0x92b   :  { %1239 = vmin.xlane.f32.xlu0 %v1238_v46  ;;  %v1291_v27 = vand.u32 65535, %v1290_v40 }
 0x92c   :  { %v1279_v46 = vcvt.s32.f32 %v1277_v26 }
 0x930   :  { %v4573_v37 = vpop.xlane.xlu1 %1250 }
 0x931   :  { %6199 = vst [vmem:[#allocation117_spill] sm:$0xff] %v4573_v37  ;;  %vm1252_vm6 = vcmp.eq.f32.partialorder %v1249_v4, %v4573_v37 }
 0x932   :  { %v1253_v22 = vsel %vm1252_vm6, %v1248_v56, inf  ;;  %v1263_v56 = vcvt.s32.f32 %v1261_v1 }
 0x933   :  { %1265 = vmin.xlane.f32.xlu0 %v1264_v11  ;;  %1254 = vmin.xlane.f32.xlu2 %v1253_v22  ;;  %v3298_v22 = vld [vmem:[%s6030_s0 + $0x118] sm:$0xff] }
 0x934   :  { %vm559_vm9 = vcmp.eq.f32.partialorder %v3298_v22, %v3763_v49  ;;  %v3299_v49 = vld [vmem:[%s6030_s0 + $0x120] sm:$0xff] }
 0x935   :  { %v687_v26 = vsel %vm559_vm9, %v4029_v35, 32  ;;  %vm560_vm11 = vcmp.eq.f32.partialorder %v3299_v49, %v3953_v39 }
 0x936   :  { %v1305_v1 = vsel %vm137_vm0, %v687_v26, 2147483647 }
 0x937   :  { %v1306_v39 = vand.u32 65535, %v1305_v1 }
 0x93b   :  { %1280 = vmin.xlane.f32.xlu2 %v1279_v46 }
 0x99e   :  { %v4577_v33 = vpop.xlane.xlu0 %1239 }
 0x99f   :  { %6200 = vst [vmem:[#allocation118_spill] sm:$0xff] %v4577_v33  ;;  %v1308_v33 = vcvt.s32.f32 %v1306_v39 }
 0x9a6   :  { %v4584_v4 = vpop.xlane.xlu2 %1254  ;;  %v4586_v36 = vpop.xlane.xlu0 %1265 }
 0x9a7   :  { %6201 = vst [vmem:[#allocation119_spill] sm:$0xff] %v4584_v4  ;;  %vm1267_vm8 = vcmp.eq.f32.partialorder %v1264_v11, %v4586_v36  ;;  %v1278_v4 = vcvt.s32.f32 %v1276_v52  ;;  %v1294_v11 = vcvt.s32.f32 %v1292_v57 }
 0x9a8   :  { %6202 = vst [vmem:[#allocation120_spill] sm:$0xff] %v4586_v36  ;;  %v1268_v51 = vsel %vm1267_vm8, %v1263_v56, inf  ;;  %v1307_v56 = vshra.s32 %v1305_v1, 16 }
 0x9a9   :  { %1269 = vmin.xlane.f32.xlu1 %v1268_v51 }
 0x9aa   :  { %v1309_v51 = vcvt.s32.f32 %v1307_v56 }
 0x9ae   :  { %v4595_v44 = vpop.xlane.xlu2 %1280 }
 0x9af   :  { %6203 = vst [vmem:[#allocation121_spill] sm:$0xff] %v4595_v44  ;;  %vm1282_vm10 = vcmp.eq.f32.partialorder %v1279_v46, %v4595_v44  ;;  %v688_v46 = vsel %vm560_vm11, %v4029_v35, 32 }
 0x9b0   :  { %v1283_v41 = vsel %vm1282_vm10, %v1278_v4, inf  ;;  %v1293_v4 = vcvt.s32.f32 %v1291_v27  ;;  %v1320_v57 = vsel %vm137_vm0, %v688_v46, 2147483647 }
 0x9b1   :  { %1284 = vmin.xlane.f32.xlu0 %v1283_v41  ;;  %1295 = vmin.xlane.f32.xlu1 %v1294_v11  ;;  %v3300_v41 = vld [vmem:[%s6030_s0 + $0x128] sm:$0xff]  ;;  %v1322_v40 = vshra.s32 %v1320_v57, 16  ;;  %v1321_v1 = vand.u32 65535, %v1320_v57 }
 0x9b2   :  { %vm561_vm13 = vcmp.eq.f32.partialorder %v3300_v41, %v3783_v0  ;;  %v3301_v0 = vld [vmem:[%s6030_s0 + $0x130] sm:$0xff] }
 0x9b3   :  { %v689_v56 = vsel %vm561_vm13, %v4029_v35, 32  ;;  %v1324_v27 = vcvt.s32.f32 %v1322_v40  ;;  %vm562_vm15 = vcmp.eq.f32.partialorder %v3301_v0, %v3781_v63 }
 0x9b4   :  { %v690_v41 = vsel %vm562_vm15, %v4029_v35, 32 }
 0x9b5   :  { %v1350_v40 = vsel %vm137_vm0, %v690_v41, 2147483647 }
 0x9b6   :  { %v1352_v57 = vshra.s32 %v1350_v40, 16 }
 0x9b9   :  { %1310 = vmin.xlane.f32.xlu0 %v1309_v51 }
 0xa1c   :  { %v4599_v37 = vpop.xlane.xlu1 %1269 }
 0xa1d   :  { %6204 = vst [vmem:[#allocation122_spill] sm:$0xff] %v4599_v37 }
 0xa24   :  { %v4606_v22 = vpop.xlane.xlu1 %1295  ;;  %v4608_v52 = vpop.xlane.xlu0 %1284 }
 0xa25   :  { %6205 = vst [vmem:[#allocation123_spill] sm:$0xff] %v4606_v22  ;;  %vm1297_vm12 = vcmp.eq.f32.partialorder %v1294_v11, %v4606_v22  ;;  %v1335_v11 = vsel %vm137_vm0, %v689_v56, 2147483647 }
 0xa26   :  { %6206 = vst [vmem:[#allocation124_spill] sm:$0xff] %v4608_v52  ;;  %v1298_v26 = vsel %vm1297_vm12, %v1293_v4, inf  ;;  %v1337_v4 = vshra.s32 %v1335_v11, 16  ;;  %v1336_v63 = vand.u32 65535, %v1335_v11  ;;  %v1351_v11 = vand.u32 65535, %v1350_v40 }
 0xa27   :  { %1299 = vmin.xlane.f32.xlu2 %v1298_v26 }
 0xa28   :  { %v1339_v26 = vcvt.s32.f32 %v1337_v4 }
 0xa2c   :  { %v4617_v49 = vpop.xlane.xlu0 %1310 }
 0xa2d   :  { %6207 = vst [vmem:[#allocation125_spill] sm:$0xff] %v4617_v49  ;;  %vm1312_vm14 = vcmp.eq.f32.partialorder %v1309_v51, %v4617_v49 }
 0xa2e   :  { %v1313_v46 = vsel %vm1312_vm14, %v1308_v33, inf  ;;  %v1323_v33 = vcvt.s32.f32 %v1321_v1  ;;  %v1354_v1 = vcvt.s32.f32 %v1352_v57 }
 0xa2f   :  { %1325 = vmin.xlane.f32.xlu2 %v1324_v27  ;;  %1314 = vmin.xlane.f32.xlu1 %v1313_v46  ;;  %v3302_v46 = vld [vmem:[%s6030_s0 + $0x138] sm:$0xff] }
 0xa30   :  { %vm563_vm2 = vcmp.eq.f32.partialorder %v3302_v46, %v3971_v38  ;;  %v3303_v38 = vld [vmem:[%s6030_s0 + $0x140] sm:$0xff] }
 0xa31   :  { %v691_v4 = vsel %vm563_vm2, %v4029_v35, 32  ;;  %vm564_vm4 = vcmp.eq.f32.partialorder %v3303_v38, %v3801_v15 }
 0xa32   :  { %v692_v46 = vsel %vm564_vm4, %v4029_v35, 32 }
 0xa33   :  { %v1380_v57 = vsel %vm137_vm0, %v692_v46, 2147483647 }
 0xa34   :  { %v1382_v40 = vshra.s32 %v1380_v57, 16 }
 0xa37   :  { %1340 = vmin.xlane.f32.xlu1 %v1339_v26 }
 0xa9a   :  { %v4621_v37 = vpop.xlane.xlu2 %1299 }
 0xa9b   :  { %6208 = vst [vmem:[#allocation126_spill] sm:$0xff] %v4621_v37 }
 0xaa2   :  { %v4628_v51 = vpop.xlane.xlu2 %1325  ;;  %v4630_v39 = vpop.xlane.xlu1 %1314 }
 0xaa3   :  { %6209 = vst [vmem:[#allocation127_spill] sm:$0xff] %v4628_v51  ;;  %vm1327_vm1 = vcmp.eq.f32.partialorder %v1324_v27, %v4628_v51  ;;  %v1365_v27 = vsel %vm137_vm0, %v691_v4, 2147483647 }
 0xaa4   :  { %6210 = vst [vmem:[#allocation128_spill] sm:$0xff] %v4630_v39  ;;  %v1328_v56 = vsel %vm1327_vm1, %v1323_v33, inf  ;;  %v1338_v39 = vcvt.s32.f32 %v1336_v63  ;;  %v1367_v33 = vshra.s32 %v1365_v27, 16  ;;  %v1366_v15 = vand.u32 65535, %v1365_v27 }
 0xaa5   :  { %1329 = vmin.xlane.f32.xlu0 %v1328_v56  ;;  %v1381_v27 = vand.u32 65535, %v1380_v57 }
 0xaa6   :  { %v1369_v56 = vcvt.s32.f32 %v1367_v33 }
 0xaaa   :  { %v4639_v0 = vpop.xlane.xlu1 %1340 }
 0xaab   :  { %6211 = vst [vmem:[#allocation129_spill] sm:$0xff] %v4639_v0  ;;  %vm1342_vm3 = vcmp.eq.f32.partialorder %v1339_v26, %v4639_v0 }
 0xaac   :  { %v1343_v41 = vsel %vm1342_vm3, %v1338_v39, inf  ;;  %v1353_v39 = vcvt.s32.f32 %v1351_v11 }
 0xaad   :  { %1355 = vmin.xlane.f32.xlu0 %v1354_v1  ;;  %1344 = vmin.xlane.f32.xlu2 %v1343_v41  ;;  %v3304_v41 = vld [vmem:[%s6030_s0 + $0x148] sm:$0xff] }
 0xaae   :  { %vm565_vm6 = vcmp.eq.f32.partialorder %v3304_v41, %v3799_v12  ;;  %v3305_v12 = vld [vmem:[%s6030_s0 + $0x150] sm:$0xff] }
 0xaaf   :  { %v693_v33 = vsel %vm565_vm6, %v4029_v35, 32  ;;  %vm566_vm8 = vcmp.eq.f32.partialorder %v3305_v12, %v3989_v21 }
 0xab0   :  { %v1395_v11 = vsel %vm137_vm0, %v693_v33, 2147483647 }
 0xab1   :  { %v1396_v21 = vand.u32 65535, %v1395_v11 }
 0xab5   :  { %1370 = vmin.xlane.f32.xlu2 %v1369_v56 }
 0xb18   :  { %v4643_v51 = vpop.xlane.xlu0 %1329 }
 0xb19   :  { %6212 = vst [vmem:[#allocation130_spill] sm:$0xff] %v4643_v51 }
 0xb20   :  { %v4650_v26 = vpop.xlane.xlu2 %1344  ;;  %v4652_v63 = vpop.xlane.xlu0 %1355 }
 0xb21   :  { %6213 = vst [vmem:[#allocation131_spill] sm:$0xff] %v4650_v26  ;;  %vm1357_vm5 = vcmp.eq.f32.partialorder %v1354_v1, %v4652_v63  ;;  %v1368_v26 = vcvt.s32.f32 %v1366_v15  ;;  %v1384_v1 = vcvt.s32.f32 %v1382_v40 }
 0xb22   :  { %6214 = vst [vmem:[#allocation132_spill] sm:$0xff] %v4652_v63  ;;  %v1358_v4 = vsel %vm1357_vm5, %v1353_v39, inf  ;;  %v1397_v39 = vshra.s32 %v1395_v11, 16 }
 0xb23   :  { %1359 = vmin.xlane.f32.xlu1 %v1358_v4 }
 0xb24   :  { %v1399_v4 = vcvt.s32.f32 %v1397_v39 }
 0xb28   :  { %v4661_v38 = vpop.xlane.xlu2 %1370 }
 0xb29   :  { %6215 = vst [vmem:[#allocation133_spill] sm:$0xff] %v4661_v38  ;;  %vm1372_vm7 = vcmp.eq.f32.partialorder %v1369_v56, %v4661_v38  ;;  %v694_v56 = vsel %vm566_vm8, %v4029_v35, 32 }
 0xb2a   :  { %v1373_v46 = vsel %vm1372_vm7, %v1368_v26, inf  ;;  %v1383_v26 = vcvt.s32.f32 %v1381_v27  ;;  %v1410_v40 = vsel %vm137_vm0, %v694_v56, 2147483647 }
 0xb2b   :  { %1374 = vmin.xlane.f32.xlu0 %v1373_v46  ;;  %1385 = vmin.xlane.f32.xlu1 %v1384_v1  ;;  %v3306_v46 = vld [vmem:[%s6030_s0 + $0x158] sm:$0xff]  ;;  %v1412_v57 = vshra.s32 %v1410_v40, 16  ;;  %v1411_v11 = vand.u32 65535, %v1410_v40 }
 0xb2c   :  { %vm567_vm10 = vcmp.eq.f32.partialorder %v3306_v46, %v3819_v30  ;;  %v3307_v30 = vld [vmem:[%s6030_s0 + $0x160] sm:$0xff] }
 0xb2d   :  { %v695_v39 = vsel %vm567_vm10, %v4029_v35, 32  ;;  %v1414_v27 = vcvt.s32.f32 %v1412_v57  ;;  %vm568_vm12 = vcmp.eq.f32.partialorder %v3307_v30, %v3817_v29 }
 0xb2e   :  { %v696_v46 = vsel %vm568_vm12, %v4029_v35, 32 }
 0xb2f   :  { %v1440_v57 = vsel %vm137_vm0, %v696_v46, 2147483647 }
 0xb30   :  { %v1442_v40 = vshra.s32 %v1440_v57, 16 }
 0xb33   :  { %1400 = vmin.xlane.f32.xlu0 %v1399_v4 }
 0xb96   :  { %v4665_v63 = vpop.xlane.xlu1 %1359 }
 0xb97   :  { %6216 = vst [vmem:[#allocation134_spill] sm:$0xff] %v4665_v63  ;;  %v6240_v63 = vld [vmem:[#allocation10_spill] sm:$0xff] }
 0xb9e   :  { %v4672_v41 = vpop.xlane.xlu1 %1385  ;;  %v4674_v15 = vpop.xlane.xlu0 %1374 }
 0xb9f   :  { %6217 = vst [vmem:[#allocation135_spill] sm:$0xff] %v4672_v41  ;;  %vm1387_vm9 = vcmp.eq.f32.partialorder %v1384_v1, %v4672_v41  ;;  %v1425_v1 = vsel %vm137_vm0, %v695_v39, 2147483647 }
 0xba0   :  { %6218 = vst [vmem:[#allocation136_spill] sm:$0xff] %v4674_v15  ;;  %v1388_v33 = vsel %vm1387_vm9, %v1383_v26, inf  ;;  %v1398_v15 = vcvt.s32.f32 %v1396_v21  ;;  %v1427_v26 = vshra.s32 %v1425_v1, 16  ;;  %v1426_v29 = vand.u32 65535, %v1425_v1 }
 0xba1   :  { %1389 = vmin.xlane.f32.xlu2 %v1388_v33  ;;  %v1441_v1 = vand.u32 65535, %v1440_v57 }
 0xba2   :  { %v1429_v33 = vcvt.s32.f32 %v1427_v26 }
 0xba6   :  { %v4683_v12 = vpop.xlane.xlu0 %1400 }
 0xba7   :  { %6219 = vst [vmem:[#allocation137_spill] sm:$0xff] %v4683_v12  ;;  %vm1402_vm11 = vcmp.eq.f32.partialorder %v1399_v4, %v4683_v12 }
 0xba8   :  { %v1403_v56 = vsel %vm1402_vm11, %v1398_v15, inf  ;;  %v1413_v15 = vcvt.s32.f32 %v1411_v11  ;;  %v1444_v11 = vcvt.s32.f32 %v1442_v40 }
 0xba9   :  { %1415 = vmin.xlane.f32.xlu2 %v1414_v27  ;;  %1404 = vmin.xlane.f32.xlu1 %v1403_v56  ;;  %v3308_v56 = vld [vmem:[%s6030_s0 + $0x168] sm:$0xff] }
 0xbaa   :  { %vm569_vm14 = vcmp.eq.f32.partialorder %v3308_v56, %v4007_v19  ;;  %v3309_v19 = vld [vmem:[%s6030_s0 + $0x170] sm:$0xff] }
 0xbab   :  { %v697_v26 = vsel %vm569_vm14, %v4029_v35, 32  ;;  %vm570_vm1 = vcmp.eq.f32.partialorder %v3309_v19, %v3837_v53 }
 0xbac   :  { %v698_v56 = vsel %vm570_vm1, %v4029_v35, 32 }
 0xbad   :  { %v1470_v40 = vsel %vm137_vm0, %v698_v56, 2147483647 }
 0xbae   :  { %v1472_v57 = vshra.s32 %v1470_v40, 16 }
 0xbb1   :  { %1430 = vmin.xlane.f32.xlu1 %v1429_v33 }
 0xc14   :  { %v4687_v41 = vpop.xlane.xlu2 %1389 }
 0xc15   :  { %6220 = vst [vmem:[#allocation138_spill] sm:$0xff] %v4687_v41 }
 0xc1c   :  { %v4694_v4 = vpop.xlane.xlu2 %1415  ;;  %v4696_v21 = vpop.xlane.xlu1 %1404 }
 0xc1d   :  { %6221 = vst [vmem:[#allocation139_spill] sm:$0xff] %v4694_v4  ;;  %vm1417_vm13 = vcmp.eq.f32.partialorder %v1414_v27, %v4694_v4  ;;  %v1455_v27 = vsel %vm137_vm0, %v697_v26, 2147483647 }
 0xc1e   :  { %6222 = vst [vmem:[#allocation140_spill] sm:$0xff] %v4696_v21  ;;  %v1418_v39 = vsel %vm1417_vm13, %v1413_v15, inf  ;;  %v1428_v21 = vcvt.s32.f32 %v1426_v29  ;;  %v1457_v15 = vshra.s32 %v1455_v27, 16  ;;  %v1456_v53 = vand.u32 65535, %v1455_v27 }
 0xc1f   :  { %1419 = vmin.xlane.f32.xlu0 %v1418_v39  ;;  %v1471_v27 = vand.u32 65535, %v1470_v40 }
 0xc20   :  { %v1459_v39 = vcvt.s32.f32 %v1457_v15 }
 0xc24   :  { %v4705_v30 = vpop.xlane.xlu1 %1430 }
 0xc25   :  { %6223 = vst [vmem:[#allocation141_spill] sm:$0xff] %v4705_v30  ;;  %vm1432_vm15 = vcmp.eq.f32.partialorder %v1429_v33, %v4705_v30 }
 0xc26   :  { %v1433_v46 = vsel %vm1432_vm15, %v1428_v21, inf  ;;  %v1443_v21 = vcvt.s32.f32 %v1441_v1 }
 0xc27   :  { %1445 = vmin.xlane.f32.xlu0 %v1444_v11  ;;  %1434 = vmin.xlane.f32.xlu2 %v1433_v46  ;;  %v3310_v46 = vld [vmem:[%s6030_s0 + $0x178] sm:$0xff] }
 0xc28   :  { %vm571_vm3 = vcmp.eq.f32.partialorder %v3310_v46, %v3835_v47  ;;  %v3311_v47 = vld [vmem:[%s6030_s0 + $0x180] sm:$0xff] }
 0xc29   :  { %v699_v15 = vsel %vm571_vm3, %v4029_v35, 32  ;;  %vm572_vm5 = vcmp.eq.f32.partialorder %v3311_v47, %v4027_v61 }
 0xc2a   :  { %v1485_v1 = vsel %vm137_vm0, %v699_v15, 2147483647 }
 0xc2b   :  { %v1486_v61 = vand.u32 65535, %v1485_v1 }
 0xc2f   :  { %1460 = vmin.xlane.f32.xlu2 %v1459_v39 }
 0xc92   :  { %v4709_v4 = vpop.xlane.xlu0 %1419 }
 0xc93   :  { %6224 = vst [vmem:[#allocation142_spill] sm:$0xff] %v4709_v4  ;;  %v6238_v4 = vld [vmem:[#allocation7_spill] sm:$0xff] }
 0xc9a   :  { %v4716_v33 = vpop.xlane.xlu2 %1434  ;;  %v4718_v29 = vpop.xlane.xlu0 %1445 }
 0xc9b   :  { %6225 = vst [vmem:[#allocation143_spill] sm:$0xff] %v4716_v33  ;;  %vm1447_vm2 = vcmp.eq.f32.partialorder %v1444_v11, %v4718_v29  ;;  %v1458_v33 = vcvt.s32.f32 %v1456_v53  ;;  %v1474_v11 = vcvt.s32.f32 %v1472_v57 }
 0xc9c   :  { %6226 = vst [vmem:[#allocation144_spill] sm:$0xff] %v4718_v29  ;;  %v1448_v26 = vsel %vm1447_vm2, %v1443_v21, inf  ;;  %v1487_v21 = vshra.s32 %v1485_v1, 16  ;;  %v3313_v1 = vld [vmem:[%s6030_s0 + $0x190] sm:$0xff] }
 0xc9d   :  { %1449 = vmin.xlane.f32.xlu1 %v1448_v26 }
 0xc9e   :  { %v1489_v26 = vcvt.s32.f32 %v1487_v21  ;;  %v6231_v21 = vld [vmem:[#allocation6_spill] sm:$0xff] }
 0xca2   :  { %v4727_v19 = vpop.xlane.xlu2 %1460 }
 0xca3   :  { %6227 = vst [vmem:[#allocation145_spill] sm:$0xff] %v4727_v19  ;;  %vm1462_vm4 = vcmp.eq.f32.partialorder %v1459_v39, %v4727_v19  ;;  %v700_v39 = vsel %vm572_vm5, %v4029_v35, 32 }
 0xca4   :  { %v1463_v56 = vsel %vm1462_vm4, %v1458_v33, inf  ;;  %v1473_v33 = vcvt.s32.f32 %v1471_v27  ;;  %v1500_v57 = vsel %vm137_vm0, %v700_v39, 2147483647 }
 0xca5   :  { %1464 = vmin.xlane.f32.xlu0 %v1463_v56  ;;  %1475 = vmin.xlane.f32.xlu1 %v1474_v11  ;;  %v3312_v56 = vld [vmem:[%s6030_s0 + $0x188] sm:$0xff]  ;;  %v1502_v40 = vshra.s32 %v1500_v57, 16 }
 0xca6   :  { %vm573_vm7 = vcmp.eq.f32.partialorder %v3312_v56, %v6231_v21  ;;  %v6234_v56 = vld [vmem:[#allocation5_spill] sm:$0xff]  ;;  %v1501_v21 = vand.u32 65535, %v1500_v57 }
 0xca7   :  { %v701_v47 = vsel %vm573_vm7, %v4029_v35, 32  ;;  %v1504_v27 = vcvt.s32.f32 %v1502_v40  ;;  %vm574_vm9 = vcmp.eq.f32.partialorder %v3313_v1, %v6234_v56 }
 0xcad   :  { %1490 = vmin.xlane.f32.xlu0 %v1489_v26 }
 0xd10   :  { %v4731_v29 = vpop.xlane.xlu1 %1449 }
 0xd11   :  { %6228 = vst [vmem:[#allocation146_spill] sm:$0xff] %v4731_v29 }
 0xd18   :  { %v4738_v46 = vpop.xlane.xlu1 %1475  ;;  %v4740_v53 = vpop.xlane.xlu0 %1464 }
 0xd19   :  { %6229 = vst [vmem:[#allocation147_spill] sm:$0xff] %v4738_v46  ;;  %vm1477_vm6 = vcmp.eq.f32.partialorder %v1474_v11, %v4738_v46  ;;  %v1515_v11 = vsel %vm137_vm0, %v701_v47, 2147483647 }
 0xd1a   :  { %6230 = vst [vmem:[#allocation148_spill] sm:$0xff] %v4740_v53  ;;  %v1478_v15 = vsel %vm1477_vm6, %v1473_v33, inf  ;;  %v1488_v53 = vcvt.s32.f32 %v1486_v61  ;;  %v1517_v33 = vshra.s32 %v1515_v11, 16  ;;  %v702_v61 = vsel %vm574_vm9, %v4029_v35, 32 }
 0xd1b   :  { %1479 = vmin.xlane.f32.xlu2 %v1478_v15  ;;  %v1530_v47 = vsel %vm137_vm0, %v702_v61, 2147483647  ;;  %v1516_v57 = vand.u32 65535, %v1515_v11  ;;  %v6237_v11 = vld [vmem:[#allocation8_spill] sm:$0xff] }
 0xd1c   :  { %v1519_v15 = vcvt.s32.f32 %v1517_v33  ;;  %v3314_v33 = vld [vmem:[%s6030_s0 + $0x198] sm:$0xff]  ;;  %v1532_v1 = vshra.s32 %v1530_v47, 16 }
 0xd20   :  { %v4749_v29 = vpop.xlane.xlu0 %1490 }
 0xd21   :  { %6232 = vst [vmem:[#allocation6_spill] sm:$0xff] %v4749_v29  ;;  %vm1492_vm8 = vcmp.eq.f32.partialorder %v1489_v26, %v4749_v29 }
 0xd22   :  { %v1493_v39 = vsel %vm1492_vm8, %v1488_v53, inf  ;;  %v1503_v53 = vcvt.s32.f32 %v1501_v21  ;;  %v1534_v21 = vcvt.s32.f32 %v1532_v1 }
 0xd23   :  { %1505 = vmin.xlane.f32.xlu2 %v1504_v27  ;;  %1494 = vmin.xlane.f32.xlu1 %v1493_v39 }
 0xd2b   :  { %1520 = vmin.xlane.f32.xlu1 %v1519_v15 }
 0xd8e   :  { %v4753_v46 = vpop.xlane.xlu2 %1479 }
 0xd8f   :  { %6233 = vst [vmem:[#allocation149_spill] sm:$0xff] %v4753_v46  ;;  %v6236_v46 = vld [vmem:[#allocation27_spill] sm:$0xff] }
 0xd90   :  { %vm575_vm11 = vcmp.eq.f32.partialorder %v3314_v33, %v6236_v46  ;;  %v3315_v46 = vld [vmem:[%s6030_s0 + $0x1a0] sm:$0xff]  ;;  %v1531_v33 = vand.u32 65535, %v1530_v47 }
 0xd91   :  { %v703_v56 = vsel %vm575_vm11, %v4029_v35, 32  ;;  %vm576_vm13 = vcmp.eq.f32.partialorder %v3315_v46, %v6237_v11 }
 0xd96   :  { %v4760_v26 = vpop.xlane.xlu2 %1505  ;;  %v4762_v40 = vpop.xlane.xlu1 %1494 }
 0xd97   :  { %6235 = vst [vmem:[#allocation5_spill] sm:$0xff] %v4762_v40  ;;  %vm1507_vm10 = vcmp.eq.f32.partialorder %v1504_v27, %v4760_v26  ;;  %v1518_v40 = vcvt.s32.f32 %v1516_v57  ;;  %v1545_v27 = vsel %vm137_vm0, %v703_v56, 2147483647  ;;  %v704_v57 = vsel %vm576_vm13, %v4029_v35, 32 }
 0xd98   :  { %v1508_v39 = vsel %vm1507_vm10, %v1503_v53, inf  ;;  %v1547_v53 = vshra.s32 %v1545_v27, 16  ;;  %v1560_v56 = vsel %vm137_vm0, %v704_v57, 2147483647  ;;  %v1546_v47 = vand.u32 65535, %v1545_v27  ;;  %v6239_v27 = vld [vmem:[#allocation30_spill] sm:$0xff] }
 0xd99   :  { %1509 = vmin.xlane.f32.xlu0 %v1508_v39  ;;  %v1562_v46 = vshra.s32 %v1560_v56, 16 }
 0xd9a   :  { %v1549_v39 = vcvt.s32.f32 %v1547_v53  ;;  %v3316_v53 = vld [vmem:[%s6030_s0 + $0x1a8] sm:$0xff]  ;;  %v1548_v41 = vcvt.s32.f32 %v1546_v47 }
 0xd9b   :  { %vm577_vm15 = vcmp.eq.f32.partialorder %v3316_v53, %v6238_v4  ;;  %v3317_v4 = vld [vmem:[%s6030_s0 + $0x1b0] sm:$0xff]  ;;  %v1561_v53 = vand.u32 65535, %v1560_v56 }
 0xd9c   :  { %v705_v11 = vsel %vm577_vm15, %v4029_v35, 32  ;;  %vm578_vm2 = vcmp.eq.f32.partialorder %v3317_v4, %v6239_v27 }
 0xd9e   :  { %v4771_v29 = vpop.xlane.xlu1 %1520 }
 0xd9f   :  { %vm1522_vm12 = vcmp.eq.f32.partialorder %v1519_v15, %v4771_v29 }
 0xda0   :  { %v1523_v61 = vsel %vm1522_vm12, %v1518_v40, inf  ;;  %v1533_v40 = vcvt.s32.f32 %v1531_v33  ;;  %v1575_v33 = vsel %vm137_vm0, %v705_v11, 2147483647 }
 0xda1   :  { %1535 = vmin.xlane.f32.xlu0 %v1534_v21  ;;  %1524 = vmin.xlane.f32.xlu2 %v1523_v61  ;;  %v1576_v56 = vand.u32 65535, %v1575_v33 }
 0xda3   :  { %v1578_v51 = vcvt.s32.f32 %v1576_v56 }
 0xda9   :  { %1550 = vmin.xlane.f32.xlu2 %v1549_v39 }
 0xe0c   :  { %v4775_v19 = vpop.xlane.xlu0 %1509 }
 0xe14   :  { %v4782_v15 = vpop.xlane.xlu2 %1524  ;;  %v4784_v1 = vpop.xlane.xlu0 %1535 }
 0xe15   :  { %vm1537_vm14 = vcmp.eq.f32.partialorder %v1534_v21, %v4784_v1  ;;  %v1564_v21 = vcvt.s32.f32 %v1562_v46 }
 0xe16   :  { %v1538_v61 = vsel %vm1537_vm14, %v1533_v40, inf  ;;  %v1577_v40 = vshra.s32 %v1575_v33, 16  ;;  %v6241_v33 = vld [vmem:[#allocation9_spill] sm:$0xff] }
 0xe17   :  { %1539 = vmin.xlane.f32.xlu1 %v1538_v61 }
 0xe18   :  { %v1579_v61 = vcvt.s32.f32 %v1577_v40  ;;  %v3318_v40 = vld [vmem:[%s6030_s0 + $0x1b8] sm:$0xff] }
 0xe19   :  { %vm579_vm4 = vcmp.eq.f32.partialorder %v3318_v40, %v6240_v63  ;;  %v3319_v63 = vld [vmem:[%s6030_s0 + $0x1c0] sm:$0xff] }
 0xe1a   :  { %v707_v27 = vsel %vm579_vm4, %v4029_v35, 32  ;;  %vm580_vm6 = vcmp.eq.f32.partialorder %v3319_v63, %v6241_v33 }
 0xe1b   :  { %v708_v56 = vsel %vm580_vm6, %v4029_v35, 32  ;;  %vm2963_vm6 = vcmask 195712  }
 0xe1c   :  { %v4793_v30 = vpop.xlane.xlu2 %1550 }
 0xe1d   :  { %vm1552_vm1 = vcmp.eq.f32.partialorder %v1549_v39, %v4793_v30  ;;  %v706_v39 = vsel %vm578_vm2, %v4029_v35, 32 }
 0xe1e   :  { %v1553_v57 = vsel %vm1552_vm1, %v1548_v41, inf  ;;  %v1563_v41 = vcvt.s32.f32 %v1561_v53  ;;  %v1590_v11 = vsel %vm137_vm0, %v706_v39, 2147483647 }
 0xe1f   :  { %1554 = vmin.xlane.f32.xlu0 %v1553_v57  ;;  %1565 = vmin.xlane.f32.xlu1 %v1564_v21  ;;  %v1592_v4 = vshra.s32 %v1590_v11, 16  ;;  %v1591_v40 = vand.u32 65535, %v1590_v11 }
 0xe21   :  { %v1594_v53 = vcvt.s32.f32 %v1592_v4  ;;  %v1593_v37 = vcvt.s32.f32 %v1591_v40 }
 0xe27   :  { %1580 = vmin.xlane.f32.xlu0 %v1579_v61 }
 0xe8a   :  { %v4797_v12 = vpop.xlane.xlu1 %1539 }
 0xe92   :  { %v4804_v47 = vpop.xlane.xlu1 %1565  ;;  %v4806_v46 = vpop.xlane.xlu0 %1554 }
 0xe93   :  { %vm1567_vm3 = vcmp.eq.f32.partialorder %v1564_v21, %v4804_v47  ;;  %v1605_v21 = vsel %vm137_vm0, %v707_v27, 2147483647 }
 0xe94   :  { %v1568_v57 = vsel %vm1567_vm3, %v1563_v41, inf  ;;  %v1607_v41 = vshra.s32 %v1605_v21, 16  ;;  %v1606_v49 = vand.u32 65535, %v1605_v21 }
 0xe95   :  { %1569 = vmin.xlane.f32.xlu2 %v1568_v57 }
 0xe96   :  { %v1609_v57 = vcvt.s32.f32 %v1607_v41  ;;  %v6242_v41 = vld [vmem:[#allocation33_spill] sm:$0xff]  ;;  %v1608_v33 = vcvt.s32.f32 %v1606_v49  ;;  %v1527_v49 = vcvt.f32.s32 %v4771_v29 }
 0xe98   :  { %v1528_v36 = vshll.u32 %v1527_v49, 16 }
 0xe9a   :  { %v4815_v38 = vpop.xlane.xlu0 %1580 }
 0xe9b   :  { %vm1582_vm5 = vcmp.eq.f32.partialorder %v1579_v61, %v4815_v38 }
 0xe9c   :  { %v1583_v39 = vsel %vm1582_vm5, %v1578_v51, inf  ;;  %v1620_v51 = vsel %vm137_vm0, %v708_v56, 2147483647  ;;  %vm2959_vm5 = vcmask 130112  }
 0xe9d   :  { %1595 = vmin.xlane.f32.xlu2 %v1594_v53  ;;  %1584 = vmin.xlane.f32.xlu1 %v1583_v39  ;;  %v3320_v39 = vld [vmem:[%s6030_s0 + $0x1c8] sm:$0xff]  ;;  %v1622_v52 = vshra.s32 %v1620_v51, 16  ;;  %v1621_v49 = vand.u32 65535, %v1620_v51  ;;  %v6244_v51 = vld [vmem:[#allocation11_spill] sm:$0xff] }
 0xe9e   :  { %vm581_vm8 = vcmp.eq.f32.partialorder %v3320_v39, %v6242_v41  ;;  %v1557_v39 = vcvt.f32.s32 %v4793_v30  ;;  %v1526_v41 = vcvt.f32.s32 %v4782_v15  ;;  %v3321_v30 = vld [vmem:[%s6030_s0 + $0x1d0] sm:$0xff] }
 0xe9f   :  { %v709_v11 = vsel %vm581_vm8, %v4029_v35, 32  ;;  %vm2971_vm8 = vcmask 326912  }
 0xea0   :  { %v1558_v22 = vshll.u32 %v1557_v39, 16  ;;  %v1529_v15 = vadd.s32 %v1528_v36, %v1526_v41  ;;  %v4866_v41 = vadd.s32 4294967288, %v4029_v35 }
 0xea2   :  { %vm2798_vm12 = vcmp.lt.s32.totalorder %v1529_v15, 31 }
 0xea5   :  { %1610 = vmin.xlane.f32.xlu1 %v1609_v57 }
 0xf08   :  { %v1570_v0 = vpop.xlane.xlu2 %1569 }
 0xf10   :  { %v1596_v4 = vpop.xlane.xlu2 %1595  ;;  %v1585_v61 = vpop.xlane.xlu1 %1584 }
 0xf11   :  { %vm1597_vm7 = vcmp.eq.f32.partialorder %v1594_v53, %v1596_v4  ;;  %v4833_v53 = vcvt.s32.f32 %v1622_v52  ;;  %v1511_v52 = vcvt.f32.s32 %v4775_v19  ;;  %v1571_v19 = vcvt.f32.s32 %v1570_v0 }
 0xf12   :  { %v1598_v27 = vsel %vm1597_vm7, %v1593_v37, inf  ;;  %v4836_v37 = vsel %vm137_vm0, %v709_v11, 2147483647  ;;  %vm2967_vm7 = vcmask 261312  }
 0xf13   :  { %1599 = vmin.xlane.f32.xlu0 %v1598_v27  ;;  %v1637_v56 = vshra.s32 %v4836_v37, 16  ;;  %v1512_v27 = vcvt.f32.s32 %v4760_v26  ;;  %v1587_v26 = vcvt.f32.s32 %v4815_v38 }
 0xf15   :  { %v4840_v21 = vcvt.s32.f32 %v1637_v56  ;;  %v1513_v11 = vshll.u32 %v1512_v27, 16  ;;  %v1556_v56 = vcvt.f32.s32 %v4806_v46  ;;  %v1602_v27 = vcvt.f32.s32 %v1596_v4 }
 0xf16   :  { %v1588_v46 = vshll.u32 %v1587_v26, 16 }
 0xf17   :  { %v1514_v23 = vadd.s32 %v1513_v11, %v1511_v52  ;;  %v1559_v24 = vadd.s32 %v1558_v22, %v1556_v56  ;;  %v1603_v0 = vshll.u32 %v1602_v27, 16  ;;  %v3322_v22 = vld [vmem:[%s6030_s0 + $0x1d8] sm:$0xff]  ;;  %v4877_v27 = vadd.s32 4294967264, %v4029_v35 }
 0xf18   :  { %v4830_v63 = vpop.xlane.xlu1 %1610  ;;  %vm583_vm15 = vcmp.eq.f32.partialorder %v3322_v22, %v6244_v51 }
 0xf19   :  { %vm1612_vm9 = vcmp.eq.f32.partialorder %v1609_v57, %v4830_v63  ;;  %v1542_v57 = vcvt.f32.s32 %v4784_v1  ;;  %v6243_v1 = vld [vmem:[#allocation12_spill] sm:$0xff]  ;;  %vm2796_vm11 = vcmp.lt.s32.totalorder %v1514_v23, 31  ;;  %vm2802_vm14 = vcmp.lt.s32.totalorder %v1559_v24, 31 }
 0xf1a   :  { %v1613_v40 = vsel %vm1612_vm9, %v1608_v33, inf  ;;  %v1541_v33 = vcvt.f32.s32 %v4797_v12  ;;  %vm582_vm10 = vcmp.eq.f32.partialorder %v3321_v30, %v6243_v1  ;;  %v1586_v12 = vcvt.f32.s32 %v1585_v61 }
 0xf1b   :  { %1625 = vmin.xlane.f32.xlu0 %v4833_v53  ;;  %1614 = vmin.xlane.f32.xlu2 %v1613_v40  ;;  %v1572_v40 = vcvt.f32.s32 %v4804_v47  ;;  %v1543_v29 = vshll.u32 %v1542_v57, 16  ;;  %v710_v38 = vsel %vm582_vm10, %v4029_v35, 32  ;;  %v1623_v61 = vcvt.s32.f32 %v1621_v49 }
 0xf1c   :  { %v1589_v39 = vadd.s32 %v1588_v46, %v1586_v12  ;;  %v4859_v36 = vsel %vm137_vm0, %v710_v38, 2147483647  ;;  %v2803_v26 = vsel %vm2802_vm14, %v1559_v24, 31  ;;  %v4873_v30 = vadd.s32 4294967272, %v4029_v35 }
 0xf1d   :  { %v1544_v44 = vadd.s32 %v1543_v29, %v1541_v33  ;;  %v1573_v47 = vshll.u32 %v1572_v40, 16  ;;  %v2797_v33 = vsel %vm2796_vm11, %v1514_v23, 31  ;;  %v2799_v40 = vsel %vm2798_vm12, %v1529_v15, 31 }
 0xf1e   :  { %vm2806_vm2 = vcmp.lt.s32.totalorder %v1589_v39, 31  ;;  %v1617_v29 = vcvt.f32.s32 %v4830_v63  ;;  %v1652_v1 = vshra.s32 %v4859_v36, 16  ;;  %v4880_v23 = vadd.s32 4294967256, %v4029_v35 }
 0xf1f   :  { %v1574_v52 = vadd.s32 %v1573_v47, %v1571_v19  ;;  %vm2800_vm13 = vcmp.lt.s32.totalorder %v1544_v44, 31  ;;  %v4870_v19 = vadd.s32 4294967280, %v4029_v35  ;;  %v3080_v24 = vperm.slane %v2799_v40, %v4866_v41 }
 0xf20   :  { %v2801_v56 = vsel %vm2800_vm13, %v1544_v44, 31  ;;  %v3079_v63 = vperm.slane %v2797_v33, %v4029_v35  ;;  %v3084_v12 = vperm.slane %v2803_v26, %v4873_v30  ;;  %v2807_v47 = vsel %vm2806_vm2, %v1589_v39, 31 }
 0xf21   :  { %vm2804_vm1 = vcmp.lt.s32.totalorder %v1574_v52, 31  ;;  %v3082_v15 = vperm.slane %v2801_v56, %v4870_v19  ;;  %v1618_v38 = vshll.u32 %v1617_v29, 16  ;;  %v3088_v56 = vperm.slane %v2807_v47, %v4880_v23 }
 0xf22   :  { %v2805_v44 = vsel %vm2804_vm1, %v1574_v52, 31  ;;  %v3081_v33 = vsel %vm2959_vm5, %v3080_v24, %v3079_v63  ;;  %v4897_v29 = vadd.s32 4294967240, %v4029_v35  ;;  %vm6085_vm10 = vcmask 392512  }
 0xf23   :  { %1640 = vmin.xlane.f32.xlu2 %v4840_v21  ;;  %v3086_v52 = vperm.slane %v2805_v44, %v4877_v27  ;;  %v711_v63 = vsel %vm583_vm15, %v4029_v35, 32  ;;  %vm6084_vm11 = vcmask 458112   ;;  %vm6083_vm12 = vcmask 523712  }
 0xf24   :  { %vm6082_vm1 = vcmask 589312  }
 0xf86   :  { %v1600_v57 = vpop.xlane.xlu0 %1599 }
 0xf87   :  { %v1601_v11 = vcvt.f32.s32 %v1600_v57 }
 0xf89   :  { %v1604_v4 = vadd.s32 %v1603_v0, %v1601_v11  ;;  %v4888_v11 = vadd.s32 4294967248, %v4029_v35 }
 0xf8b   :  { %vm2808_vm3 = vcmp.lt.s32.totalorder %v1604_v4, 31 }
 0xf8c   :  { %v2809_v57 = vsel %vm2808_vm3, %v1604_v4, 31  ;;  %v3083_v4 = vsel %vm2963_vm6, %v3082_v15, %v3081_v33 }
 0xf8d   :  { %v3090_v26 = vperm.slane %v2809_v57, %v4888_v11  ;;  %v1654_v57 = vcvt.s32.f32 %v1652_v1  ;;  %v4916_v1 = vadd.s32 4294967232, %v4029_v35 }
 0xf8e   :  { %v1615_v46 = vpop.xlane.xlu2 %1614  ;;  %v1626_v49 = vpop.xlane.xlu0 %1625 }
 0xf8f   :  { %v1616_v0 = vcvt.f32.s32 %v1615_v46  ;;  %vm1627_vm4 = vcmp.eq.f32.partialorder %v4833_v53, %v1626_v49  ;;  %v1636_v53 = vand.u32 65535, %v4836_v37 }
 0xf90   :  { %v1628_v40 = vsel %vm1627_vm4, %v1623_v61, inf  ;;  %v3085_v61 = vsel %vm2967_vm7, %v3084_v12, %v3083_v4 }
 0xf91   :  { %v1619_v39 = vadd.s32 %v1618_v38, %v1616_v0  ;;  %1629 = vmin.xlane.f32.xlu1 %v1628_v40  ;;  %v3087_v24 = vsel %vm2971_vm8, %v3086_v52, %v3085_v61  ;;  %v1638_v38 = vcvt.s32.f32 %v1636_v53  ;;  %v1665_v0 = vsel %vm137_vm0, %v711_v63, 2147483647  ;;  %v6245_v53 = vld [vmem:[#allocation36_spill] sm:$0xff] }
 0xf92   :  { %v3089_v15 = vsel %vm6085_vm10, %v3088_v56, %v3087_v24  ;;  %v1667_v22 = vshra.s32 %v1665_v0, 16  ;;  %v1632_v40 = vcvt.f32.s32 %v1626_v49 }
 0xf93   :  { %vm2810_vm9 = vcmp.lt.s32.totalorder %v1619_v39, 31  ;;  %v3091_v47 = vsel %vm6084_vm11, %v3090_v26, %v3089_v15  ;;  %v3323_v26 = vld [vmem:[%s6030_s0 + $0x1e0] sm:$0xff] }
 0xf94   :  { %v2811_v44 = vsel %vm2810_vm9, %v1619_v39, 31  ;;  %v1669_v51 = vcvt.s32.f32 %v1667_v22  ;;  %v1633_v56 = vshll.u32 %v1632_v40, 16  ;;  %vm584_vm14 = vcmp.eq.f32.partialorder %v3323_v26, %v6245_v53 }
 0xf95   :  { %v3092_v37 = vperm.slane %v2811_v44, %v4897_v29  ;;  %v712_v49 = vsel %vm584_vm14, %v4029_v35, 32  ;;  %vm6081_vm9 = vcmask 654912  }
 0xf96   :  { %v1641_v46 = vpop.xlane.xlu2 %1640 }
 0xf97   :  { %v3093_v12 = vsel %vm6083_vm12, %v3092_v37, %v3091_v47  ;;  %vm1642_vm13 = vcmp.eq.f32.partialorder %v4840_v21, %v1641_v46  ;;  %v1651_v21 = vand.u32 65535, %v4859_v36  ;;  %v1647_v61 = vcvt.f32.s32 %v1641_v46  ;;  %v3324_v46 = vld [vmem:[%s6030_s0 + $0x1e8] sm:$0xff] }
 0xf98   :  { %v1643_v52 = vsel %vm1642_vm13, %v1638_v38, inf  ;;  %v1680_v36 = vsel %vm137_vm0, %v712_v49, 2147483647 }
 0xf99   :  { %1644 = vmin.xlane.f32.xlu0 %v1643_v52  ;;  %1655 = vmin.xlane.f32.xlu1 %v1654_v57  ;;  %v1653_v37 = vcvt.s32.f32 %v1651_v21  ;;  %v1648_v47 = vshll.u32 %v1647_v61, 16 }
 0xfa1   :  { %1670 = vmin.xlane.f32.xlu0 %v1669_v51 }
0x1004   :  { %v1630_v33 = vpop.xlane.xlu1 %1629 }
0x1005   :  { %v1631_v39 = vcvt.f32.s32 %v1630_v33  ;;  %v6246_v33 = vld [vmem:[#allocation14_spill] sm:$0xff] }
0x1006   :  { %vm585_vm3 = vcmp.eq.f32.partialorder %v3324_v46, %v6246_v33  ;;  %v3325_v46 = vld [vmem:[%s6030_s0 + $0x1f0] sm:$0xff]  ;;  %v4938_v33 = vadd.s32 4294967216, %v4029_v35 }
0x1007   :  { %v1634_v4 = vadd.s32 %v1633_v56, %v1631_v39  ;;  %v1666_v56 = vand.u32 65535, %v1665_v0  ;;  %v4927_v39 = vadd.s32 4294967224, %v4029_v35 }
0x1009   :  { %vm2812_vm15 = vcmp.lt.s32.totalorder %v1634_v4, 31  ;;  %v1668_v21 = vcvt.s32.f32 %v1666_v56 }
0x100a   :  { %v2813_v24 = vsel %vm2812_vm15, %v1634_v4, 31  ;;  %v1682_v4 = vshra.s32 %v1680_v36, 16 }
0x100b   :  { %v3094_v44 = vperm.slane %v2813_v24, %v4916_v1 }
0x100c   :  { %v1656_v63 = vpop.xlane.xlu1 %1655  ;;  %v1645_v15 = vpop.xlane.xlu0 %1644  ;;  %v1684_v24 = vcvt.s32.f32 %v1682_v4 }
0x100d   :  { %v3095_v38 = vsel %vm6082_vm1, %v3094_v44, %v3093_v12  ;;  %vm1657_vm2 = vcmp.eq.f32.partialorder %v1654_v57, %v1656_v63  ;;  %v1646_v52 = vcvt.f32.s32 %v1645_v15  ;;  %v713_v57 = vsel %vm585_vm3, %v4029_v35, 32 }
0x100e   :  { %v1658_v22 = vsel %vm1657_vm2, %v1653_v37, inf  ;;  %v1695_v49 = vsel %vm137_vm0, %v713_v57, 2147483647  ;;  %v1662_v37 = vcvt.f32.s32 %v1656_v63  ;;  %vm6080_vm2 = vcmask 720512  }
0x100f   :  { %v1649_v40 = vadd.s32 %v1648_v47, %v1646_v52  ;;  %1659 = vmin.xlane.f32.xlu2 %v1658_v22  ;;  %v1697_v44 = vshra.s32 %v1695_v49, 16 }
0x1010   :  { %v1663_v52 = vshll.u32 %v1662_v37, 16 }
0x1011   :  { %vm2814_vm4 = vcmp.lt.s32.totalorder %v1649_v40, 31  ;;  %v1699_v15 = vcvt.s32.f32 %v1697_v44 }
0x1012   :  { %v2815_v12 = vsel %vm2814_vm4, %v1649_v40, 31 }
0x1013   :  { %v3096_v26 = vperm.slane %v2815_v12, %v4927_v39 }
0x1014   :  { %v1671_v53 = vpop.xlane.xlu0 %1670 }
0x1015   :  { %v3097_v61 = vsel %vm6081_vm9, %v3096_v26, %v3095_v38  ;;  %vm1672_vm13 = vcmp.eq.f32.partialorder %v1669_v51, %v1671_v53  ;;  %v6247_v38 = vld [vmem:[#allocation13_spill] sm:$0xff]  ;;  %v1681_v51 = vand.u32 65535, %v1680_v36  ;;  %v1677_v56 = vcvt.f32.s32 %v1671_v53  ;;  %v3326_v53 = vld [vmem:[%s6030_s0 + $0x1f8] sm:$0xff] }
0x1016   :  { %v1673_v0 = vsel %vm1672_vm13, %v1668_v21, inf  ;;  %vm586_vm14 = vcmp.eq.f32.partialorder %v3325_v46, %v6247_v38  ;;  %v4949_v46 = vadd.s32 4294967208, %v4029_v35 }
0x1017   :  { %1685 = vmin.xlane.f32.xlu2 %v1684_v24  ;;  %1674 = vmin.xlane.f32.xlu1 %v1673_v0  ;;  %v714_v12 = vsel %vm586_vm14, %v4029_v35, 32  ;;  %v1683_v21 = vcvt.s32.f32 %v1681_v51  ;;  %v1678_v0 = vshll.u32 %v1677_v56, 16  ;;  %vm6079_vm14 = vcmask 786112  }
0x1018   :  { %v1710_v36 = vsel %vm137_vm0, %v714_v12, 2147483647 }
0x1019   :  { %v1712_v38 = vshra.s32 %v1710_v36, 16 }
0x101f   :  { %1700 = vmin.xlane.f32.xlu1 %v1699_v15 }
0x1082   :  { %v1660_v47 = vpop.xlane.xlu2 %1659 }
0x1083   :  { %v1661_v22 = vcvt.f32.s32 %v1660_v47 }
0x1085   :  { %v1664_v40 = vadd.s32 %v1663_v52, %v1661_v22  ;;  %v6248_v22 = vld [vmem:[#allocation39_spill] sm:$0xff] }
0x1086   :  { %vm587_vm4 = vcmp.eq.f32.partialorder %v3326_v53, %v6248_v22 }
0x1087   :  { %vm2816_vm15 = vcmp.lt.s32.totalorder %v1664_v40, 31 }
0x1088   :  { %v2817_v4 = vsel %vm2816_vm15, %v1664_v40, 31  ;;  %v1696_v40 = vand.u32 65535, %v1695_v49 }
0x1089   :  { %v3098_v63 = vperm.slane %v2817_v4, %v4938_v33 }
0x108a   :  { %v1686_v57 = vpop.xlane.xlu2 %1685  ;;  %v1675_v26 = vpop.xlane.xlu1 %1674  ;;  %v1698_v4 = vcvt.s32.f32 %v1696_v40  ;;  %v3327_v40 = vld [vmem:[%s6030_s0 + $0x200] sm:$0xff] }
0x108b   :  { %v3099_v44 = vsel %vm6080_vm2, %v3098_v63, %v3097_v61  ;;  %vm1687_vm3 = vcmp.eq.f32.partialorder %v1684_v24, %v1686_v57  ;;  %v1676_v37 = vcvt.f32.s32 %v1675_v26  ;;  %v715_v24 = vsel %vm587_vm4, %v4029_v35, 32 }
0x108c   :  { %v1688_v47 = vsel %vm1687_vm3, %v1683_v21, inf  ;;  %v1714_v63 = vcvt.s32.f32 %v1712_v38  ;;  %v1725_v26 = vsel %vm137_vm0, %v715_v24, 2147483647  ;;  %v4960_v38 = vadd.s32 4294967200, %v4029_v35 }
0x108d   :  { %v1679_v52 = vadd.s32 %v1678_v0, %v1676_v37  ;;  %1689 = vmin.xlane.f32.xlu0 %v1688_v47  ;;  %v1727_v21 = vshra.s32 %v1725_v26, 16  ;;  %v1692_v37 = vcvt.f32.s32 %v1686_v57 }
0x108f   :  { %vm2818_vm13 = vcmp.lt.s32.totalorder %v1679_v52, 31  ;;  %v1729_v0 = vcvt.s32.f32 %v1727_v21 }
0x1090   :  { %v2819_v61 = vsel %vm2818_vm13, %v1679_v52, 31  ;;  %v1693_v52 = vshll.u32 %v1692_v37, 16  ;;  %vm6064_vm13 = vcmask 851712  }
0x1091   :  { %v3100_v51 = vperm.slane %v2819_v61, %v4949_v46 }
0x1092   :  { %v1701_v56 = vpop.xlane.xlu1 %1700 }
0x1093   :  { %v3101_v12 = vsel %vm6079_vm14, %v3100_v51, %v3099_v44  ;;  %vm1702_vm15 = vcmp.eq.f32.partialorder %v1699_v15, %v1701_v56  ;;  %v6249_v44 = vld [vmem:[#allocation16_spill] sm:$0xff]  ;;  %v1711_v15 = vand.u32 65535, %v1710_v36  ;;  %v1707_v61 = vcvt.f32.s32 %v1701_v56  ;;  %v3328_v56 = vld [vmem:[%s6030_s0 + $0x208] sm:$0xff] }
0x1094   :  { %v1703_v49 = vsel %vm1702_vm15, %v1698_v4, inf  ;;  %vm588_vm3 = vcmp.eq.f32.partialorder %v3327_v40, %v6249_v44  ;;  %v1726_v44 = vand.u32 65535, %v1725_v26 }
0x1095   :  { %1715 = vmin.xlane.f32.xlu0 %v1714_v63  ;;  %1704 = vmin.xlane.f32.xlu2 %v1703_v49  ;;  %v716_v51 = vsel %vm588_vm3, %v4029_v35, 32  ;;  %v1713_v21 = vcvt.s32.f32 %v1711_v15  ;;  %v1708_v37 = vshll.u32 %v1707_v61, 16 }
0x1096   :  { %v1740_v36 = vsel %vm137_vm0, %v716_v51, 2147483647 }
0x1097   :  { %v1742_v15 = vshra.s32 %v1740_v36, 16 }
0x109d   :  { %1730 = vmin.xlane.f32.xlu2 %v1729_v0 }
0x1100   :  { %v1690_v47 = vpop.xlane.xlu0 %1689 }
0x1101   :  { %v1691_v53 = vcvt.f32.s32 %v1690_v47 }
0x1103   :  { %v1694_v22 = vadd.s32 %v1693_v52, %v1691_v53 }
0x1105   :  { %vm2820_vm4 = vcmp.lt.s32.totalorder %v1694_v22, 31 }
0x1106   :  { %v2821_v24 = vsel %vm2820_vm4, %v1694_v22, 31  ;;  %v6250_v22 = vld [vmem:[#allocation15_spill] sm:$0xff] }
0x1107   :  { %v3102_v57 = vperm.slane %v2821_v24, %v4960_v38  ;;  %vm589_vm3 = vcmp.eq.f32.partialorder %v3328_v56, %v6250_v22  ;;  %v4971_v24 = vadd.s32 4294967192, %v4029_v35 }
0x1108   :  { %v1705_v4 = vpop.xlane.xlu2 %1704  ;;  %v1716_v49 = vpop.xlane.xlu0 %1715 }
0x1109   :  { %v3103_v47 = vsel %vm6064_vm13, %v3102_v57, %v3101_v12  ;;  %v1706_v52 = vcvt.f32.s32 %v1705_v4  ;;  %vm1717_vm15 = vcmp.eq.f32.partialorder %v1714_v63, %v1716_v49  ;;  %6251 = vst [vmem:[#allocation27_spill] sm:$0xff] %v4971_v24  ;;  %v717_v63 = vsel %vm589_vm3, %v4029_v35, 32 }
0x110a   :  { %v1718_v53 = vsel %vm1717_vm15, %v1713_v21, inf  ;;  %vm6065_vm15 = vcmask 917312   ;;  %v1728_v57 = vcvt.s32.f32 %v1726_v44  ;;  %v1744_v21 = vcvt.s32.f32 %v1742_v15  ;;  %v3329_v44 = vld [vmem:[%s6030_s0 + $0x210] sm:$0xff] }
0x110b   :  { %v1709_v40 = vadd.s32 %v1708_v37, %v1706_v52  ;;  %1719 = vmin.xlane.f32.xlu1 %v1718_v53  ;;  %v1755_v37 = vsel %vm137_vm0, %v717_v63, 2147483647  ;;  %v4982_v15 = vadd.s32 4294967184, %v4029_v35 }
0x110c   :  { %v1757_v52 = vshra.s32 %v1755_v37, 16 }
0x110d   :  { %vm2822_vm4 = vcmp.lt.s32.totalorder %v1709_v40, 31  ;;  %6253 = vst [vmem:[#allocation8_spill] sm:$0xff] %v4982_v15 }
0x110e   :  { %v2823_v12 = vsel %vm2822_vm4, %v1709_v40, 31  ;;  %v1759_v53 = vcvt.s32.f32 %v1757_v52  ;;  %v1722_v40 = vcvt.f32.s32 %v1716_v49  ;;  %vm6068_vm4 = vcmask 982912  }
0x110f   :  { %v3104_v61 = vperm.slane %v2823_v12, %v4971_v24 }
0x1110   :  { %v1731_v51 = vpop.xlane.xlu2 %1730  ;;  %v1723_v22 = vshll.u32 %v1722_v40, 16 }
0x1111   :  { %v3105_v4 = vsel %vm6065_vm15, %v3104_v61, %v3103_v47  ;;  %vm1732_vm13 = vcmp.eq.f32.partialorder %v1729_v0, %v1731_v51  ;;  %v6252_v47 = vld [vmem:[#allocation42_spill] sm:$0xff]  ;;  %v1741_v0 = vand.u32 65535, %v1740_v36  ;;  %v1737_v63 = vcvt.f32.s32 %v1731_v51  ;;  %v3330_v51 = vld [vmem:[%s6030_s0 + $0x218] sm:$0xff] }
0x1112   :  { %v1733_v26 = vsel %vm1732_vm13, %v1728_v57, inf  ;;  %vm590_vm3 = vcmp.eq.f32.partialorder %v3329_v44, %v6252_v47 }
0x1113   :  { %1734 = vmin.xlane.f32.xlu0 %v1733_v26  ;;  %1745 = vmin.xlane.f32.xlu1 %v1744_v21  ;;  %v718_v57 = vsel %vm590_vm3, %v4029_v35, 32  ;;  %v1743_v52 = vcvt.s32.f32 %v1741_v0  ;;  %v1738_v40 = vshll.u32 %v1737_v63, 16 }
0x1114   :  { %v1770_v36 = vsel %vm137_vm0, %v718_v57, 2147483647 }
0x1115   :  { %v1772_v0 = vshra.s32 %v1770_v36, 16 }
0x111b   :  { %1760 = vmin.xlane.f32.xlu0 %v1759_v53 }
0x117e   :  { %v1720_v56 = vpop.xlane.xlu1 %1719 }
0x117f   :  { %v1721_v13 = vcvt.f32.s32 %v1720_v56 }
0x1181   :  { %v1724_v12 = vadd.s32 %v1723_v22, %v1721_v13 }
0x1183   :  { %vm2824_vm13 = vcmp.lt.s32.totalorder %v1724_v12, 31 }
0x1184   :  { %v2825_v61 = vsel %vm2824_vm13, %v1724_v12, 31  ;;  %v6254_v12 = vld [vmem:[#allocation18_spill] sm:$0xff] }
0x1185   :  { %v3106_v49 = vperm.slane %v2825_v61, %v4982_v15  ;;  %vm591_vm3 = vcmp.eq.f32.partialorder %v3330_v51, %v6254_v12  ;;  %v1756_v61 = vand.u32 65535, %v1755_v37  ;;  %v4993_v15 = vadd.s32 4294967176, %v4029_v35 }
0x1186   :  { %v1746_v26 = vpop.xlane.xlu1 %1745  ;;  %v1735_v13 = vpop.xlane.xlu0 %1734 }
0x1187   :  { %v3107_v56 = vsel %vm6068_vm4, %v3106_v49, %v3105_v4  ;;  %vm1747_vm15 = vcmp.eq.f32.partialorder %v1744_v21, %v1746_v26  ;;  %v1736_v22 = vcvt.f32.s32 %v1735_v13  ;;  %6255 = vst [vmem:[#allocation7_spill] sm:$0xff] %v4993_v15  ;;  %v719_v21 = vsel %vm591_vm3, %v4029_v35, 32 }
0x1188   :  { %v1748_v44 = vsel %vm1747_vm15, %v1743_v52, inf  ;;  %vm6071_vm15 = vcmask 1048512   ;;  %v1758_v49 = vcvt.s32.f32 %v1756_v61  ;;  %v1774_v52 = vcvt.s32.f32 %v1772_v0  ;;  %v3331_v61 = vld [vmem:[%s6030_s0 + $0x220] sm:$0xff] }
0x1189   :  { %v1739_v47 = vadd.s32 %v1738_v40, %v1736_v22  ;;  %1749 = vmin.xlane.f32.xlu2 %v1748_v44  ;;  %v1785_v37 = vsel %vm137_vm0, %v719_v21, 2147483647 }
0x118a   :  { %v1787_v22 = vshra.s32 %v1785_v37, 16 }
0x118b   :  { %vm2826_vm13 = vcmp.lt.s32.totalorder %v1739_v47, 31 }
0x118c   :  { %v2827_v4 = vsel %vm2826_vm13, %v1739_v47, 31  ;;  %v1789_v44 = vcvt.s32.f32 %v1787_v22  ;;  %v1752_v47 = vcvt.f32.s32 %v1746_v26 }
0x118d   :  { %v3108_v63 = vperm.slane %v2827_v4, %v4993_v15 }
0x118e   :  { %v1761_v57 = vpop.xlane.xlu0 %1760  ;;  %v1753_v4 = vshll.u32 %v1752_v47, 16 }
0x118f   :  { %v4998_v13 = vsel %vm6071_vm15, %v3108_v63, %v3107_v56  ;;  %vm1762_vm4 = vcmp.eq.f32.partialorder %v1759_v53, %v1761_v57  ;;  %v6257_v56 = vld [vmem:[#allocation17_spill] sm:$0xff]  ;;  %v1771_v53 = vand.u32 65535, %v1770_v36  ;;  %v1767_v0 = vcvt.f32.s32 %v1761_v57 }
0x1190   :  { %6256 = vst [vmem:[#allocation30_spill] sm:$0xff] %v4998_v13  ;;  %v1763_v40 = vsel %vm1762_vm4, %v1758_v49, inf  ;;  %vm592_vm3 = vcmp.eq.f32.partialorder %v3331_v61, %v6257_v56  ;;  %v3332_v36 = vld [vmem:[%s6030_s0 + $0x228] sm:$0xff] }
0x1191   :  { %1775 = vmin.xlane.f32.xlu2 %v1774_v52  ;;  %1764 = vmin.xlane.f32.xlu1 %v1763_v40  ;;  %v720_v21 = vsel %vm592_vm3, %v4029_v35, 32  ;;  %v1773_v13 = vcvt.s32.f32 %v1771_v53  ;;  %v1768_v22 = vshll.u32 %v1767_v0, 16  ;;  %v6258_v57 = vld [vmem:[#allocation45_spill] sm:$0xff] }
0x1192   :  { %v1800_v47 = vsel %vm137_vm0, %v720_v21, 2147483647  ;;  %vm593_vm15 = vcmp.eq.f32.partialorder %v3332_v36, %v6258_v57 }
0x1193   :  { %v1802_v61 = vshra.s32 %v1800_v47, 16  ;;  %v721_v53 = vsel %vm593_vm15, %v4029_v35, 32 }
0x1199   :  { %1790 = vmin.xlane.f32.xlu1 %v1789_v44 }
0x11fc   :  { %v1750_v51 = vpop.xlane.xlu2 %1749 }
0x11fd   :  { %v1751_v12 = vcvt.f32.s32 %v1750_v51 }
0x11ff   :  { %v1754_v63 = vadd.s32 %v1753_v4, %v1751_v12  ;;  %v1786_v4 = vand.u32 65535, %v1785_v37 }
0x1201   :  { %vm2828_vm4 = vcmp.lt.s32.totalorder %v1754_v63, 31  ;;  %v1788_v21 = vcvt.s32.f32 %v1786_v4  ;;  %v3333_v4 = vld [vmem:[%s6030_s0 + $0x230] sm:$0xff] }
0x1202   :  { %v2829_v12 = vsel %vm2828_vm4, %v1754_v63, 31 }
0x1204   :  { %v1776_v49 = vpop.xlane.xlu2 %1775  ;;  %v1765_v40 = vpop.xlane.xlu1 %1764 }
0x1205   :  { %vm1777_vm13 = vcmp.eq.f32.partialorder %v1774_v52, %v1776_v49  ;;  %v1766_v26 = vcvt.f32.s32 %v1765_v40  ;;  %v3110_v52 = vperm.slane %v2829_v12, %v4029_v35 }
0x1206   :  { %v1778_v51 = vsel %vm1777_vm13, %v1773_v13, inf }
0x1207   :  { %v1769_v15 = vadd.s32 %v1768_v22, %v1766_v26  ;;  %1779 = vmin.xlane.f32.xlu0 %v1778_v51  ;;  %v1804_v22 = vcvt.s32.f32 %v1802_v61  ;;  %v1815_v26 = vsel %vm137_vm0, %v721_v53, 2147483647 }
0x1208   :  { %v1817_v37 = vshra.s32 %v1815_v26, 16 }
0x1209   :  { %vm2830_vm3 = vcmp.lt.s32.totalorder %v1769_v15, 31 }
0x120a   :  { %v2831_v56 = vsel %vm2830_vm3, %v1769_v15, 31  ;;  %v1819_v63 = vcvt.s32.f32 %v1817_v37  ;;  %v1782_v15 = vcvt.f32.s32 %v1776_v49 }
0x120b   :  { %v3111_v0 = vperm.slane %v2831_v56, %v4866_v41  ;;  %v6259_v56 = vld [vmem:[#allocation20_spill] sm:$0xff] }
0x120c   :  { %v1791_v13 = vpop.xlane.xlu1 %1790  ;;  %v1783_v57 = vshll.u32 %v1782_v15, 16  ;;  %vm594_vm15 = vcmp.eq.f32.partialorder %v3333_v4, %v6259_v56 }
0x120d   :  { %v3112_v40 = vsel %vm2959_vm5, %v3111_v0, %v3110_v52  ;;  %vm1792_vm13 = vcmp.eq.f32.partialorder %v1789_v44, %v1791_v13  ;;  %v1801_v44 = vand.u32 65535, %v1800_v47  ;;  %v1797_v61 = vcvt.f32.s32 %v1791_v13  ;;  %v6260_v47 = vld [vmem:[#allocation19_spill] sm:$0xff] }
0x120e   :  { %v1793_v51 = vsel %vm1792_vm13, %v1788_v21, inf  ;;  %v722_v52 = vsel %vm594_vm15, %v4029_v35, 32  ;;  %v1816_v13 = vand.u32 65535, %v1815_v26 }
0x120f   :  { %1805 = vmin.xlane.f32.xlu0 %v1804_v22  ;;  %1794 = vmin.xlane.f32.xlu2 %v1793_v51  ;;  %v1803_v51 = vcvt.s32.f32 %v1801_v44  ;;  %v1798_v37 = vshll.u32 %v1797_v61, 16 }
0x1217   :  { %1820 = vmin.xlane.f32.xlu2 %v1819_v63 }
0x127a   :  { %v1780_v36 = vpop.xlane.xlu0 %1779 }
0x127b   :  { %v1781_v12 = vcvt.f32.s32 %v1780_v36 }
0x127d   :  { %v1784_v18 = vadd.s32 %v1783_v57, %v1781_v12  ;;  %v1830_v57 = vsel %vm137_vm0, %v722_v52, 2147483647 }
0x127e   :  { %v1832_v56 = vshra.s32 %v1830_v57, 16 }
0x127f   :  { %vm2832_vm4 = vcmp.lt.s32.totalorder %v1784_v18, 31 }
0x1280   :  { %v2833_v53 = vsel %vm2832_vm4, %v1784_v18, 31  ;;  %v3334_v18 = vld [vmem:[%s6030_s0 + $0x238] sm:$0xff] }
0x1281   :  { %v3113_v0 = vperm.slane %v2833_v53, %v4870_v19  ;;  %vm595_vm13 = vcmp.eq.f32.partialorder %v3334_v18, %v6260_v47  ;;  %v1818_v53 = vcvt.s32.f32 %v1816_v13  ;;  %v3335_v13 = vld [vmem:[%s6030_s0 + $0x240] sm:$0xff] }
0x1282   :  { %v1795_v21 = vpop.xlane.xlu2 %1794  ;;  %v1806_v49 = vpop.xlane.xlu0 %1805  ;;  %v723_v61 = vsel %vm595_vm13, %v4029_v35, 32 }
0x1283   :  { %v3114_v15 = vsel %vm2963_vm6, %v3113_v0, %v3112_v40  ;;  %v1796_v36 = vcvt.f32.s32 %v1795_v21  ;;  %vm1807_vm3 = vcmp.eq.f32.partialorder %v1804_v22, %v1806_v49  ;;  %v1834_v0 = vcvt.s32.f32 %v1832_v56 }
0x1284   :  { %v1808_v12 = vsel %vm1807_vm3, %v1803_v51, inf  ;;  %v1845_v21 = vsel %vm137_vm0, %v723_v61, 2147483647 }
0x1285   :  { %v1799_v4 = vadd.s32 %v1798_v37, %v1796_v36  ;;  %1809 = vmin.xlane.f32.xlu1 %v1808_v12  ;;  %v1847_v37 = vshra.s32 %v1845_v21, 16  ;;  %v1812_v36 = vcvt.f32.s32 %v1806_v49 }
0x1287   :  { %vm2834_vm15 = vcmp.lt.s32.totalorder %v1799_v4, 31  ;;  %v1849_v26 = vcvt.s32.f32 %v1847_v37 }
0x1288   :  { %v2835_v44 = vsel %vm2834_vm15, %v1799_v4, 31  ;;  %v1813_v4 = vshll.u32 %v1812_v36, 16 }
0x1289   :  { %v3115_v40 = vperm.slane %v2835_v44, %v4873_v30 }
0x128a   :  { %v1821_v22 = vpop.xlane.xlu2 %1820 }
0x128b   :  { %v3116_v52 = vsel %vm2967_vm7, %v3115_v40, %v3114_v15  ;;  %vm1822_vm4 = vcmp.eq.f32.partialorder %v1819_v63, %v1821_v22  ;;  %v6261_v15 = vld [vmem:[#allocation48_spill] sm:$0xff]  ;;  %v1831_v63 = vand.u32 65535, %v1830_v57  ;;  %v1827_v56 = vcvt.f32.s32 %v1821_v22  ;;  %v3336_v57 = vld [vmem:[%s6030_s0 + $0x248] sm:$0xff]  ;;  %v6262_v22 = vld [vmem:[#allocation22_spill] sm:$0xff] }
0x128c   :  { %v1823_v51 = vsel %vm1822_vm4, %v1818_v53, inf  ;;  %vm596_vm3 = vcmp.eq.f32.partialorder %v3335_v13, %v6261_v15  ;;  %vm597_vm4 = vcmp.eq.f32.partialorder %v3336_v57, %v6262_v22 }
0x128d   :  { %1824 = vmin.xlane.f32.xlu0 %v1823_v51  ;;  %1835 = vmin.xlane.f32.xlu1 %v1834_v0  ;;  %v724_v61 = vsel %vm596_vm3, %v4029_v35, 32  ;;  %v1833_v51 = vcvt.s32.f32 %v1831_v63  ;;  %v1828_v37 = vshll.u32 %v1827_v56, 16  ;;  %v725_v56 = vsel %vm597_vm4, %v4029_v35, 32 }
0x1295   :  { %1850 = vmin.xlane.f32.xlu0 %v1849_v26 }
0x12f8   :  { %v1810_v12 = vpop.xlane.xlu1 %1809 }
0x12f9   :  { %v1811_v18 = vcvt.f32.s32 %v1810_v12 }
0x12fb   :  { %v1814_v47 = vadd.s32 %v1813_v4, %v1811_v18  ;;  %v1860_v4 = vsel %vm137_vm0, %v724_v61, 2147483647 }
0x12fc   :  { %v1862_v15 = vshra.s32 %v1860_v4, 16 }
0x12fd   :  { %vm2836_vm13 = vcmp.lt.s32.totalorder %v1814_v47, 31 }
0x12fe   :  { %v2837_v44 = vsel %vm2836_vm13, %v1814_v47, 31  ;;  %v1846_v47 = vand.u32 65535, %v1845_v21 }
0x12ff   :  { %v3117_v40 = vperm.slane %v2837_v44, %v4877_v27 }
0x1300   :  { %v1836_v53 = vpop.xlane.xlu1 %1835  ;;  %v1825_v49 = vpop.xlane.xlu0 %1824  ;;  %v1848_v44 = vcvt.s32.f32 %v1846_v47  ;;  %v3337_v47 = vld [vmem:[%s6030_s0 + $0x250] sm:$0xff] }
0x1301   :  { %v3118_v36 = vsel %vm2971_vm8, %v3117_v40, %v3116_v52  ;;  %vm1837_vm15 = vcmp.eq.f32.partialorder %v1834_v0, %v1836_v53  ;;  %v1826_v12 = vcvt.f32.s32 %v1825_v49  ;;  %v1864_v40 = vcvt.s32.f32 %v1862_v15 }
0x1302   :  { %v1838_v18 = vsel %vm1837_vm15, %v1833_v51, inf  ;;  %v1875_v49 = vsel %vm137_vm0, %v725_v56, 2147483647 }
0x1303   :  { %v1829_v13 = vadd.s32 %v1828_v37, %v1826_v12  ;;  %1839 = vmin.xlane.f32.xlu2 %v1838_v18  ;;  %v1877_v37 = vshra.s32 %v1875_v49, 16  ;;  %v1842_v12 = vcvt.f32.s32 %v1836_v53 }
0x1305   :  { %vm2838_vm3 = vcmp.lt.s32.totalorder %v1829_v13, 31  ;;  %v1879_v21 = vcvt.s32.f32 %v1877_v37 }
0x1306   :  { %v2839_v63 = vsel %vm2838_vm3, %v1829_v13, 31  ;;  %v1843_v13 = vshll.u32 %v1842_v12, 16 }
0x1307   :  { %v3119_v52 = vperm.slane %v2839_v63, %v4880_v23 }
0x1308   :  { %v1851_v0 = vpop.xlane.xlu0 %1850 }
0x1309   :  { %v3120_v61 = vsel %vm6085_vm10, %v3119_v52, %v3118_v36  ;;  %vm1852_vm13 = vcmp.eq.f32.partialorder %v1849_v26, %v1851_v0  ;;  %v6263_v36 = vld [vmem:[#allocation21_spill] sm:$0xff]  ;;  %v1861_v26 = vand.u32 65535, %v1860_v4  ;;  %v1857_v15 = vcvt.f32.s32 %v1851_v0  ;;  %v3338_v4 = vld [vmem:[%s6030_s0 + $0x258] sm:$0xff] }
0x130a   :  { %v1853_v51 = vsel %vm1852_vm13, %v1848_v44, inf  ;;  %vm598_vm15 = vcmp.eq.f32.partialorder %v3337_v47, %v6263_v36  ;;  %v6264_v0 = vld [vmem:[#allocation51_spill] sm:$0xff] }
0x130b   :  { %1865 = vmin.xlane.f32.xlu2 %v1864_v40  ;;  %1854 = vmin.xlane.f32.xlu1 %v1853_v51  ;;  %v726_v56 = vsel %vm598_vm15, %v4029_v35, 32  ;;  %v1863_v51 = vcvt.s32.f32 %v1861_v26  ;;  %v1858_v37 = vshll.u32 %v1857_v15, 16  ;;  %vm599_vm13 = vcmp.eq.f32.partialorder %v3338_v4, %v6264_v0 }
0x130c   :  { %v727_v15 = vsel %vm599_vm13, %v4029_v35, 32 }
0x1313   :  { %1880 = vmin.xlane.f32.xlu1 %v1879_v21 }
0x1376   :  { %v1840_v18 = vpop.xlane.xlu2 %1839 }
0x1377   :  { %v1841_v57 = vcvt.f32.s32 %v1840_v18 }
0x1379   :  { %v1844_v22 = vadd.s32 %v1843_v13, %v1841_v57  ;;  %v1890_v13 = vsel %vm137_vm0, %v726_v56, 2147483647 }
0x137a   :  { %v1892_v36 = vshra.s32 %v1890_v13, 16 }
0x137b   :  { %vm2840_vm4 = vcmp.lt.s32.totalorder %v1844_v22, 31 }
0x137c   :  { %v2841_v63 = vsel %vm2840_vm4, %v1844_v22, 31  ;;  %v1876_v22 = vand.u32 65535, %v1875_v49 }
0x137d   :  { %v3121_v52 = vperm.slane %v2841_v63, %v4888_v11 }
0x137e   :  { %v1866_v44 = vpop.xlane.xlu2 %1865  ;;  %v1855_v53 = vpop.xlane.xlu1 %1854  ;;  %v1878_v63 = vcvt.s32.f32 %v1876_v22  ;;  %v3339_v22 = vld [vmem:[%s6030_s0 + $0x260] sm:$0xff] }
0x137f   :  { %v3122_v12 = vsel %vm6084_vm11, %v3121_v52, %v3120_v61  ;;  %vm1867_vm3 = vcmp.eq.f32.partialorder %v1864_v40, %v1866_v44  ;;  %v1856_v18 = vcvt.f32.s32 %v1855_v53  ;;  %v1894_v52 = vcvt.s32.f32 %v1892_v36 }
0x1380   :  { %v1868_v57 = vsel %vm1867_vm3, %v1863_v51, inf  ;;  %v1905_v53 = vsel %vm137_vm0, %v727_v15, 2147483647 }
0x1381   :  { %v1859_v47 = vadd.s32 %v1858_v37, %v1856_v18  ;;  %1869 = vmin.xlane.f32.xlu0 %v1868_v57  ;;  %v1907_v37 = vshra.s32 %v1905_v53, 16  ;;  %v1872_v18 = vcvt.f32.s32 %v1866_v44 }
0x1383   :  { %vm2842_vm15 = vcmp.lt.s32.totalorder %v1859_v47, 31  ;;  %v1909_v49 = vcvt.s32.f32 %v1907_v37 }
0x1384   :  { %v2843_v26 = vsel %vm2842_vm15, %v1859_v47, 31  ;;  %v1873_v47 = vshll.u32 %v1872_v18, 16 }
0x1385   :  { %v3123_v61 = vperm.slane %v2843_v26, %v4897_v29 }
0x1386   :  { %v1881_v40 = vpop.xlane.xlu1 %1880 }
0x1387   :  { %v3124_v56 = vsel %vm6083_vm12, %v3123_v61, %v3122_v12  ;;  %vm1882_vm4 = vcmp.eq.f32.partialorder %v1879_v21, %v1881_v40  ;;  %v6265_v12 = vld [vmem:[#allocation24_spill] sm:$0xff]  ;;  %v1891_v21 = vand.u32 65535, %v1890_v13  ;;  %v1887_v36 = vcvt.f32.s32 %v1881_v40  ;;  %v3340_v13 = vld [vmem:[%s6030_s0 + $0x268] sm:$0xff]  ;;  %v6266_v40 = vld [vmem:[#allocation23_spill] sm:$0xff] }
0x1388   :  { %v1883_v51 = vsel %vm1882_vm4, %v1878_v63, inf  ;;  %vm600_vm3 = vcmp.eq.f32.partialorder %v3339_v22, %v6265_v12  ;;  %vm601_vm4 = vcmp.eq.f32.partialorder %v3340_v13, %v6266_v40 }
0x1389   :  { %1895 = vmin.xlane.f32.xlu0 %v1894_v52  ;;  %1884 = vmin.xlane.f32.xlu2 %v1883_v51  ;;  %v728_v15 = vsel %vm600_vm3, %v4029_v35, 32  ;;  %v1893_v51 = vcvt.s32.f32 %v1891_v21  ;;  %v1888_v37 = vshll.u32 %v1887_v36, 16  ;;  %v729_v36 = vsel %vm601_vm4, %v4029_v35, 32 }
0x1391   :  { %1910 = vmin.xlane.f32.xlu2 %v1909_v49 }
0x13f4   :  { %v1870_v57 = vpop.xlane.xlu0 %1869 }
0x13f5   :  { %v1871_v4 = vcvt.f32.s32 %v1870_v57 }
0x13f7   :  { %v1874_v0 = vadd.s32 %v1873_v47, %v1871_v4  ;;  %v1920_v47 = vsel %vm137_vm0, %v728_v15, 2147483647 }
0x13f8   :  { %v1922_v12 = vshra.s32 %v1920_v47, 16 }
0x13f9   :  { %vm2844_vm13 = vcmp.lt.s32.totalorder %v1874_v0, 31 }
0x13fa   :  { %v2845_v26 = vsel %vm2844_vm13, %v1874_v0, 31  ;;  %v1906_v0 = vand.u32 65535, %v1905_v53 }
0x13fb   :  { %v3125_v61 = vperm.slane %v2845_v26, %v4916_v1 }
0x13fc   :  { %v1885_v63 = vpop.xlane.xlu2 %1884  ;;  %v1896_v44 = vpop.xlane.xlu0 %1895  ;;  %v1908_v26 = vcvt.s32.f32 %v1906_v0  ;;  %v3341_v0 = vld [vmem:[%s6030_s0 + $0x270] sm:$0xff] }
0x13fd   :  { %v3126_v18 = vsel %vm6082_vm1, %v3125_v61, %v3124_v56  ;;  %v1886_v57 = vcvt.f32.s32 %v1885_v63  ;;  %vm1897_vm15 = vcmp.eq.f32.partialorder %v1894_v52, %v1896_v44  ;;  %v1924_v61 = vcvt.s32.f32 %v1922_v12 }
0x13fe   :  { %v1898_v4 = vsel %vm1897_vm15, %v1893_v51, inf  ;;  %v1935_v63 = vsel %vm137_vm0, %v729_v36, 2147483647 }
0x13ff   :  { %v1889_v22 = vadd.s32 %v1888_v37, %v1886_v57  ;;  %1899 = vmin.xlane.f32.xlu1 %v1898_v4  ;;  %v1937_v37 = vshra.s32 %v1935_v63, 16  ;;  %v1902_v57 = vcvt.f32.s32 %v1896_v44 }
0x1401   :  { %vm2846_vm3 = vcmp.lt.s32.totalorder %v1889_v22, 31  ;;  %v1939_v53 = vcvt.s32.f32 %v1937_v37 }
0x1402   :  { %v2847_v21 = vsel %vm2846_vm3, %v1889_v22, 31  ;;  %v1903_v22 = vshll.u32 %v1902_v57, 16 }
0x1403   :  { %v3127_v56 = vperm.slane %v2847_v21, %v4927_v39 }
0x1404   :  { %v1911_v52 = vpop.xlane.xlu2 %1910 }
0x1405   :  { %v3128_v15 = vsel %vm6081_vm9, %v3127_v56, %v3126_v18  ;;  %vm1912_vm13 = vcmp.eq.f32.partialorder %v1909_v49, %v1911_v52  ;;  %v6267_v18 = vld [vmem:[#allocation54_spill] sm:$0xff]  ;;  %v1921_v49 = vand.u32 65535, %v1920_v47  ;;  %v1917_v12 = vcvt.f32.s32 %v1911_v52  ;;  %v3342_v47 = vld [vmem:[%s6030_s0 + $0x278] sm:$0xff] }
0x1406   :  { %v1913_v51 = vsel %vm1912_vm13, %v1908_v26, inf  ;;  %vm602_vm15 = vcmp.eq.f32.partialorder %v3341_v0, %v6267_v18  ;;  %v6268_v52 = vld [vmem:[#allocation26_spill] sm:$0xff] }
0x1407   :  { %1914 = vmin.xlane.f32.xlu0 %v1913_v51  ;;  %1925 = vmin.xlane.f32.xlu1 %v1924_v61  ;;  %v730_v36 = vsel %vm602_vm15, %v4029_v35, 32  ;;  %v1923_v51 = vcvt.s32.f32 %v1921_v49  ;;  %v1918_v37 = vshll.u32 %v1917_v12, 16  ;;  %vm603_vm13 = vcmp.eq.f32.partialorder %v3342_v47, %v6268_v52 }
0x1408   :  { %v731_v12 = vsel %vm603_vm13, %v4029_v35, 32 }
0x140f   :  { %1940 = vmin.xlane.f32.xlu0 %v1939_v53 }
0x1472   :  { %v1900_v4 = vpop.xlane.xlu1 %1899 }
0x1473   :  { %v1901_v13 = vcvt.f32.s32 %v1900_v4 }
0x1475   :  { %v1904_v40 = vadd.s32 %v1903_v22, %v1901_v13  ;;  %v1950_v22 = vsel %vm137_vm0, %v730_v36, 2147483647 }
0x1476   :  { %v1952_v18 = vshra.s32 %v1950_v22, 16 }
0x1477   :  { %vm2848_vm4 = vcmp.lt.s32.totalorder %v1904_v40, 31 }
0x1478   :  { %v2849_v21 = vsel %vm2848_vm4, %v1904_v40, 31  ;;  %v1936_v40 = vand.u32 65535, %v1935_v63 }
0x1479   :  { %v3129_v56 = vperm.slane %v2849_v21, %v4938_v33 }
0x147a   :  { %v1926_v26 = vpop.xlane.xlu1 %1925  ;;  %v1915_v44 = vpop.xlane.xlu0 %1914  ;;  %v1938_v21 = vcvt.s32.f32 %v1936_v40  ;;  %v3343_v40 = vld [vmem:[%s6030_s0 + $0x280] sm:$0xff] }
0x147b   :  { %v3130_v57 = vsel %vm6080_vm2, %v3129_v56, %v3128_v15  ;;  %vm1927_vm3 = vcmp.eq.f32.partialorder %v1924_v61, %v1926_v26  ;;  %v1916_v4 = vcvt.f32.s32 %v1915_v44  ;;  %v1954_v56 = vcvt.s32.f32 %v1952_v18 }
0x147c   :  { %v1928_v13 = vsel %vm1927_vm3, %v1923_v51, inf  ;;  %v1965_v44 = vsel %vm137_vm0, %v731_v12, 2147483647 }
0x147d   :  { %v1919_v0 = vadd.s32 %v1918_v37, %v1916_v4  ;;  %1929 = vmin.xlane.f32.xlu2 %v1928_v13  ;;  %v1967_v37 = vshra.s32 %v1965_v44, 16  ;;  %v1932_v4 = vcvt.f32.s32 %v1926_v26 }
0x147f   :  { %vm2850_vm15 = vcmp.lt.s32.totalorder %v1919_v0, 31  ;;  %v1969_v63 = vcvt.s32.f32 %v1967_v37 }
0x1480   :  { %v2851_v49 = vsel %vm2850_vm15, %v1919_v0, 31  ;;  %v1933_v0 = vshll.u32 %v1932_v4, 16  ;;  %vm6271_vm15 = vcmask 851712  }
0x1481   :  { %v3131_v15 = vperm.slane %v2851_v49, %v4949_v46 }
0x1482   :  { %v1941_v61 = vpop.xlane.xlu0 %1940 }
0x1483   :  { %v3132_v36 = vsel %vm6079_vm14, %v3131_v15, %v3130_v57  ;;  %vm1942_vm4 = vcmp.eq.f32.partialorder %v1939_v53, %v1941_v61  ;;  %v6269_v57 = vld [vmem:[#allocation25_spill] sm:$0xff]  ;;  %v1951_v53 = vand.u32 65535, %v1950_v22  ;;  %v1947_v18 = vcvt.f32.s32 %v1941_v61 }
0x1484   :  { %v1943_v51 = vsel %vm1942_vm4, %v1938_v21, inf  ;;  %vm604_vm3 = vcmp.eq.f32.partialorder %v3343_v40, %v6269_v57  ;;  %v1966_v40 = vand.u32 65535, %v1965_v44 }
0x1485   :  { %1955 = vmin.xlane.f32.xlu2 %v1954_v56  ;;  %1944 = vmin.xlane.f32.xlu1 %v1943_v51  ;;  %v732_v12 = vsel %vm604_vm3, %v4029_v35, 32  ;;  %v1953_v51 = vcvt.s32.f32 %v1951_v53  ;;  %v1948_v37 = vshll.u32 %v1947_v18, 16 }
0x148d   :  { %1970 = vmin.xlane.f32.xlu1 %v1969_v63 }
0x14f0   :  { %v1930_v13 = vpop.xlane.xlu2 %1929 }
0x14f1   :  { %v1931_v47 = vcvt.f32.s32 %v1930_v13 }
0x14f3   :  { %v1934_v52 = vadd.s32 %v1933_v0, %v1931_v47  ;;  %v5107_v0 = vsel %vm137_vm0, %v732_v12, 2147483647  ;;  %v3344_v47 = vld [vmem:[%s6030_s0 + $0x288] sm:$0xff] }
0x14f4   :  { %v1982_v57 = vshra.s32 %v5107_v0, 16 }
0x14f5   :  { %vm2852_vm13 = vcmp.lt.s32.totalorder %v1934_v52, 31 }
0x14f6   :  { %v2853_v49 = vsel %vm2852_vm13, %v1934_v52, 31  ;;  %v6272_v52 = vld [vmem:[#allocation57_spill] sm:$0xff] }
0x14f7   :  { %v3133_v15 = vperm.slane %v2853_v49, %v4960_v38  ;;  %vm605_vm3 = vcmp.eq.f32.partialorder %v3344_v47, %v6272_v52  ;;  %v1968_v49 = vcvt.s32.f32 %v1966_v40  ;;  %v6279_v47 = vld [vmem:[#allocation85_spill] sm:$0xff]  ;;  %v837_v40 = vcvt.f32.s32 %v4267_v10 }
0x14f8   :  { %v5102_v21 = vpop.xlane.xlu2 %1955  ;;  %v1945_v26 = vpop.xlane.xlu1 %1944  ;;  %v806_v52 = vcvt.f32.s32 %v6279_v47 }
0x14f9   :  { %6270 = vst [vmem:[#allocation10_spill] sm:$0xff] %v5102_v21  ;;  %v3134_v4 = vsel %vm6271_vm15, %v3133_v15, %v3132_v36  ;;  %vm1957_vm4 = vcmp.eq.f32.partialorder %v1954_v56, %v5102_v21  ;;  %v1946_v13 = vcvt.f32.s32 %v1945_v26  ;;  %v733_v56 = vsel %vm605_vm3, %v4029_v35, 32 }
0x14fa   :  { %v1958_v22 = vsel %vm1957_vm4, %v1953_v51, inf  ;;  %vm6274_vm15 = vcmask 917312   ;;  %v5122_v15 = vcvt.s32.f32 %v1982_v57  ;;  %v5125_v44 = vsel %vm137_vm0, %v733_v56, 2147483647 }
0x14fb   :  { %v1949_v61 = vadd.s32 %v1948_v37, %v1946_v13  ;;  %1959 = vmin.xlane.f32.xlu0 %v1958_v22  ;;  %v1997_v51 = vshra.s32 %v5125_v44, 16  ;;  %v807_v13 = vcvt.f32.s32 %v4222_v28  ;;  %v6278_v22 = vld [vmem:[#allocation84_spill] sm:$0xff]  ;;  %v821_v57 = vcvt.f32.s32 %v4271_v17 }
0x14fc   :  { %6276 = vst [vmem:[#allocation12_spill] sm:$0xff] %v5122_v15  ;;  %v851_v28 = vcvt.f32.s32 %v4291_v34 }
0x14fd   :  { %vm2854_vm13 = vcmp.lt.s32.totalorder %v1949_v61, 31  ;;  %v5129_v37 = vcvt.s32.f32 %v1997_v51 }
0x14fe   :  { %v2855_v36 = vsel %vm2854_vm13, %v1949_v61, 31  ;;  %v791_v61 = vcvt.f32.s32 %v6278_v22  ;;  %v838_v22 = vshll.u32 %v837_v40, 16 }
0x14ff   :  { %v3135_v53 = vperm.slane %v2855_v36, %v4971_v24  ;;  %6277 = vst [vmem:[#allocation11_spill] sm:$0xff] %v5129_v37  ;;  %v852_v36 = vcvt.f32.s32 %v4276_v9  ;;  %v897_v9 = vcvt.f32.s32 %v4309_v25  ;;  %v6284_v24 = vld [vmem:[#allocation89_spill] sm:$0xff] }
0x1500   :  { %v5116_v18 = vpop.xlane.xlu1 %1970  ;;  %v896_v34 = vcvt.f32.s32 %v6284_v24  ;;  %v3345_v24 = vld [vmem:[%s6030_s0 + $0x290] sm:$0xff] }
0x1501   :  { %6273 = vst [vmem:[#allocation9_spill] sm:$0xff] %v5116_v18  ;;  %v5119_v12 = vsel %vm6274_vm15, %v3135_v53, %v3134_v4  ;;  %vm1972_vm4 = vcmp.eq.f32.partialorder %v1969_v63, %v5116_v18  ;;  %v792_v4 = vcvt.f32.s32 %v4211_v45  ;;  %v822_v63 = vcvt.f32.s32 %v4258_v31  ;;  %v6282_v18 = vld [vmem:[#allocation88_spill] sm:$0xff] }
0x1502   :  { %6275 = vst [vmem:[#allocation33_spill] sm:$0xff] %v5119_v12  ;;  %v1973_v26 = vsel %vm1972_vm4, %v1968_v49, inf  ;;  %v808_v53 = vshll.u32 %v807_v13, 16  ;;  %v6280_v49 = vld [vmem:[#allocation86_spill] sm:$0xff]  ;;  %v867_v45 = vcvt.f32.s32 %v4287_v2  ;;  %v853_v10 = vshll.u32 %v852_v36, 16 }
0x1503   :  { %1985 = vmin.xlane.f32.xlu0 %v5122_v15  ;;  %1974 = vmin.xlane.f32.xlu2 %v1973_v26  ;;  %v793_v56 = vshll.u32 %v792_v4, 16  ;;  %v836_v26 = vcvt.f32.s32 %v6280_v49  ;;  %v823_v51 = vshll.u32 %v822_v63, 16  ;;  %v6281_v15 = vld [vmem:[#allocation87_spill] sm:$0xff]  ;;  %v866_v17 = vcvt.f32.s32 %v6282_v18  ;;  %v6283_v49 = vld [vmem:[#allocation90_spill] sm:$0xff] }
0x1504   :  { %v882_v47 = vcvt.f32.s32 %v6281_v15  ;;  %v881_v13 = vcvt.f32.s32 %v4313_v48  ;;  %v912_v63 = vcvt.f32.s32 %v6283_v49  ;;  %v868_v21 = vshll.u32 %v867_v45, 16  ;;  %v6285_v48 = vld [vmem:[#allocation92_spill] sm:$0xff] }
0x1505   :  { %v794_v31 = vadd.s32 %v793_v56, %v791_v61  ;;  %v824_v12 = vadd.s32 %v823_v51, %v821_v57  ;;  %v839_v4 = vadd.s32 %v838_v22, %v836_v26  ;;  %v854_v2 = vadd.s32 %v853_v10, %v851_v28  ;;  %v6287_v22 = vld [vmem:[#allocation91_spill] sm:$0xff] }
0x1506   :  { %v883_v61 = vshll.u32 %v882_v47, 16  ;;  %v911_v15 = vcvt.f32.s32 %v4335_v54  ;;  %v869_v18 = vadd.s32 %v868_v21, %v866_v17  ;;  %v898_v40 = vshll.u32 %v897_v9, 16 }
0x1507   :  { %vm2700_vm3 = vcmp.lt.s32.totalorder %v794_v31, 31  ;;  %vm2704_vm15 = vcmp.lt.s32.totalorder %v824_v12, 31  ;;  %vm2706_vm4 = vcmp.lt.s32.totalorder %v839_v4, 31  ;;  %v913_v57 = vshll.u32 %v912_v63, 16 }
0x1508   :  { %v884_v25 = vadd.s32 %v883_v61, %v881_v13  ;;  %v926_v36 = vcvt.f32.s32 %v6285_v48  ;;  %vm2708_vm14 = vcmp.lt.s32.totalorder %v854_v2, 31  ;;  %v899_v56 = vadd.s32 %v898_v40, %v896_v34 }
0x1509   :  { %v914_v54 = vadd.s32 %v913_v57, %v911_v15  ;;  %v2701_v51 = vsel %vm2700_vm3, %v794_v31, 31  ;;  %v2705_v21 = vsel %vm2704_vm15, %v824_v12, 31  ;;  %v2707_v45 = vsel %vm2706_vm4, %v839_v4, 31 }
0x150a   :  { %vm2710_vm9 = vcmp.lt.s32.totalorder %v869_v18, 31  ;;  %v2709_v28 = vsel %vm2708_vm14, %v854_v2, 31  ;;  %vm2712_vm1 = vcmp.lt.s32.totalorder %v884_v25, 31  ;;  %v942_v47 = vcvt.f32.s32 %v6287_v22 }
0x150b   :  { %2000 = vmin.xlane.f32.xlu2 %v5129_v37  ;;  %v809_v37 = vadd.s32 %v808_v53, %v806_v52  ;;  %v927_v52 = vcvt.f32.s32 %v4331_v7  ;;  %v6286_v53 = vld [vmem:[#allocation29_spill] sm:$0xff]  ;;  %vm2714_vm12 = vcmp.lt.s32.totalorder %v899_v56, 31  ;;  %v1981_v13 = vand.u32 65535, %v5107_v0 }
0x150c   :  { %vm606_vm2 = vcmp.eq.f32.partialorder %v3345_v24, %v6286_v53  ;;  %v2711_v49 = vsel %vm2710_vm9, %v869_v18, 31  ;;  %v941_v12 = vcvt.f32.s32 %v4357_v16  ;;  %v2956_v31 = vperm.slane %v2701_v51, %v4029_v35 }
0x150d   :  { %vm2702_vm13 = vcmp.lt.s32.totalorder %v809_v37, 31  ;;  %v928_v26 = vshll.u32 %v927_v52, 16  ;;  %v734_v17 = vsel %vm606_vm2, %v4029_v35, 32  ;;  %v2966_v4 = vperm.slane %v2707_v45, %v4873_v30 }
0x150e   :  { %v2703_v7 = vsel %vm2702_vm13, %v809_v37, 31  ;;  %v2962_v37 = vperm.slane %v2705_v21, %v4870_v19  ;;  %vm2716_vm13 = vcmp.lt.s32.totalorder %v914_v54, 31  ;;  %v2970_v63 = vperm.slane %v2709_v28, %v4877_v27 }
0x150f   :  { %v929_v10 = vadd.s32 %v928_v26, %v926_v36  ;;  %v2958_v9 = vperm.slane %v2703_v7, %v4866_v41  ;;  %v2713_v2 = vsel %vm2712_vm1, %v884_v25, 31  ;;  %v2715_v34 = vsel %vm2714_vm12, %v899_v56, 31  ;;  %v6288_v36 = vld [vmem:[#allocation94_spill] sm:$0xff] }
0x1510   :  { %v943_v61 = vshll.u32 %v942_v47, 16  ;;  %v957_v52 = vcvt.f32.s32 %v4353_v32  ;;  %v5168_v0 = vsel %vm137_vm0, %v734_v17, 2147483647  ;;  %v2974_v18 = vperm.slane %v2711_v49, %v4880_v23 }
0x1511   :  { %vm2718_vm2 = vcmp.lt.s32.totalorder %v929_v10, 31  ;;  %v2960_v15 = vsel %vm2959_vm5, %v2958_v9, %v2956_v31  ;;  %v2717_v16 = vsel %vm2716_vm13, %v914_v54, 31  ;;  %v2978_v57 = vperm.slane %v2713_v2, %v4888_v11 }
0x1512   :  { %v2964_v40 = vsel %vm2963_vm6, %v2962_v37, %v2960_v15  ;;  %v944_v48 = vadd.s32 %v943_v61, %v941_v12  ;;  %v956_v25 = vcvt.f32.s32 %v6288_v36  ;;  %v2982_v24 = vperm.slane %v2715_v34, %v4897_v29  ;;  %v6295_v36 = vld [vmem:[#allocation102_spill] sm:$0xff] }
0x1513   :  { %v2968_v56 = vsel %vm2967_vm7, %v2966_v4, %v2964_v40  ;;  %v2719_v32 = vsel %vm2718_vm2, %v929_v10, 31  ;;  %v2986_v7 = vperm.slane %v2717_v16, %v4916_v1  ;;  %v958_v26 = vshll.u32 %v957_v52, 16 }
0x1514   :  { %v2972_v53 = vsel %vm2971_vm8, %v2970_v63, %v2968_v56  ;;  %v1047_v54 = vcvt.f32.s32 %v4419_v50  ;;  %v5181_v21 = vcvt.s32.f32 %v1981_v13  ;;  %v2012_v45 = vshra.s32 %v5168_v0, 16  ;;  %v6291_v13 = vld [vmem:[#allocation93_spill] sm:$0xff] }
0x1515   :  { %v2976_v51 = vsel %vm6085_vm10, %v2974_v18, %v2972_v53  ;;  %v2990_v22 = vperm.slane %v2719_v32, %v4927_v39  ;;  %vm2720_vm12 = vcmp.lt.s32.totalorder %v944_v48, 31  ;;  %v959_v47 = vadd.s32 %v958_v26, %v956_v25  ;;  %v6296_v56 = vld [vmem:[#allocation101_spill] sm:$0xff] }
0x1516   :  { %v2980_v28 = vsel %vm6084_vm11, %v2978_v57, %v2976_v51  ;;  %vm6289_vm1 = vcmask 523712   ;;  %v1032_v17 = vcvt.f32.s32 %v4408_v6  ;;  %v1062_v9 = vcvt.f32.s32 %v4430_v8  ;;  %v6293_v8 = vld [vmem:[#allocation95_spill] sm:$0xff] }
0x1517   :  { %v2984_v10 = vsel %vm6289_vm1, %v2982_v24, %v2980_v28  ;;  %v1046_v37 = vcvt.f32.s32 %v4432_v62  ;;  %vm6290_vm9 = vcmask 589312   ;;  %v972_v49 = vcvt.f32.s32 %v6291_v13  ;;  %v6294_v62 = vld [vmem:[#allocation96_spill] sm:$0xff]  ;;  %v6297_v51 = vld [vmem:[#allocation103_spill] sm:$0xff] }
0x1518   :  { %v2988_v50 = vsel %vm6290_vm9, %v2986_v7, %v2984_v10  ;;  %v987_v12 = vcvt.f32.s32 %v4375_v42  ;;  %v1996_v31 = vand.u32 65535, %v5125_v44  ;;  %v2721_v4 = vsel %vm2720_vm12, %v944_v48, 31 }
0x1519   :  { %v1048_v63 = vshll.u32 %v1047_v54, 16  ;;  %v1031_v2 = vcvt.f32.s32 %v4423_v43  ;;  %v1061_v34 = vcvt.f32.s32 %v4445_v55  ;;  %vm6292_vm14 = vcmask 654912  }
0x151a   :  { %v2992_v6 = vsel %vm6292_vm14, %v2990_v22, %v2988_v50  ;;  %vm2722_vm3 = vcmp.lt.s32.totalorder %v959_v47, 31  ;;  %v971_v61 = vcvt.f32.s32 %v6293_v8  ;;  %v986_v52 = vcvt.f32.s32 %v6294_v62  ;;  %v6298_v22 = vld [vmem:[#allocation104_spill] sm:$0xff] }
0x151b   :  { %v1033_v15 = vshll.u32 %v1032_v17, 16  ;;  %v1063_v18 = vshll.u32 %v1062_v9, 16  ;;  %v1049_v16 = vadd.s32 %v1048_v63, %v1046_v37  ;;  %v1077_v42 = vcvt.f32.s32 %v4441_v60  ;;  %v6299_v17 = vld [vmem:[#allocation97_spill] sm:$0xff] }
0x151c   :  { %v2994_v40 = vperm.slane %v2721_v4, %v4938_v33  ;;  %v973_v57 = vshll.u32 %v972_v49, 16  ;;  %v988_v48 = vshll.u32 %v987_v12, 16  ;;  %v1092_v43 = vcvt.f32.s32 %v6295_v36  ;;  %v6300_v4 = vld [vmem:[#allocation106_spill] sm:$0xff] }
0x151d   :  { %v1034_v25 = vadd.s32 %v1033_v15, %v1031_v2  ;;  %v1064_v55 = vadd.s32 %v1063_v18, %v1061_v34  ;;  %v1076_v24 = vcvt.f32.s32 %v6296_v56  ;;  %v1107_v32 = vcvt.f32.s32 %v4463_v20  ;;  %v6303_v36 = vld [vmem:[#allocation98_spill] sm:$0xff] }
0x151e   :  { %v5204_v53 = vsel %vm2722_vm3, %v959_v47, 31  ;;  %v974_v7 = vadd.s32 %v973_v57, %v971_v61  ;;  %v1091_v26 = vcvt.f32.s32 %v4467_v59  ;;  %v1122_v54 = vcvt.f32.s32 %v6297_v51 }
0x151f   :  { %v989_v60 = vadd.s32 %v988_v48, %v986_v52  ;;  %vm2734_vm15 = vcmp.lt.s32.totalorder %v1049_v16, 31  ;;  %v1078_v28 = vshll.u32 %v1077_v42, 16  ;;  %v1106_v10 = vcvt.f32.s32 %v6298_v22  ;;  %v6302_v52 = vld [vmem:[#allocation99_spill] sm:$0xff] }
0x1520   :  { %v1002_v9 = vcvt.f32.s32 %v6299_v17  ;;  %v1093_v37 = vshll.u32 %v1092_v43, 16  ;;  %v1137_v50 = vcvt.f32.s32 %v4485_v3  ;;  %v1121_v13 = vcvt.f32.s32 %v4489_v5 }
0x1521   :  { %vm2732_vm4 = vcmp.lt.s32.totalorder %v1034_v25, 31  ;;  %vm2736_vm13 = vcmp.lt.s32.totalorder %v1064_v55, 31  ;;  %v1079_v20 = vadd.s32 %v1078_v28, %v1076_v24  ;;  %v1108_v47 = vshll.u32 %v1107_v32, 16  ;;  %v6306_v28 = vld [vmem:[#allocation100_spill] sm:$0xff] }
0x1522   :  { %v2735_v49 = vsel %vm2734_vm15, %v1049_v16, 31  ;;  %v1094_v59 = vadd.s32 %v1093_v37, %v1091_v26  ;;  %v1123_v12 = vshll.u32 %v1122_v54, 16  ;;  %v1136_v63 = vcvt.f32.s32 %v6300_v4  ;;  %v6305_v54 = vld [vmem:[#allocation108_spill] sm:$0xff] }
0x1523   :  { %vm6301_vm2 = vcmask 720512   ;;  %vm2724_vm12 = vcmp.lt.s32.totalorder %v974_v7, 31  ;;  %vm2726_vm1 = vcmp.lt.s32.totalorder %v989_v60, 31  ;;  %v1109_v34 = vadd.s32 %v1108_v47, %v1106_v10 }
0x1524   :  { %v2996_v2 = vsel %vm6301_vm2, %v2994_v40, %v2992_v6  ;;  %v2733_v8 = vsel %vm2732_vm4, %v1034_v25, 31  ;;  %v2737_v61 = vsel %vm2736_vm13, %v1064_v55, 31  ;;  %v1138_v62 = vshll.u32 %v1137_v50, 16  ;;  %v6304_v55 = vld [vmem:[#allocation105_spill] sm:$0xff]  ;;  %v6307_v50 = vld [vmem:[#allocation107_spill] sm:$0xff] }
0x1525   :  { %v1124_v3 = vadd.s32 %v1123_v12, %v1121_v13  ;;  %v2998_v5 = vperm.slane %v5204_v53, %v4949_v46  ;;  %v1001_v15 = vcvt.f32.s32 %v6302_v52  ;;  %v3018_v18 = vperm.slane %v2735_v49, %v4866_v41  ;;  %v6309_v49 = vld [vmem:[#allocation110_spill] sm:$0xff] }
0x1526   :  { %vm2738_vm9 = vcmp.lt.s32.totalorder %v1079_v20, 31  ;;  %v5218_v16 = vsel %vm2724_vm12, %v974_v7, 31  ;;  %v1003_v42 = vshll.u32 %v1002_v9, 16  ;;  %vm2740_vm14 = vcmp.lt.s32.totalorder %v1094_v59, 31 }
0x1527   :  { %v1139_v6 = vadd.s32 %v1138_v62, %v1136_v63  ;;  %v5220_v40 = vsel %vm2726_vm1, %v989_v60, 31  ;;  %v3017_v57 = vperm.slane %v2733_v8, %v4029_v35  ;;  %v3020_v48 = vperm.slane %v2737_v61, %v4870_v19  ;;  %v6310_v8 = vld [vmem:[#allocation111_spill] sm:$0xff]  ;;  %v6311_v62 = vld [vmem:[#allocation112_spill] sm:$0xff] }
0x1528   :  { %vm2742_vm3 = vcmp.lt.s32.totalorder %v1109_v34, 31  ;;  %v1017_v43 = vcvt.f32.s32 %v6303_v36  ;;  %v2739_v25 = vsel %vm2738_vm9, %v1079_v20, 31  ;;  %vm2744_vm15 = vcmp.lt.s32.totalorder %v1124_v3, 31  ;;  %v6308_v20 = vld [vmem:[#allocation109_spill] sm:$0xff]  ;;  %v6312_v36 = vld [vmem:[#allocation114_spill] sm:$0xff] }
0x1529   :  { %v1152_v56 = vcvt.f32.s32 %v6304_v55  ;;  %v1004_v24 = vadd.s32 %v1003_v42, %v1001_v15  ;;  %v3019_v32 = vsel %vm2959_vm5, %v3018_v18, %v3017_v57  ;;  %v2741_v53 = vsel %vm2740_vm14, %v1094_v59, 31 }
0x152a   :  { %v1167_v7 = vcvt.f32.s32 %v4507_v14  ;;  %v2743_v26 = vsel %vm2742_vm3, %v1109_v34, 31  ;;  %vm2746_vm4 = vcmp.lt.s32.totalorder %v1139_v6, 31  ;;  %v1151_v51 = vcvt.f32.s32 %v4511_v58 }
0x152b   :  { %v1182_v60 = vcvt.f32.s32 %v6305_v54  ;;  %v1016_v22 = vcvt.f32.s32 %v6306_v28  ;;  %v3021_v10 = vsel %vm2963_vm6, %v3020_v48, %v3019_v32  ;;  %v3022_v17 = vperm.slane %v2739_v25, %v4873_v30  ;;  %v6315_v28 = vld [vmem:[#allocation121_spill] sm:$0xff] }
0x152c   :  { %v2745_v9 = vsel %vm2744_vm15, %v1124_v3, 31  ;;  %v1153_v37 = vshll.u32 %v1152_v56, 16  ;;  %v1166_v13 = vcvt.f32.s32 %v6307_v50  ;;  %v1197_v47 = vcvt.f32.s32 %v6308_v20  ;;  %v6318_v50 = vld [vmem:[#allocation113_spill] sm:$0xff]  ;;  %v6319_v20 = vld [vmem:[#allocation120_spill] sm:$0xff] }
0x152d   :  { %v1181_v14 = vcvt.f32.s32 %v6309_v49  ;;  %v3024_v59 = vperm.slane %v2741_v53, %v4877_v27  ;;  %v3026_v58 = vperm.slane %v2743_v26, %v4880_v23  ;;  %v2747_v12 = vsel %vm2746_vm4, %v1139_v6, 31 }
0x152e   :  { %v1168_v4 = vshll.u32 %v1167_v7, 16  ;;  %v1154_v63 = vadd.s32 %v1153_v37, %v1151_v51  ;;  %v1183_v34 = vshll.u32 %v1182_v60, 16  ;;  %v1212_v61 = vcvt.f32.s32 %v6310_v8  ;;  %v6314_v51 = vld [vmem:[#allocation27_spill] sm:$0xff]  ;;  %v6323_v8 = vld [vmem:[#allocation116_spill] sm:$0xff] }
0x152f   :  { %v1196_v52 = vcvt.f32.s32 %v6311_v62  ;;  %v1018_v3 = vshll.u32 %v1017_v43, 16  ;;  %vm2728_vm13 = vcmp.lt.s32.totalorder %v1004_v24, 31  ;;  %v3023_v15 = vsel %vm2967_vm7, %v3022_v17, %v3021_v10 }
0x1530   :  { %v3028_v18 = vperm.slane %v2745_v9, %v4888_v11  ;;  %v1169_v42 = vadd.s32 %v1168_v4, %v1166_v13  ;;  %v1198_v57 = vshll.u32 %v1197_v47, 16  ;;  %v1184_v48 = vadd.s32 %v1183_v34, %v1181_v14  ;;  %v6317_v9 = vld [vmem:[#allocation123_spill] sm:$0xff]  ;;  %v6322_v4 = vld [vmem:[#allocation126_spill] sm:$0xff] }
0x1531   :  { %v1211_v25 = vcvt.f32.s32 %v6312_v36  ;;  %vm6313_vm2 = vcmask 786112   ;;  %v1019_v55 = vadd.s32 %v1018_v3, %v1016_v22  ;;  %v3025_v56 = vsel %vm2971_vm8, %v3024_v59, %v3023_v15 }
0x1532   :  { %v5244_v6 = vsel %vm6313_vm2, %v2998_v5, %v2996_v2  ;;  %v3030_v32 = vperm.slane %v2747_v12, %v4897_v29  ;;  %v3027_v43 = vsel %vm6085_vm10, %v3026_v58, %v3025_v56  ;;  %vm2748_vm12 = vcmp.lt.s32.totalorder %v1154_v63, 31  ;;  %v6321_v58 = vld [vmem:[#allocation125_spill] sm:$0xff] }
0x1533   :  { %v1213_v53 = vshll.u32 %v1212_v61, 16  ;;  %v1199_v7 = vadd.s32 %v1198_v57, %v1196_v52  ;;  %v3002_v26 = vperm.slane %v5218_v16, %v4960_v38  ;;  %v3006_v54 = vperm.slane %v5220_v40, %v6314_v51  ;;  %v6325_v57 = vld [vmem:[#allocation128_spill] sm:$0xff] }
0x1534   :  { %v5254_v60 = vsel %vm2728_vm13, %v1004_v24, 31  ;;  %v3029_v2 = vsel %vm6084_vm11, %v3028_v18, %v3027_v43  ;;  %vm2750_vm1 = vcmp.lt.s32.totalorder %v1169_v42, 31  ;;  %vm2752_vm9 = vcmp.lt.s32.totalorder %v1184_v48, 31  ;;  %v6320_v24 = vld [vmem:[#allocation124_spill] sm:$0xff] }
0x1535   :  { %v1214_v5 = vadd.s32 %v1213_v53, %v1211_v25  ;;  %v1287_v22 = vcvt.f32.s32 %v6315_v28  ;;  %vm2730_vm14 = vcmp.lt.s32.totalorder %v1019_v55, 31  ;;  %vm6316_vm3 = vcmask 523712  }
0x1536   :  { %v3031_v10 = vsel %vm6316_vm3, %v3030_v32, %v3029_v2  ;;  %v2749_v17 = vsel %vm2748_vm12, %v1154_v63, 31  ;;  %v1302_v37 = vcvt.f32.s32 %v6317_v9  ;;  %vm2754_vm15 = vcmp.lt.s32.totalorder %v1199_v7, 31  ;;  %v6324_v63 = vld [vmem:[#allocation122_spill] sm:$0xff] }
0x1537   :  { %v1227_v13 = vcvt.f32.s32 %v6318_v50  ;;  %v1272_v47 = vcvt.f32.s32 %v6319_v20  ;;  %v1286_v49 = vcvt.f32.s32 %v6320_v24  ;;  %v2751_v14 = vsel %vm2750_vm1, %v1169_v42, 31 }
0x1538   :  { %v2753_v59 = vsel %vm2752_vm9, %v1184_v48, 31  ;;  %v1317_v12 = vcvt.f32.s32 %v6321_v58  ;;  %v1301_v34 = vcvt.f32.s32 %v6322_v4  ;;  %vm2756_vm4 = vcmp.lt.s32.totalorder %v1214_v5, 31  ;;  %v6332_v58 = vld [vmem:[#allocation127_spill] sm:$0xff]  ;;  %v6333_v4 = vld [vmem:[#allocation129_spill] sm:$0xff] }
0x1539   :  { %v1226_v61 = vcvt.f32.s32 %v6323_v8  ;;  %v1288_v62 = vshll.u32 %v1287_v22, 16  ;;  %v1271_v52 = vcvt.f32.s32 %v6324_v63  ;;  %v3032_v3 = vperm.slane %v2749_v17, %v4916_v1  ;;  %v6326_v22 = vld [vmem:[#allocation115_spill] sm:$0xff] }
0x153a   :  { %v2755_v15 = vsel %vm2754_vm15, %v1199_v7, 31  ;;  %v1303_v18 = vshll.u32 %v1302_v37, 16  ;;  %v1316_v36 = vcvt.f32.s32 %v6325_v57  ;;  %v3034_v25 = vperm.slane %v2751_v14, %v4927_v39  ;;  %v6327_v7 = vld [vmem:[#allocation8_spill] sm:$0xff]  ;;  %v6336_v63 = vld [vmem:[#allocation131_spill] sm:$0xff] }
0x153b   :  { %v1228_v42 = vshll.u32 %v1227_v13, 16  ;;  %v1273_v48 = vshll.u32 %v1272_v47, 16  ;;  %v1289_v56 = vadd.s32 %v1288_v62, %v1286_v49  ;;  %v3036_v32 = vperm.slane %v2753_v59, %v4938_v33  ;;  %v6330_v49 = vld [vmem:[#allocation118_spill] sm:$0xff] }
0x153c   :  { %v2757_v43 = vsel %vm2756_vm4, %v1214_v5, 31  ;;  %v1318_v53 = vshll.u32 %v1317_v12, 16  ;;  %v1304_v2 = vadd.s32 %v1303_v18, %v1301_v34  ;;  %v3038_v28 = vperm.slane %v2755_v15, %v4949_v46  ;;  %v6338_v15 = vld [vmem:[#allocation117_spill] sm:$0xff] }
0x153d   :  { %v1242_v9 = vcvt.f32.s32 %v6326_v22  ;;  %v1229_v50 = vadd.s32 %v1228_v42, %v1226_v61  ;;  %v1274_v17 = vadd.s32 %v1273_v48, %v1271_v52  ;;  %v3010_v37 = vperm.slane %v5254_v60, %v6327_v7  ;;  %v6335_v61 = vld [vmem:[#allocation130_spill] sm:$0xff]  ;;  %v6340_v22 = vld [vmem:[#allocation133_spill] sm:$0xff] }
0x153e   :  { %v5276_v20 = vsel %vm2730_vm14, %v1019_v55, 31  ;;  %vm6328_vm13 = vcmask 589312   ;;  %v1319_v47 = vadd.s32 %v1318_v53, %v1316_v36  ;;  %vm6329_vm2 = vcmask 654912  }
0x153f   :  { %v3033_v13 = vsel %vm6328_vm13, %v3032_v3, %v3031_v10  ;;  %v3040_v5 = vperm.slane %v2757_v43, %v4960_v38  ;;  %v1241_v14 = vcvt.f32.s32 %v6330_v49  ;;  %vm2766_vm12 = vcmp.lt.s32.totalorder %v1289_v56, 31  ;;  %v6341_v49 = vld [vmem:[#allocation134_spill] sm:$0xff] }
0x1540   :  { %v3035_v24 = vsel %vm6329_vm2, %v3034_v25, %v3033_v13  ;;  %vm6331_vm1 = vcmask 720512   ;;  %vm2768_vm9 = vcmp.lt.s32.totalorder %v1304_v2, 31  ;;  %v1332_v12 = vcvt.f32.s32 %v6332_v58 }
0x1541   :  { %v3037_v59 = vsel %vm6331_vm1, %v3036_v32, %v3035_v24  ;;  %v1347_v34 = vcvt.f32.s32 %v6333_v4  ;;  %vm6334_vm3 = vcmask 786112   ;;  %v1243_v8 = vshll.u32 %v1242_v9, 16  ;;  %v6339_v32 = vld [vmem:[#allocation132_spill] sm:$0xff] }
0x1542   :  { %v3039_v55 = vsel %vm6334_vm3, %v3038_v28, %v3037_v59  ;;  %vm2758_vm14 = vcmp.lt.s32.totalorder %v1229_v50, 31  ;;  %vm2764_vm15 = vcmp.lt.s32.totalorder %v1274_v17, 31  ;;  %v2767_v10 = vsel %vm2766_vm12, %v1289_v56, 31 }
0x1543   :  { %vm2770_vm4 = vcmp.lt.s32.totalorder %v1319_v47, 31  ;;  %v1331_v62 = vcvt.f32.s32 %v6335_v61  ;;  %v1346_v52 = vcvt.f32.s32 %v6336_v63  ;;  %vm6337_vm13 = vcmask 851712   ;;  %v6345_v61 = vld [vmem:[#allocation137_spill] sm:$0xff]  ;;  %v6346_v63 = vld [vmem:[#allocation138_spill] sm:$0xff] }
0x1544   :  { %v5289_v3 = vsel %vm6337_vm13, %v3040_v5, %v3039_v55  ;;  %v1257_v18 = vcvt.f32.s32 %v6338_v15  ;;  %v1244_v57 = vadd.s32 %v1243_v8, %v1241_v14  ;;  %v2769_v36 = vsel %vm2768_vm9, %v1304_v2, 31 }
0x1545   :  { %v2765_v25 = vsel %vm2764_vm15, %v1274_v17, 31  ;;  %v1333_v42 = vshll.u32 %v1332_v12, 16  ;;  %v1348_v48 = vshll.u32 %v1347_v34, 16  ;;  %v1362_v43 = vcvt.f32.s32 %v6339_v32  ;;  %v6342_v17 = vld [vmem:[#allocation135_spill] sm:$0xff]  ;;  %v6343_v12 = vld [vmem:[#allocation136_spill] sm:$0xff] }
0x1546   :  { %v5293_v53 = vsel %vm2758_vm14, %v1229_v50, 31  ;;  %v3049_v56 = vperm.slane %v2767_v10, %v4866_v41  ;;  %v2771_v28 = vsel %vm2770_vm4, %v1319_v47, 31  ;;  %v1377_v9 = vcvt.f32.s32 %v6340_v22  ;;  %v6344_v50 = vld [vmem:[#allocation119_spill] sm:$0xff]  ;;  %v6348_v32 = vld [vmem:[#allocation140_spill] sm:$0xff] }
0x1547   :  { %v3051_v13 = vperm.slane %v2769_v36, %v4870_v19  ;;  %v1334_v24 = vadd.s32 %v1333_v42, %v1331_v62  ;;  %v1349_v5 = vadd.s32 %v1348_v48, %v1346_v52  ;;  %v1361_v59 = vcvt.f32.s32 %v6341_v49  ;;  %v6347_v42 = vld [vmem:[#allocation139_spill] sm:$0xff] }
0x1548   :  { %v1258_v14 = vshll.u32 %v1257_v18, 16  ;;  %v3048_v2 = vperm.slane %v2765_v25, %v4029_v35  ;;  %v1392_v58 = vcvt.f32.s32 %v6342_v17  ;;  %v1376_v4 = vcvt.f32.s32 %v6343_v12  ;;  %v6350_v12 = vld [vmem:[#allocation142_spill] sm:$0xff] }
0x1549   :  { %vm2760_vm2 = vcmp.lt.s32.totalorder %v1244_v57, 31  ;;  %v1256_v34 = vcvt.f32.s32 %v6344_v50  ;;  %v3053_v47 = vperm.slane %v2771_v28, %v4873_v30  ;;  %v1363_v55 = vshll.u32 %v1362_v43, 16 }
0x154a   :  { %v3050_v8 = vsel %vm2959_vm5, %v3049_v56, %v3048_v2  ;;  %v1378_v10 = vshll.u32 %v1377_v9, 16  ;;  %v1407_v62 = vcvt.f32.s32 %v6345_v61  ;;  %v1391_v52 = vcvt.f32.s32 %v6346_v63  ;;  %v6349_v9 = vld [vmem:[#allocation141_spill] sm:$0xff] }
0x154b   :  { %v3052_v15 = vsel %vm2963_vm6, %v3051_v13, %v3050_v8  ;;  %vm2772_vm12 = vcmp.lt.s32.totalorder %v1334_v24, 31  ;;  %vm2774_vm1 = vcmp.lt.s32.totalorder %v1349_v5, 31  ;;  %v1364_v18 = vadd.s32 %v1363_v55, %v1361_v59  ;;  %v6352_v55 = vld [vmem:[#allocation144_spill] sm:$0xff] }
0x154c   :  { %v1393_v36 = vshll.u32 %v1392_v58, 16  ;;  %v1379_v25 = vadd.s32 %v1378_v10, %v1376_v4  ;;  %v1422_v48 = vcvt.f32.s32 %v6347_v42  ;;  %v1406_v22 = vcvt.f32.s32 %v6348_v32  ;;  %v6351_v4 = vld [vmem:[#allocation143_spill] sm:$0xff]  ;;  %v6357_v42 = vld [vmem:[#allocation148_spill] sm:$0xff] }
0x154d   :  { %v5311_v43 = vsel %vm2760_vm2, %v1244_v57, 31  ;;  %v5313_v56 = vadd.s32 %v1258_v14, %v1256_v34  ;;  %v3054_v28 = vsel %vm2967_vm7, %v3053_v47, %v3052_v15  ;;  %v1437_v49 = vcvt.f32.s32 %v6349_v9  ;;  %v6353_v14 = vld [vmem:[#allocation145_spill] sm:$0xff]  ;;  %v6354_v47 = vld [vmem:[#allocation146_spill] sm:$0xff]  ;;  %v6355_v15 = vld [vmem:[#allocation147_spill] sm:$0xff] }
0x154e   :  { %v2773_v2 = vsel %vm2772_vm12, %v1334_v24, 31  ;;  %v1408_v13 = vshll.u32 %v1407_v62, 16  ;;  %v1394_v17 = vadd.s32 %v1393_v36, %v1391_v52  ;;  %v1421_v59 = vcvt.f32.s32 %v6350_v12  ;;  %v6356_v62 = vld [vmem:[#allocation6_spill] sm:$0xff] }
0x154f   :  { %v2775_v58 = vsel %vm2774_vm1, %v1349_v5, 31  ;;  %vm2776_vm9 = vcmp.lt.s32.totalorder %v1364_v18, 31  ;;  %v1436_v50 = vcvt.f32.s32 %v6351_v4  ;;  %v1452_v8 = vcvt.f32.s32 %v6352_v55  ;;  %v6358_v4 = vld [vmem:[#allocation149_spill] sm:$0xff] }
0x1550   :  { %vm2778_vm3 = vcmp.lt.s32.totalorder %v1379_v25, 31  ;;  %v1423_v57 = vshll.u32 %v1422_v48, 16  ;;  %v1409_v10 = vadd.s32 %v1408_v13, %v1406_v22  ;;  %v1467_v34 = vcvt.f32.s32 %v6353_v14  ;;  %v6359_v22 = vld [vmem:[#allocation5_spill] sm:$0xff] }
0x1551   :  { %v1438_v61 = vshll.u32 %v1437_v49, 16  ;;  %v1451_v63 = vcvt.f32.s32 %v6354_v47  ;;  %v1482_v24 = vcvt.f32.s32 %v6355_v15  ;;  %v1497_v52 = vcvt.f32.s32 %v6356_v62 }
0x1552   :  { %v3055_v36 = vperm.slane %v2773_v2, %v4877_v27  ;;  %vm2780_vm14 = vcmp.lt.s32.totalorder %v1394_v17, 31  ;;  %v1424_v5 = vadd.s32 %v1423_v57, %v1421_v59  ;;  %v1466_v32 = vcvt.f32.s32 %v6357_v42 }
0x1553   :  { %v1439_v9 = vadd.s32 %v1438_v61, %v1436_v50  ;;  %v1453_v12 = vshll.u32 %v1452_v8, 16  ;;  %v1481_v48 = vcvt.f32.s32 %v6358_v4  ;;  %v1496_v13 = vcvt.f32.s32 %v6359_v22  ;;  %v6360_v50 = vld [vmem:[#allocation10_spill] sm:$0xff] }
0x1554   :  { %v3057_v49 = vperm.slane %v2775_v58, %v4880_v23  ;;  %v2777_v55 = vsel %vm2776_vm9, %v1364_v18, 31  ;;  %v2779_v14 = vsel %vm2778_vm3, %v1379_v25, 31  ;;  %v1468_v47 = vshll.u32 %v1467_v34, 16 }
0x1555   :  { %vm2782_vm15 = vcmp.lt.s32.totalorder %v1409_v10, 31  ;;  %v1454_v15 = vadd.s32 %v1453_v12, %v1451_v63  ;;  %v1483_v2 = vshll.u32 %v1482_v24, 16  ;;  %v1498_v62 = vshll.u32 %v1497_v52, 16 }
0x1556   :  { %v2781_v59 = vsel %vm2780_vm14, %v1394_v17, 31  ;;  %vm2784_vm4 = vcmp.lt.s32.totalorder %v1424_v5, 31  ;;  %v1469_v57 = vadd.s32 %v1468_v47, %v1466_v32  ;;  %v1962_v8 = vcvt.f32.s32 %v6360_v50 }
0x1557   :  { %v3059_v61 = vperm.slane %v2777_v55, %v4888_v11  ;;  %vm2786_vm13 = vcmp.lt.s32.totalorder %v1439_v9, 31  ;;  %v1484_v42 = vadd.s32 %v1483_v2, %v1481_v48  ;;  %v1499_v4 = vadd.s32 %v1498_v62, %v1496_v13 }
0x1558   :  { %vm2762_vm2 = vcmp.lt.s32.totalorder %v5313_v56, 31  ;;  %v3056_v18 = vsel %vm2971_vm8, %v3055_v36, %v3054_v28  ;;  %v3061_v25 = vperm.slane %v2779_v14, %v4897_v29  ;;  %v2783_v58 = vsel %vm2782_vm15, %v1409_v10, 31 }
0x1559   :  { %v3058_v34 = vsel %vm6085_vm10, %v3057_v49, %v3056_v18  ;;  %v3063_v17 = vperm.slane %v2781_v59, %v4916_v1  ;;  %v2785_v63 = vsel %vm2784_vm4, %v1424_v5, 31  ;;  %vm2788_vm12 = vcmp.lt.s32.totalorder %v1454_v15, 31  ;;  %v3346_v5 = vld [vmem:[%s6030_s0 + $0x298] sm:$0xff] }
0x155a   :  { %v2787_v52 = vsel %vm2786_vm13, %v1439_v9, 31  ;;  %vm2790_vm1 = vcmp.lt.s32.totalorder %v1469_v57, 31  ;;  %v1963_v32 = vshll.u32 %v1962_v8, 16  ;;  %v3060_v48 = vsel %vm6084_vm11, %v3059_v61, %v3058_v34  ;;  %v6362_v9 = vld [vmem:[#allocation28_spill] sm:$0xff] }
0x155b   :  { %v3065_v22 = vperm.slane %v2783_v58, %v4927_v39  ;;  %vm2792_vm9 = vcmp.lt.s32.totalorder %v1484_v42, 31  ;;  %vm2794_vm3 = vcmp.lt.s32.totalorder %v1499_v4, 31  ;;  %vm6361_vm14 = vcmask 523712  }
0x155c   :  { %v3062_v28 = vsel %vm6361_vm14, %v3061_v25, %v3060_v48  ;;  %v3067_v10 = vperm.slane %v2785_v63, %v4938_v33  ;;  %v2789_v36 = vsel %vm2788_vm12, %v1454_v15, 31  ;;  %vm607_vm15 = vcmp.eq.f32.partialorder %v3346_v5, %v6362_v9  ;;  %v6364_v15 = vld [vmem:[#allocation9_spill] sm:$0xff]  ;;  %v6371_v48 = vld [vmem:[#allocation12_spill] sm:$0xff] }
0x155d   :  { %v2763_v49 = vsel %vm2762_vm2, %v5313_v56, 31  ;;  %vm6363_vm4 = vcmask 589312   ;;  %v3069_v14 = vperm.slane %v2787_v52, %v4949_v46  ;;  %v2791_v47 = vsel %vm2790_vm1, %v1469_v57, 31 }
0x155e   :  { %v3064_v55 = vsel %vm6363_vm4, %v3063_v17, %v3062_v28  ;;  %v2793_v2 = vsel %vm2792_vm9, %v1484_v42, 31  ;;  %v2795_v62 = vsel %vm2794_vm3, %v1499_v4, 31  ;;  %v1977_v59 = vcvt.f32.s32 %v6364_v15  ;;  %v6367_v4 = vld [vmem:[#allocation7_spill] sm:$0xff]  ;;  %v6383_v15 = vld [vmem:[#allocation30_spill] sm:$0xff] }
0x155f   :  { %v3042_v50 = vperm.slane %v5293_v53, %v6314_v51  ;;  %vm6365_vm12 = vcmask 654912   ;;  %v3071_v61 = vperm.slane %v2789_v36, %v4960_v38  ;;  %v3044_v56 = vperm.slane %v5311_v43, %v6327_v7 }
0x1560   :  { %v3066_v8 = vsel %vm6365_vm12, %v3065_v22, %v3064_v55  ;;  %vm6366_vm2 = vcmask 720512   ;;  %v3073_v57 = vperm.slane %v2791_v47, %v6314_v51  ;;  %v3046_v58 = vperm.slane %v2763_v49, %v6367_v4 }
0x1561   :  { %v3068_v25 = vsel %vm6366_vm2, %v3067_v10, %v3066_v8  ;;  %vm6368_vm1 = vcmask 786112   ;;  %v3075_v53 = vperm.slane %v2793_v2, %v6327_v7  ;;  %v3077_v17 = vperm.slane %v2795_v62, %v6367_v4  ;;  %v6385_v8 = vld [vmem:[#allocation11_spill] sm:$0xff] }
0x1562   :  { %v3070_v34 = vsel %vm6368_vm1, %v3069_v14, %v3068_v25  ;;  %v1978_v52 = vshll.u32 %v1977_v59, 16  ;;  %vm6370_vm9 = vcmask 982912   ;;  %v3014_v22 = vperm.slane %v5276_v20, %v6367_v4 }
0x1563   :  { %vm6372_vm14 = vcmask 917312   ;;  %vm6373_vm4 = vcmask 851712   ;;  %vm6375_vm12 = vmmov %vm6370_vm9  ;;  %vm3238_vm10 = vcmask 1043459  }
0x1564   :  { %v3043_v28 = vsel %vm6372_vm14, %v3042_v50, %v5289_v3  ;;  %v3072_v10 = vsel %vm6373_vm4, %v3071_v61, %v3070_v34  ;;  %vm6376_vm2 = vmmov %vm6372_vm14  ;;  %vm6378_vm14 = vcmask 1048512   ;;  %v2014_v61 = vcvt.s32.f32 %v2012_v45  ;;  %v6386_v34 = vld [vmem:[#allocation60_spill] sm:$0xff] }
0x1565   :  { %v3045_v49 = vsel %vm6375_vm12, %v3044_v56, %v3043_v28  ;;  %v3074_v55 = vsel %vm6376_vm2, %v3073_v57, %v3072_v10  ;;  %vm6377_vm1 = vmmov %vm6376_vm2  ;;  %v2011_v45 = vand.u32 65535, %v5168_v0  ;;  %v3348_v0 = vld [vmem:[%s6030_s0 + $0x2a8] sm:$0xff]  ;;  %v6387_v10 = vld [vmem:[#allocation32_spill] sm:$0xff] }
0x156e   :  { %v1960_v24 = vpop.xlane.xlu0 %1959 }
0x156f   :  { %v1961_v12 = vcvt.f32.s32 %v1960_v24 }
0x1571   :  { %v1964_v13 = vadd.s32 %v1963_v32, %v1961_v12  ;;  %v6369_v32 = vld [vmem:[#allocation33_spill] sm:$0xff] }
0x1573   :  { %vm2856_vm13 = vcmp.lt.s32.totalorder %v1964_v13, 31 }
0x1574   :  { %v2857_v18 = vsel %vm2856_vm13, %v1964_v13, 31  ;;  %vm6374_vm13 = vmmov %vm6373_vm4 }
0x1575   :  { %v3137_v42 = vperm.slane %v2857_v18, %v6327_v7  ;;  %v3004_v13 = vsel %vm6374_vm13, %v3002_v26, %v5244_v6  ;;  %vm3236_vm13 = vcmask 1042434  }
0x1576   :  { %v1975_v63 = vpop.xlane.xlu2 %1974  ;;  %v1986_v24 = vpop.xlane.xlu0 %1985  ;;  %v3008_v20 = vsel %vm6377_vm1, %v3006_v54, %v3004_v13  ;;  %v735_v54 = vsel %vm607_vm15, %v4029_v35, 32  ;;  %vm3240_vm1 = vcmask 1044484  }
0x1577   :  { %v3138_v43 = vsel %vm6370_vm9, %v3137_v42, %v6369_v32  ;;  %v1976_v12 = vcvt.f32.s32 %v1975_v63  ;;  %vm1987_vm3 = vcmp.eq.f32.partialorder %v6371_v48, %v1986_v24  ;;  %vm3234_vm9 = vcmask 1041409  }
0x1578   :  { %v1988_v36 = vsel %vm1987_vm3, %v5181_v21, inf  ;;  %v3047_v21 = vsel %vm6378_vm14, %v3046_v58, %v3045_v49  ;;  %vm6379_vm3 = vmmov %vm6375_vm12  ;;  %v2025_v5 = vsel %vm137_vm0, %v735_v54, 2147483647  ;;  %v1992_v44 = vcvt.f32.s32 %v1986_v24  ;;  %v3347_v58 = vld [vmem:[%s6030_s0 + $0x2a0] sm:$0xff] }
0x1579   :  { %v1979_v14 = vadd.s32 %v1978_v52, %v1976_v12  ;;  %1989 = vmin.xlane.f32.xlu1 %v1988_v36  ;;  %v3076_v3 = vsel %vm6379_vm3, %v3075_v53, %v3074_v55  ;;  %vm6380_vm4 = vmmov %vm6379_vm3  ;;  %v2027_v56 = vshra.s32 %v2025_v5, 16  ;;  %vm609_vm3 = vcmp.eq.f32.partialorder %v3348_v0, %v6387_v10 }
0x157a   :  { %v3012_v16 = vsel %vm6380_vm4, %v3010_v37, %v3008_v20  ;;  %vm6381_vm12 = vmmov %vm6378_vm14  ;;  %v1998_v37 = vcvt.s32.f32 %v1996_v31  ;;  %v1993_v42 = vshll.u32 %v1992_v44, 16  ;;  %v2026_v13 = vand.u32 65535, %v2025_v5 }
0x157b   :  { %v3078_v6 = vsel %vm6381_vm12, %v3077_v17, %v3076_v3  ;;  %vm2858_vm2 = vcmp.lt.s32.totalorder %v1979_v14, 31  ;;  %vm6382_vm11 = vmmov %vm6381_vm12  ;;  %v2029_v25 = vcvt.s32.f32 %v2027_v56 }
0x157c   :  { %v3016_v26 = vsel %vm6382_vm11, %v3014_v22, %v3012_v16  ;;  %v2859_v40 = vsel %vm2858_vm2, %v1979_v14, 31  ;;  %vm6384_vm14 = vmmov %vm6382_vm11  ;;  %v737_v14 = vsel %vm609_vm3, %v4029_v35, 32  ;;  %v2028_v16 = vcvt.s32.f32 %v2026_v13 }
0x157d   :  { %v3235_v47 = vsel %vm3234_vm9, %v3047_v21, %v3016_v26  ;;  %v3139_v2 = vperm.slane %v2859_v40, %v6367_v4  ;;  %v2055_v40 = vsel %vm137_vm0, %v737_v14, 2147483647 }
0x157e   :  { %v3237_v62 = vsel %vm3236_vm13, %v3078_v6, %v3235_v47  ;;  %v2001_v60 = vpop.xlane.xlu2 %2000  ;;  %v2057_v47 = vshra.s32 %v2055_v40, 16 }
0x157f   :  { %v3239_v59 = vsel %vm3238_vm10, %v6383_v15, %v3237_v62  ;;  %v3140_v50 = vsel %vm6384_vm14, %v3139_v2, %v3138_v43  ;;  %vm2002_vm11 = vcmp.eq.f32.partialorder %v6385_v8, %v2001_v60  ;;  %vm608_vm10 = vcmp.eq.f32.partialorder %v3347_v58, %v6386_v34  ;;  %v6388_v8 = vld [vmem:[#allocation31_spill] sm:$0xff] }
0x1580   :  { %v2003_v9 = vsel %vm2002_vm11, %v1998_v37, inf  ;;  %v5406_v18 = vsel %vm3240_vm1, %v3140_v50, %v3239_v59  ;;  %v2007_v53 = vcvt.f32.s32 %v2001_v60  ;;  %v736_v63 = vsel %vm608_vm10, %v4029_v35, 32  ;;  %v3349_v50 = vld [vmem:[%s6030_s0 + $0x2b0] sm:$0xff] }
0x1581   :  { %2004 = vmin.xlane.f32.xlu0 %v2003_v9  ;;  %2015 = vmin.xlane.f32.xlu1 %v2014_v61  ;;  %v2013_v43 = vcvt.s32.f32 %v2011_v45  ;;  %v2040_v48 = vsel %vm137_vm0, %v736_v63, 2147483647  ;;  %v2059_v2 = vcvt.s32.f32 %v2057_v47  ;;  %vm610_vm12 = vcmp.eq.f32.partialorder %v3349_v50, %v6388_v8  ;;  %v3350_v63 = vld [vmem:[%s6030_s0 + $0x2b8] sm:$0xff] }
0x1582   :  { %v2008_v12 = vshll.u32 %v2007_v53, 16  ;;  %v2042_v49 = vshra.s32 %v2040_v48, 16  ;;  %v738_v56 = vsel %vm610_vm12, %v4029_v35, 32  ;;  %vm6392_vm12 = vcmask 392512  }
0x1583   :  { %v2070_v45 = vsel %vm137_vm0, %v738_v56, 2147483647  ;;  %v3352_v56 = vld [vmem:[%s6030_s0 + $0x2c8] sm:$0xff] }
0x1584   :  { %v2044_v26 = vcvt.s32.f32 %v2042_v49 }
0x1589   :  { %2030 = vmin.xlane.f32.xlu0 %v2029_v25 }
0x15ec   :  { %v1990_v31 = vpop.xlane.xlu1 %1989 }
0x15ed   :  { %v1991_v57 = vcvt.f32.s32 %v1990_v31 }
0x15ef   :  { %v1994_v17 = vadd.s32 %v1993_v42, %v1991_v57 }
0x15f1   :  { %vm2860_vm15 = vcmp.lt.s32.totalorder %v1994_v17, 31 }
0x15f2   :  { %v2861_v36 = vsel %vm2860_vm15, %v1994_v17, 31 }
0x15f3   :  { %v3141_v20 = vperm.slane %v2861_v36, %v4029_v35 }
0x15f4   :  { %v2016_v52 = vpop.xlane.xlu1 %2015  ;;  %v2005_v32 = vpop.xlane.xlu0 %2004 }
0x15f5   :  { %vm2017_vm9 = vcmp.eq.f32.partialorder %v2014_v61, %v2016_v52  ;;  %v2006_v24 = vcvt.f32.s32 %v2005_v32  ;;  %v2022_v62 = vcvt.f32.s32 %v2016_v52  ;;  %v2041_v61 = vand.u32 65535, %v2040_v48  ;;  %v6389_v52 = vld [vmem:[#allocation65_spill] sm:$0xff] }
0x15f6   :  { %v2018_v22 = vsel %vm2017_vm9, %v2013_v43, inf  ;;  %vm611_vm14 = vcmp.eq.f32.partialorder %v3350_v63, %v6389_v52  ;;  %v2056_v32 = vand.u32 65535, %v2055_v40  ;;  %v2072_v43 = vshra.s32 %v2070_v45, 16 }
0x15f7   :  { %v2009_v28 = vadd.s32 %v2008_v12, %v2006_v24  ;;  %2019 = vmin.xlane.f32.xlu2 %v2018_v22  ;;  %v2023_v37 = vshll.u32 %v2022_v62, 16  ;;  %v2043_v57 = vcvt.s32.f32 %v2041_v61  ;;  %v739_v24 = vsel %vm611_vm14, %v4029_v35, 32 }
0x15f8   :  { %v2074_v10 = vcvt.s32.f32 %v2072_v43  ;;  %v2085_v36 = vsel %vm137_vm0, %v739_v24, 2147483647  ;;  %v2071_v40 = vand.u32 65535, %v2070_v45 }
0x15f9   :  { %vm2862_vm4 = vcmp.lt.s32.totalorder %v2009_v28, 31  ;;  %v2087_v49 = vshra.s32 %v2085_v36, 16 }
0x15fa   :  { %v2863_v55 = vsel %vm2862_vm4, %v2009_v28, 31  ;;  %v2058_v28 = vcvt.s32.f32 %v2056_v32 }
0x15fb   :  { %v3142_v21 = vperm.slane %v2863_v55, %v4866_v41  ;;  %v2089_v55 = vcvt.s32.f32 %v2087_v49 }
0x15fc   :  { %v2031_v3 = vpop.xlane.xlu0 %2030 }
0x15fd   :  { %v3143_v6 = vsel %vm2959_vm5, %v3142_v21, %v3141_v20  ;;  %vm2032_vm13 = vcmp.eq.f32.partialorder %v2029_v25, %v2031_v3  ;;  %v2037_v5 = vcvt.f32.s32 %v2031_v3 }
0x15fe   :  { %v2033_v54 = vsel %vm2032_vm13, %v2028_v16, inf }
0x15ff   :  { %2045 = vmin.xlane.f32.xlu2 %v2044_v26  ;;  %2034 = vmin.xlane.f32.xlu1 %v2033_v54  ;;  %v2038_v42 = vshll.u32 %v2037_v5, 16 }
0x1607   :  { %2060 = vmin.xlane.f32.xlu1 %v2059_v2 }
0x166a   :  { %v2020_v60 = vpop.xlane.xlu2 %2019 }
0x166b   :  { %v2021_v15 = vcvt.f32.s32 %v2020_v60 }
0x166d   :  { %v2024_v59 = vadd.s32 %v2023_v37, %v2021_v15  ;;  %v2073_v15 = vcvt.s32.f32 %v2071_v40 }
0x166f   :  { %vm2864_vm2 = vcmp.lt.s32.totalorder %v2024_v59, 31 }
0x1670   :  { %v2865_v9 = vsel %vm2864_vm2, %v2024_v59, 31 }
0x1671   :  { %v3144_v25 = vperm.slane %v2865_v9, %v4870_v19 }
0x1672   :  { %v2046_v44 = vpop.xlane.xlu2 %2045  ;;  %v2035_v31 = vpop.xlane.xlu1 %2034 }
0x1673   :  { %v3145_v58 = vsel %vm2963_vm6, %v3144_v25, %v3143_v6  ;;  %vm2047_vm1 = vcmp.eq.f32.partialorder %v2044_v26, %v2046_v44  ;;  %v2036_v34 = vcvt.f32.s32 %v2035_v31  ;;  %v2052_v14 = vcvt.f32.s32 %v2046_v44  ;;  %v3351_v6 = vld [vmem:[%s6030_s0 + $0x2c0] sm:$0xff]  ;;  %v6390_v26 = vld [vmem:[#allocation35_spill] sm:$0xff]  ;;  %v6391_v25 = vld [vmem:[#allocation34_spill] sm:$0xff] }
0x1674   :  { %v2048_v53 = vsel %vm2047_vm1, %v2043_v57, inf  ;;  %vm612_vm15 = vcmp.eq.f32.partialorder %v3351_v6, %v6390_v26  ;;  %vm613_vm4 = vcmp.eq.f32.partialorder %v3352_v56, %v6391_v25  ;;  %v2086_v44 = vand.u32 65535, %v2085_v36 }
0x1675   :  { %v2039_v17 = vadd.s32 %v2038_v42, %v2036_v34  ;;  %2049 = vmin.xlane.f32.xlu0 %v2048_v53  ;;  %v2053_v21 = vshll.u32 %v2052_v14, 16  ;;  %v741_v42 = vsel %vm613_vm4, %v4029_v35, 32 }
0x1676   :  { %v2088_v45 = vcvt.s32.f32 %v2086_v44  ;;  %v2115_v63 = vsel %vm137_vm0, %v741_v42, 2147483647 }
0x1677   :  { %vm2866_vm11 = vcmp.lt.s32.totalorder %v2039_v17, 31  ;;  %v2117_v32 = vshra.s32 %v2115_v63, 16 }
0x1678   :  { %v2867_v12 = vsel %vm2866_vm11, %v2039_v17, 31  ;;  %vm6394_vm11 = vcmask 458112  }
0x1679   :  { %v3146_v48 = vperm.slane %v2867_v12, %v4873_v30  ;;  %v2119_v43 = vcvt.s32.f32 %v2117_v32 }
0x167a   :  { %v2061_v22 = vpop.xlane.xlu1 %2060 }
0x167b   :  { %v3147_v0 = vsel %vm2967_vm7, %v3146_v48, %v3145_v58  ;;  %vm2062_vm10 = vcmp.eq.f32.partialorder %v2059_v2, %v2061_v22  ;;  %v2067_v54 = vcvt.f32.s32 %v2061_v22  ;;  %v740_v2 = vsel %vm612_vm15, %v4029_v35, 32 }
0x167c   :  { %v2063_v13 = vsel %vm2062_vm10, %v2058_v28, inf  ;;  %v2100_v61 = vsel %vm137_vm0, %v740_v2, 2147483647  ;;  %v3354_v2 = vld [vmem:[%s6030_s0 + $0x2d8] sm:$0xff] }
0x167d   :  { %2075 = vmin.xlane.f32.xlu0 %v2074_v10  ;;  %2064 = vmin.xlane.f32.xlu2 %v2063_v13  ;;  %v2068_v59 = vshll.u32 %v2067_v54, 16  ;;  %v2102_v31 = vshra.s32 %v2100_v61, 16  ;;  %v2101_v36 = vand.u32 65535, %v2100_v61 }
0x167f   :  { %v2104_v17 = vcvt.s32.f32 %v2102_v31 }
0x1685   :  { %2090 = vmin.xlane.f32.xlu2 %v2089_v55 }
0x16e8   :  { %v2050_v20 = vpop.xlane.xlu0 %2049 }
0x16e9   :  { %v2051_v3 = vcvt.f32.s32 %v2050_v20 }
0x16eb   :  { %v2054_v16 = vadd.s32 %v2053_v21, %v2051_v3  ;;  %v2103_v3 = vcvt.s32.f32 %v2101_v36 }
0x16ed   :  { %vm2868_vm9 = vcmp.lt.s32.totalorder %v2054_v16, 31 }
0x16ee   :  { %v2869_v47 = vsel %vm2868_vm9, %v2054_v16, 31 }
0x16ef   :  { %v3148_v62 = vperm.slane %v2869_v47, %v4877_v27 }
0x16f0   :  { %v2065_v60 = vpop.xlane.xlu2 %2064  ;;  %v2076_v37 = vpop.xlane.xlu0 %2075 }
0x16f1   :  { %v3149_v50 = vsel %vm2971_vm8, %v3148_v62, %v3147_v0  ;;  %v2066_v8 = vcvt.f32.s32 %v2065_v60  ;;  %vm2077_vm3 = vcmp.eq.f32.partialorder %v2074_v10, %v2076_v37  ;;  %v2082_v12 = vcvt.f32.s32 %v2076_v37  ;;  %v3353_v0 = vld [vmem:[%s6030_s0 + $0x2d0] sm:$0xff]  ;;  %v6393_v10 = vld [vmem:[#allocation68_spill] sm:$0xff] }
0x16f2   :  { %v2078_v5 = vsel %vm2077_vm3, %v2073_v15, inf  ;;  %vm614_vm1 = vcmp.eq.f32.partialorder %v3353_v0, %v6393_v10  ;;  %v6395_v62 = vld [vmem:[#allocation38_spill] sm:$0xff]  ;;  %v2116_v60 = vand.u32 65535, %v2115_v63  ;;  %vm6396_vm3 = vcmask 523712  }
0x16f3   :  { %v2069_v9 = vadd.s32 %v2068_v59, %v2066_v8  ;;  %2079 = vmin.xlane.f32.xlu1 %v2078_v5  ;;  %v2083_v48 = vshll.u32 %v2082_v12, 16  ;;  %vm615_vm15 = vcmp.eq.f32.partialorder %v3354_v2, %v6395_v62 }
0x16f4   :  { %v743_v59 = vsel %vm615_vm15, %v4029_v35, 32  ;;  %v2118_v61 = vcvt.s32.f32 %v2116_v60 }
0x16f5   :  { %vm2870_vm13 = vcmp.lt.s32.totalorder %v2069_v9, 31  ;;  %v2145_v56 = vsel %vm137_vm0, %v743_v59, 2147483647 }
0x16f6   :  { %v2871_v57 = vsel %vm2870_vm13, %v2069_v9, 31  ;;  %v2147_v44 = vshra.s32 %v2145_v56, 16 }
0x16f7   :  { %v3150_v58 = vperm.slane %v2871_v57, %v4880_v23 }
0x16f8   :  { %v2091_v34 = vpop.xlane.xlu2 %2090  ;;  %v2149_v31 = vcvt.s32.f32 %v2147_v44 }
0x16f9   :  { %v3151_v53 = vsel %vm6392_vm12, %v3150_v58, %v3149_v50  ;;  %vm2092_vm2 = vcmp.eq.f32.partialorder %v2089_v55, %v2091_v34  ;;  %v2097_v13 = vcvt.f32.s32 %v2091_v34  ;;  %v742_v55 = vsel %vm614_vm1, %v4029_v35, 32 }
0x16fa   :  { %v2093_v52 = vsel %vm2092_vm2, %v2088_v45, inf  ;;  %v2130_v40 = vsel %vm137_vm0, %v742_v55, 2147483647  ;;  %vm6398_vm2 = vcmask 589312   ;;  %v3356_v55 = vld [vmem:[%s6030_s0 + $0x2e8] sm:$0xff] }
0x16fb   :  { %2094 = vmin.xlane.f32.xlu0 %v2093_v52  ;;  %2105 = vmin.xlane.f32.xlu1 %v2104_v17  ;;  %v2098_v16 = vshll.u32 %v2097_v13, 16  ;;  %v2132_v37 = vshra.s32 %v2130_v40, 16  ;;  %v2131_v63 = vand.u32 65535, %v2130_v40 }
0x16fd   :  { %v2134_v9 = vcvt.s32.f32 %v2132_v37 }
0x1703   :  { %2120 = vmin.xlane.f32.xlu0 %v2119_v43 }
0x1766   :  { %v2080_v24 = vpop.xlane.xlu1 %2079 }
0x1767   :  { %v2081_v22 = vcvt.f32.s32 %v2080_v24 }
0x1769   :  { %v2084_v28 = vadd.s32 %v2083_v48, %v2081_v22  ;;  %v2133_v22 = vcvt.s32.f32 %v2131_v63 }
0x176b   :  { %vm2872_vm14 = vcmp.lt.s32.totalorder %v2084_v28, 31 }
0x176c   :  { %v2873_v49 = vsel %vm2872_vm14, %v2084_v28, 31 }
0x176d   :  { %v3152_v14 = vperm.slane %v2873_v49, %v4888_v11 }
0x176e   :  { %v2106_v20 = vpop.xlane.xlu1 %2105  ;;  %v2095_v21 = vpop.xlane.xlu0 %2094 }
0x176f   :  { %v3153_v6 = vsel %vm6394_vm11, %v3152_v14, %v3151_v53  ;;  %vm2107_vm10 = vcmp.eq.f32.partialorder %v2104_v17, %v2106_v20  ;;  %v2096_v26 = vcvt.f32.s32 %v2095_v21  ;;  %v2112_v57 = vcvt.f32.s32 %v2106_v20  ;;  %v3355_v53 = vld [vmem:[%s6030_s0 + $0x2e0] sm:$0xff]  ;;  %v6397_v17 = vld [vmem:[#allocation37_spill] sm:$0xff]  ;;  %v6399_v14 = vld [vmem:[#allocation71_spill] sm:$0xff] }
0x1770   :  { %v2108_v54 = vsel %vm2107_vm10, %v2103_v3, inf  ;;  %vm616_vm13 = vcmp.eq.f32.partialorder %v3355_v53, %v6397_v17  ;;  %vm617_vm14 = vcmp.eq.f32.partialorder %v3356_v55, %v6399_v14  ;;  %v2146_v20 = vand.u32 65535, %v2145_v56 }
0x1771   :  { %v2099_v47 = vadd.s32 %v2098_v16, %v2096_v26  ;;  %2109 = vmin.xlane.f32.xlu2 %v2108_v54  ;;  %v2113_v58 = vshll.u32 %v2112_v57, 16  ;;  %v745_v16 = vsel %vm617_vm14, %v4029_v35, 32  ;;  %vm6400_vm10 = vcmask 654912  }
0x1772   :  { %v2148_v40 = vcvt.s32.f32 %v2146_v20  ;;  %v2175_v2 = vsel %vm137_vm0, %v745_v16, 2147483647 }
0x1773   :  { %vm2874_vm9 = vcmp.lt.s32.totalorder %v2099_v47, 31  ;;  %v2177_v60 = vshra.s32 %v2175_v2, 16 }
0x1774   :  { %v2875_v15 = vsel %vm2874_vm9, %v2099_v47, 31 }
0x1775   :  { %v3154_v50 = vperm.slane %v2875_v15, %v4897_v29  ;;  %v2179_v37 = vcvt.s32.f32 %v2177_v60 }
0x1776   :  { %v2121_v8 = vpop.xlane.xlu0 %2120 }
0x1777   :  { %v3155_v5 = vsel %vm6396_vm3, %v3154_v50, %v3153_v6  ;;  %vm2122_vm4 = vcmp.eq.f32.partialorder %v2119_v43, %v2121_v8  ;;  %v2127_v52 = vcvt.f32.s32 %v2121_v8  ;;  %v744_v43 = vsel %vm616_vm13, %v4029_v35, 32 }
0x1778   :  { %v2123_v25 = vsel %vm2122_vm4, %v2118_v61, inf  ;;  %v2160_v36 = vsel %vm137_vm0, %v744_v43, 2147483647  ;;  %vm6402_vm4 = vcmask 720512   ;;  %v3358_v43 = vld [vmem:[%s6030_s0 + $0x2f8] sm:$0xff] }
0x1779   :  { %2135 = vmin.xlane.f32.xlu2 %v2134_v9  ;;  %2124 = vmin.xlane.f32.xlu1 %v2123_v25  ;;  %v2128_v28 = vshll.u32 %v2127_v52, 16  ;;  %v2162_v21 = vshra.s32 %v2160_v36, 16  ;;  %v2161_v56 = vand.u32 65535, %v2160_v36 }
0x177b   :  { %v2164_v47 = vcvt.s32.f32 %v2162_v21 }
0x1781   :  { %2150 = vmin.xlane.f32.xlu1 %v2149_v31 }
0x17e4   :  { %v2110_v42 = vpop.xlane.xlu2 %2109 }
0x17e5   :  { %v2111_v34 = vcvt.f32.s32 %v2110_v42 }
0x17e7   :  { %v2114_v45 = vadd.s32 %v2113_v58, %v2111_v34  ;;  %v2163_v34 = vcvt.s32.f32 %v2161_v56 }
0x17e9   :  { %vm2876_vm12 = vcmp.lt.s32.totalorder %v2114_v45, 31 }
0x17ea   :  { %v2877_v32 = vsel %vm2876_vm12, %v2114_v45, 31 }
0x17eb   :  { %v3156_v12 = vperm.slane %v2877_v32, %v4916_v1 }
0x17ec   :  { %v2136_v24 = vpop.xlane.xlu2 %2135  ;;  %v2125_v48 = vpop.xlane.xlu1 %2124 }
0x17ed   :  { %v3157_v0 = vsel %vm6398_vm2, %v3156_v12, %v3155_v5  ;;  %vm2137_vm1 = vcmp.eq.f32.partialorder %v2134_v9, %v2136_v24  ;;  %v2126_v10 = vcvt.f32.s32 %v2125_v48  ;;  %v2142_v15 = vcvt.f32.s32 %v2136_v24  ;;  %v3357_v5 = vld [vmem:[%s6030_s0 + $0x2f0] sm:$0xff]  ;;  %v6401_v9 = vld [vmem:[#allocation41_spill] sm:$0xff]  ;;  %v6403_v12 = vld [vmem:[#allocation40_spill] sm:$0xff] }
0x17ee   :  { %v2138_v13 = vsel %vm2137_vm1, %v2133_v22, inf  ;;  %vm618_vm9 = vcmp.eq.f32.partialorder %v3357_v5, %v6401_v9  ;;  %vm619_vm12 = vcmp.eq.f32.partialorder %v3358_v43, %v6403_v12  ;;  %v2176_v24 = vand.u32 65535, %v2175_v2 }
0x17ef   :  { %v2129_v49 = vadd.s32 %v2128_v28, %v2126_v10  ;;  %2139 = vmin.xlane.f32.xlu0 %v2138_v13  ;;  %v2143_v50 = vshll.u32 %v2142_v15, 16  ;;  %v747_v28 = vsel %vm619_vm12, %v4029_v35, 32  ;;  %vm6404_vm1 = vcmask 786112  }
0x17f0   :  { %v2178_v36 = vcvt.s32.f32 %v2176_v24  ;;  %v2205_v55 = vsel %vm137_vm0, %v747_v28, 2147483647 }
0x17f1   :  { %vm2878_vm11 = vcmp.lt.s32.totalorder %v2129_v49, 31  ;;  %v2207_v20 = vshra.s32 %v2205_v55, 16 }
0x17f2   :  { %v2879_v3 = vsel %vm2878_vm11, %v2129_v49, 31 }
0x17f3   :  { %v3158_v6 = vperm.slane %v2879_v3, %v4927_v39  ;;  %v2209_v21 = vcvt.s32.f32 %v2207_v20 }
0x17f4   :  { %v2151_v26 = vpop.xlane.xlu1 %2150 }
0x17f5   :  { %v3159_v54 = vsel %vm6400_vm10, %v3158_v6, %v3157_v0  ;;  %vm2152_vm15 = vcmp.eq.f32.partialorder %v2149_v31, %v2151_v26  ;;  %v2157_v25 = vcvt.f32.s32 %v2151_v26  ;;  %v746_v31 = vsel %vm618_vm9, %v4029_v35, 32 }
0x17f6   :  { %v2153_v62 = vsel %vm2152_vm15, %v2148_v40, inf  ;;  %v2190_v63 = vsel %vm137_vm0, %v746_v31, 2147483647  ;;  %vm6406_vm15 = vcmask 851712   ;;  %v3360_v31 = vld [vmem:[%s6030_s0 + $0x308] sm:$0xff] }
0x17f7   :  { %2165 = vmin.xlane.f32.xlu0 %v2164_v47  ;;  %2154 = vmin.xlane.f32.xlu2 %v2153_v62  ;;  %v2158_v45 = vshll.u32 %v2157_v25, 16  ;;  %v2192_v48 = vshra.s32 %v2190_v63, 16  ;;  %v2191_v2 = vand.u32 65535, %v2190_v63 }
0x17f9   :  { %v2194_v49 = vcvt.s32.f32 %v2192_v48 }
0x17ff   :  { %2180 = vmin.xlane.f32.xlu2 %v2179_v37 }
0x1862   :  { %v2140_v59 = vpop.xlane.xlu0 %2139 }
0x1863   :  { %v2141_v8 = vcvt.f32.s32 %v2140_v59 }
0x1865   :  { %v2144_v61 = vadd.s32 %v2143_v50, %v2141_v8  ;;  %v2193_v8 = vcvt.s32.f32 %v2191_v2 }
0x1867   :  { %vm2880_vm3 = vcmp.lt.s32.totalorder %v2144_v61, 31 }
0x1868   :  { %v2881_v44 = vsel %vm2880_vm3, %v2144_v61, 31 }
0x1869   :  { %v3160_v57 = vperm.slane %v2881_v44, %v4938_v33 }
0x186a   :  { %v2155_v42 = vpop.xlane.xlu2 %2154  ;;  %v2166_v58 = vpop.xlane.xlu0 %2165 }
0x186b   :  { %v3161_v53 = vsel %vm6402_vm4, %v3160_v57, %v3159_v54  ;;  %v2156_v17 = vcvt.f32.s32 %v2155_v42  ;;  %vm2167_vm13 = vcmp.eq.f32.partialorder %v2164_v47, %v2166_v58  ;;  %v2172_v3 = vcvt.f32.s32 %v2166_v58  ;;  %v3359_v54 = vld [vmem:[%s6030_s0 + $0x300] sm:$0xff]  ;;  %v6405_v47 = vld [vmem:[#allocation73_spill] sm:$0xff] }
0x186c   :  { %v2168_v52 = vsel %vm2167_vm13, %v2163_v34, inf  ;;  %vm620_vm11 = vcmp.eq.f32.partialorder %v3359_v54, %v6405_v47  ;;  %v6407_v57 = vld [vmem:[#allocation44_spill] sm:$0xff]  ;;  %v2206_v42 = vand.u32 65535, %v2205_v55  ;;  %vm6408_vm13 = vcmask 917312  }
0x186d   :  { %v2159_v32 = vadd.s32 %v2158_v45, %v2156_v17  ;;  %2169 = vmin.xlane.f32.xlu1 %v2168_v52  ;;  %v2173_v6 = vshll.u32 %v2172_v3, 16  ;;  %vm621_vm3 = vcmp.eq.f32.partialorder %v3360_v31, %v6407_v57 }
0x186e   :  { %v749_v45 = vsel %vm621_vm3, %v4029_v35, 32  ;;  %v2208_v63 = vcvt.s32.f32 %v2206_v42  ;;  %vm6412_vm3 = vcmask 1048512  }
0x186f   :  { %vm2882_vm2 = vcmp.lt.s32.totalorder %v2159_v32, 31  ;;  %v2235_v43 = vsel %vm137_vm0, %v749_v45, 2147483647 }
0x1870   :  { %v2883_v22 = vsel %vm2882_vm2, %v2159_v32, 31  ;;  %v2237_v24 = vshra.s32 %v2235_v43, 16 }
0x1871   :  { %v3162_v0 = vperm.slane %v2883_v22, %v4949_v46 }
0x1872   :  { %v2181_v10 = vpop.xlane.xlu2 %2180  ;;  %v2239_v48 = vcvt.s32.f32 %v2237_v24 }
0x1873   :  { %v3163_v13 = vsel %vm6404_vm1, %v3162_v0, %v3161_v53  ;;  %vm2182_vm14 = vcmp.eq.f32.partialorder %v2179_v37, %v2181_v10  ;;  %v2187_v62 = vcvt.f32.s32 %v2181_v10  ;;  %v748_v37 = vsel %vm620_vm11, %v4029_v35, 32 }
0x1874   :  { %v2183_v14 = vsel %vm2182_vm14, %v2178_v36, inf  ;;  %v2220_v56 = vsel %vm137_vm0, %v748_v37, 2147483647  ;;  %vm6410_vm14 = vcmask 982912   ;;  %v3362_v37 = vld [vmem:[%s6030_s0 + $0x318] sm:$0xff] }
0x1875   :  { %2184 = vmin.xlane.f32.xlu0 %v2183_v14  ;;  %2195 = vmin.xlane.f32.xlu1 %v2194_v49  ;;  %v2188_v61 = vshll.u32 %v2187_v62, 16  ;;  %v2222_v58 = vshra.s32 %v2220_v56, 16  ;;  %v2221_v55 = vand.u32 65535, %v2220_v56 }
0x1877   :  { %v2224_v32 = vcvt.s32.f32 %v2222_v58 }
0x187d   :  { %2210 = vmin.xlane.f32.xlu0 %v2209_v21 }
0x18e0   :  { %v2170_v16 = vpop.xlane.xlu1 %2169 }
0x18e1   :  { %v2171_v26 = vcvt.f32.s32 %v2170_v16 }
0x18e3   :  { %v2174_v40 = vadd.s32 %v2173_v6, %v2171_v26  ;;  %v2223_v26 = vcvt.s32.f32 %v2221_v55  ;;  %v3364_v55 = vld [vmem:[%s6030_s0 + $0x328] sm:$0xff] }
0x18e5   :  { %vm2884_vm10 = vcmp.lt.s32.totalorder %v2174_v40, 31 }
0x18e6   :  { %v2885_v60 = vsel %vm2884_vm10, %v2174_v40, 31 }
0x18e7   :  { %v3164_v15 = vperm.slane %v2885_v60, %v4960_v38 }
0x18e8   :  { %v2196_v59 = vpop.xlane.xlu1 %2195  ;;  %v2185_v50 = vpop.xlane.xlu0 %2184 }
0x18e9   :  { %v3165_v5 = vsel %vm6406_vm15, %v3164_v15, %v3163_v13  ;;  %vm2197_vm9 = vcmp.eq.f32.partialorder %v2194_v49, %v2196_v59  ;;  %v2186_v9 = vcvt.f32.s32 %v2185_v50  ;;  %v2202_v22 = vcvt.f32.s32 %v2196_v59  ;;  %v3361_v13 = vld [vmem:[%s6030_s0 + $0x310] sm:$0xff]  ;;  %v6409_v49 = vld [vmem:[#allocation43_spill] sm:$0xff] }
0x18ea   :  { %v2198_v25 = vsel %vm2197_vm9, %v2193_v8, inf  ;;  %vm622_vm2 = vcmp.eq.f32.partialorder %v3361_v13, %v6409_v49  ;;  %v6411_v15 = vld [vmem:[#allocation74_spill] sm:$0xff]  ;;  %v2236_v59 = vand.u32 65535, %v2235_v43  ;;  %vm3242_vm9 = vcmask 1045509  }
0x18eb   :  { %v2189_v44 = vadd.s32 %v2188_v61, %v2186_v9  ;;  %2199 = vmin.xlane.f32.xlu2 %v2198_v25  ;;  %v2203_v0 = vshll.u32 %v2202_v22, 16  ;;  %vm623_vm10 = vcmp.eq.f32.partialorder %v3362_v37, %v6411_v15 }
0x18ec   :  { %v751_v61 = vsel %vm623_vm10, %v4029_v35, 32  ;;  %v2238_v56 = vcvt.s32.f32 %v2236_v59 }
0x18ed   :  { %vm2886_vm4 = vcmp.lt.s32.totalorder %v2189_v44, 31  ;;  %v2265_v31 = vsel %vm137_vm0, %v751_v61, 2147483647 }
0x18ee   :  { %v2887_v34 = vsel %vm2886_vm4, %v2189_v44, 31  ;;  %v2267_v58 = vshra.s32 %v2265_v31, 16 }
0x18ef   :  { %v3166_v53 = vperm.slane %v2887_v34, %v6314_v51 }
0x18f0   :  { %v2211_v17 = vpop.xlane.xlu0 %2210  ;;  %v2269_v34 = vcvt.s32.f32 %v2267_v58 }
0x18f1   :  { %v3167_v52 = vsel %vm6408_vm13, %v3166_v53, %v3165_v5  ;;  %vm2212_vm12 = vcmp.eq.f32.partialorder %v2209_v21, %v2211_v17  ;;  %v2217_v14 = vcvt.f32.s32 %v2211_v17  ;;  %v750_v21 = vsel %vm622_vm2, %v4029_v35, 32 }
0x18f2   :  { %v2213_v12 = vsel %vm2212_vm12, %v2208_v63, inf  ;;  %v2250_v2 = vsel %vm137_vm0, %v750_v21, 2147483647  ;;  %v2266_v21 = vand.u32 65535, %v2265_v31 }
0x18f3   :  { %2225 = vmin.xlane.f32.xlu2 %v2224_v32  ;;  %2214 = vmin.xlane.f32.xlu1 %v2213_v12  ;;  %v2218_v40 = vshll.u32 %v2217_v14, 16  ;;  %v2252_v50 = vshra.s32 %v2250_v2, 16  ;;  %v2251_v43 = vand.u32 65535, %v2250_v2  ;;  %v6415_v14 = vld [vmem:[#allocation46_spill] sm:$0xff] }
0x18f5   :  { %v2254_v44 = vcvt.s32.f32 %v2252_v50 }
0x18fb   :  { %2240 = vmin.xlane.f32.xlu1 %v2239_v48 }
0x195e   :  { %v2200_v28 = vpop.xlane.xlu2 %2199 }
0x195f   :  { %v2201_v10 = vcvt.f32.s32 %v2200_v28  ;;  %v2253_v28 = vcvt.s32.f32 %v2251_v43 }
0x1961   :  { %v2204_v36 = vadd.s32 %v2203_v0, %v2201_v10 }
0x1963   :  { %vm2888_vm1 = vcmp.lt.s32.totalorder %v2204_v36, 31 }
0x1964   :  { %v2889_v20 = vsel %vm2888_vm1, %v2204_v36, 31  ;;  %vm625_vm1 = vcmp.eq.f32.partialorder %v3364_v55, %v6415_v14 }
0x1965   :  { %v3168_v3 = vperm.slane %v2889_v20, %v6327_v7 }
0x1966   :  { %v2226_v16 = vpop.xlane.xlu2 %2225  ;;  %v2215_v6 = vpop.xlane.xlu1 %2214 }
0x1967   :  { %v3169_v54 = vsel %vm6410_vm14, %v3168_v3, %v3167_v52  ;;  %vm2227_vm11 = vcmp.eq.f32.partialorder %v2224_v32, %v2226_v16  ;;  %v2216_v47 = vcvt.f32.s32 %v2215_v6  ;;  %v2232_v45 = vcvt.f32.s32 %v2226_v16  ;;  %v3363_v52 = vld [vmem:[%s6030_s0 + $0x320] sm:$0xff]  ;;  %v6414_v32 = vld [vmem:[#allocation47_spill] sm:$0xff] }
0x1968   :  { %v2228_v62 = vsel %vm2227_vm11, %v2223_v26, inf  ;;  %vm624_vm13 = vcmp.eq.f32.partialorder %v3363_v52, %v6414_v32  ;;  %v753_v6 = vsel %vm625_vm1, %v4029_v35, 32 }
0x1969   :  { %v2219_v60 = vadd.s32 %v2218_v40, %v2216_v47  ;;  %2229 = vmin.xlane.f32.xlu0 %v2228_v62  ;;  %v2233_v63 = vshll.u32 %v2232_v45, 16  ;;  %v2268_v47 = vcvt.s32.f32 %v2266_v21 }
0x196b   :  { %vm2890_vm15 = vcmp.lt.s32.totalorder %v2219_v60, 31 }
0x196c   :  { %v2891_v8 = vsel %vm2890_vm15, %v2219_v60, 31  ;;  %v2295_v60 = vsel %vm137_vm0, %v753_v6, 2147483647 }
0x196d   :  { %v3170_v5 = vperm.slane %v2891_v8, %v6367_v4  ;;  %v2297_v15 = vshra.s32 %v2295_v60, 16 }
0x196e   :  { %v2241_v9 = vpop.xlane.xlu1 %2240 }
0x196f   :  { %v3171_v25 = vsel %vm6412_vm3, %v3170_v5, %v3169_v54  ;;  %vm2242_vm4 = vcmp.eq.f32.partialorder %v2239_v48, %v2241_v9  ;;  %v2247_v12 = vcvt.f32.s32 %v2241_v9  ;;  %v2299_v59 = vcvt.s32.f32 %v2297_v15 }
0x1970   :  { %v2243_v57 = vsel %vm2242_vm4, %v2238_v56, inf  ;;  %v5537_v42 = vsel %vm3242_vm9, %v3171_v25, %v5406_v18  ;;  %v752_v18 = vsel %vm624_vm13, %v4029_v35, 32  ;;  %v3365_v56 = vld [vmem:[%s6030_s0 + $0x330] sm:$0xff]  ;;  %v6416_v25 = vld [vmem:[#allocation75_spill] sm:$0xff] }
0x1971   :  { %6413 = vst [vmem:[#allocation36_spill] sm:$0xff] %v5537_v42  ;;  %2255 = vmin.xlane.f32.xlu0 %v2254_v44  ;;  %2244 = vmin.xlane.f32.xlu2 %v2243_v57  ;;  %v2248_v0 = vshll.u32 %v2247_v12, 16  ;;  %v2280_v36 = vsel %vm137_vm0, %v752_v18, 2147483647  ;;  %vm626_vm10 = vcmp.eq.f32.partialorder %v3365_v56, %v6416_v25  ;;  %v3366_v18 = vld [vmem:[%s6030_s0 + $0x338] sm:$0xff] }
0x1972   :  { %v2282_v3 = vshra.s32 %v2280_v36, 16  ;;  %v754_v58 = vsel %vm626_vm10, %v4029_v35, 32  ;;  %vm6420_vm10 = vcmask 392512  }
0x1973   :  { %v2310_v43 = vsel %vm137_vm0, %v754_v58, 2147483647  ;;  %v3368_v58 = vld [vmem:[%s6030_s0 + $0x348] sm:$0xff] }
0x1974   :  { %v2284_v62 = vcvt.s32.f32 %v2282_v3 }
0x1979   :  { %2270 = vmin.xlane.f32.xlu2 %v2269_v34 }
0x19dc   :  { %v2230_v53 = vpop.xlane.xlu0 %2229 }
0x19dd   :  { %v2231_v17 = vcvt.f32.s32 %v2230_v53 }
0x19df   :  { %v2234_v24 = vadd.s32 %v2233_v63, %v2231_v17 }
0x19e1   :  { %vm2892_vm12 = vcmp.lt.s32.totalorder %v2234_v24, 31 }
0x19e2   :  { %v2893_v20 = vsel %vm2892_vm12, %v2234_v24, 31 }
0x19e3   :  { %v3172_v26 = vperm.slane %v2893_v20, %v4029_v35 }
0x19e4   :  { %v2245_v48 = vpop.xlane.xlu2 %2244  ;;  %v2256_v22 = vpop.xlane.xlu0 %2255 }
0x19e5   :  { %v2246_v10 = vcvt.f32.s32 %v2245_v48  ;;  %vm2257_vm2 = vcmp.eq.f32.partialorder %v2254_v44, %v2256_v22  ;;  %v2262_v50 = vcvt.f32.s32 %v2256_v22  ;;  %v2281_v44 = vand.u32 65535, %v2280_v36  ;;  %v6417_v48 = vld [vmem:[#allocation50_spill] sm:$0xff] }
0x19e6   :  { %v2258_v13 = vsel %vm2257_vm2, %v2253_v28, inf  ;;  %vm627_vm3 = vcmp.eq.f32.partialorder %v3366_v18, %v6417_v48  ;;  %v2296_v22 = vand.u32 65535, %v2295_v60  ;;  %v2312_v28 = vshra.s32 %v2310_v43, 16 }
0x19e7   :  { %v2249_v49 = vadd.s32 %v2248_v0, %v2246_v10  ;;  %2259 = vmin.xlane.f32.xlu1 %v2258_v13  ;;  %v2263_v61 = vshll.u32 %v2262_v50, 16  ;;  %v2283_v17 = vcvt.s32.f32 %v2281_v44  ;;  %v755_v10 = vsel %vm627_vm3, %v4029_v35, 32 }
0x19e8   :  { %v2314_v14 = vcvt.s32.f32 %v2312_v28  ;;  %v2325_v20 = vsel %vm137_vm0, %v755_v10, 2147483647  ;;  %v2311_v60 = vand.u32 65535, %v2310_v43 }
0x19e9   :  { %vm2894_vm14 = vcmp.lt.s32.totalorder %v2249_v49, 31  ;;  %v2327_v3 = vshra.s32 %v2325_v20, 16 }
0x19ea   :  { %v2895_v16 = vsel %vm2894_vm14, %v2249_v49, 31  ;;  %v2298_v49 = vcvt.s32.f32 %v2296_v22 }
0x19eb   :  { %v3173_v40 = vperm.slane %v2895_v16, %v4866_v41  ;;  %v2329_v16 = vcvt.s32.f32 %v2327_v3 }
0x19ec   :  { %v2271_v54 = vpop.xlane.xlu2 %2270 }
0x19ed   :  { %v3174_v2 = vsel %vm2959_vm5, %v3173_v40, %v3172_v26  ;;  %vm2272_vm11 = vcmp.eq.f32.partialorder %v2269_v34, %v2271_v54  ;;  %v2277_v31 = vcvt.f32.s32 %v2271_v54 }
0x19ee   :  { %v2273_v37 = vsel %vm2272_vm11, %v2268_v47, inf }
0x19ef   :  { %2274 = vmin.xlane.f32.xlu0 %v2273_v37  ;;  %2285 = vmin.xlane.f32.xlu1 %v2284_v62  ;;  %v2278_v63 = vshll.u32 %v2277_v31, 16 }
0x19f7   :  { %2300 = vmin.xlane.f32.xlu0 %v2299_v59 }
0x1a5a   :  { %v2260_v8 = vpop.xlane.xlu1 %2259 }
0x1a5b   :  { %v2261_v5 = vcvt.f32.s32 %v2260_v8 }
0x1a5d   :  { %v2264_v9 = vadd.s32 %v2263_v61, %v2261_v5  ;;  %v2313_v5 = vcvt.s32.f32 %v2311_v60 }
0x1a5f   :  { %vm2896_vm15 = vcmp.lt.s32.totalorder %v2264_v9, 31 }
0x1a60   :  { %v2897_v57 = vsel %vm2896_vm15, %v2264_v9, 31 }
0x1a61   :  { %v3175_v34 = vperm.slane %v2897_v57, %v4870_v19 }
0x1a62   :  { %v2286_v45 = vpop.xlane.xlu1 %2285  ;;  %v2275_v53 = vpop.xlane.xlu0 %2274 }
0x1a63   :  { %v3176_v52 = vsel %vm2963_vm6, %v3175_v34, %v3174_v2  ;;  %vm2287_vm9 = vcmp.eq.f32.partialorder %v2284_v62, %v2286_v45  ;;  %v2276_v32 = vcvt.f32.s32 %v2275_v53  ;;  %v2292_v6 = vcvt.f32.s32 %v2286_v45  ;;  %v3367_v2 = vld [vmem:[%s6030_s0 + $0x340] sm:$0xff]  ;;  %v6418_v62 = vld [vmem:[#allocation49_spill] sm:$0xff] }
0x1a64   :  { %v2288_v12 = vsel %vm2287_vm9, %v2283_v17, inf  ;;  %vm628_vm12 = vcmp.eq.f32.partialorder %v3367_v2, %v6418_v62  ;;  %v6419_v34 = vld [vmem:[#allocation76_spill] sm:$0xff]  ;;  %v2326_v45 = vand.u32 65535, %v2325_v20 }
0x1a65   :  { %v2279_v24 = vadd.s32 %v2278_v63, %v2276_v32  ;;  %2289 = vmin.xlane.f32.xlu2 %v2288_v12  ;;  %v2293_v40 = vshll.u32 %v2292_v6, 16  ;;  %vm629_vm14 = vcmp.eq.f32.partialorder %v3368_v58, %v6419_v34 }
0x1a66   :  { %v757_v63 = vsel %vm629_vm14, %v4029_v35, 32  ;;  %v2328_v43 = vcvt.s32.f32 %v2326_v45 }
0x1a67   :  { %vm2898_vm4 = vcmp.lt.s32.totalorder %v2279_v24, 31  ;;  %v2355_v18 = vsel %vm137_vm0, %v757_v63, 2147483647 }
0x1a68   :  { %v2899_v0 = vsel %vm2898_vm4, %v2279_v24, 31  ;;  %v2357_v22 = vshra.s32 %v2355_v18, 16  ;;  %vm6422_vm4 = vcmask 458112  }
0x1a69   :  { %v3177_v36 = vperm.slane %v2899_v0, %v4873_v30 }
0x1a6a   :  { %v2301_v13 = vpop.xlane.xlu0 %2300  ;;  %v2359_v28 = vcvt.s32.f32 %v2357_v22 }
0x1a6b   :  { %v3178_v55 = vsel %vm2967_vm7, %v3177_v36, %v3176_v52  ;;  %vm2302_vm13 = vcmp.eq.f32.partialorder %v2299_v59, %v2301_v13  ;;  %v2307_v37 = vcvt.f32.s32 %v2301_v13  ;;  %v756_v59 = vsel %vm628_vm12, %v4029_v35, 32 }
0x1a6c   :  { %v2303_v21 = vsel %vm2302_vm13, %v2298_v49, inf  ;;  %v2340_v44 = vsel %vm137_vm0, %v756_v59, 2147483647  ;;  %v3370_v59 = vld [vmem:[%s6030_s0 + $0x358] sm:$0xff] }
0x1a6d   :  { %2315 = vmin.xlane.f32.xlu2 %v2314_v14  ;;  %2304 = vmin.xlane.f32.xlu1 %v2303_v21  ;;  %v2308_v9 = vshll.u32 %v2307_v37, 16  ;;  %v2342_v53 = vshra.s32 %v2340_v44, 16  ;;  %v2341_v20 = vand.u32 65535, %v2340_v44 }
0x1a6f   :  { %v2344_v24 = vcvt.s32.f32 %v2342_v53 }
0x1a75   :  { %2330 = vmin.xlane.f32.xlu1 %v2329_v16 }
0x1ad8   :  { %v2290_v26 = vpop.xlane.xlu2 %2289 }
0x1ad9   :  { %v2291_v54 = vcvt.f32.s32 %v2290_v26 }
0x1adb   :  { %v2294_v47 = vadd.s32 %v2293_v40, %v2291_v54  ;;  %v2343_v54 = vcvt.s32.f32 %v2341_v20 }
0x1add   :  { %vm2900_vm2 = vcmp.lt.s32.totalorder %v2294_v47, 31 }
0x1ade   :  { %v2901_v15 = vsel %vm2900_vm2, %v2294_v47, 31 }
0x1adf   :  { %v3179_v50 = vperm.slane %v2901_v15, %v4877_v27 }
0x1ae0   :  { %v2316_v8 = vpop.xlane.xlu2 %2315  ;;  %v2305_v61 = vpop.xlane.xlu1 %2304 }
0x1ae1   :  { %v3180_v56 = vsel %vm2971_vm8, %v3179_v50, %v3178_v55  ;;  %vm2317_vm1 = vcmp.eq.f32.partialorder %v2314_v14, %v2316_v8  ;;  %v2306_v25 = vcvt.f32.s32 %v2305_v61  ;;  %v2322_v0 = vcvt.f32.s32 %v2316_v8  ;;  %v3369_v55 = vld [vmem:[%s6030_s0 + $0x350] sm:$0xff]  ;;  %v6421_v14 = vld [vmem:[#allocation53_spill] sm:$0xff]  ;;  %v6423_v50 = vld [vmem:[#allocation52_spill] sm:$0xff] }
0x1ae2   :  { %v2318_v31 = vsel %vm2317_vm1, %v2313_v5, inf  ;;  %vm630_vm9 = vcmp.eq.f32.partialorder %v3369_v55, %v6421_v14  ;;  %vm631_vm12 = vcmp.eq.f32.partialorder %v3370_v59, %v6423_v50  ;;  %v2356_v8 = vand.u32 65535, %v2355_v18 }
0x1ae3   :  { %v2309_v57 = vadd.s32 %v2308_v9, %v2306_v25  ;;  %2319 = vmin.xlane.f32.xlu0 %v2318_v31  ;;  %v2323_v36 = vshll.u32 %v2322_v0, 16  ;;  %v759_v9 = vsel %vm631_vm12, %v4029_v35, 32  ;;  %vm6424_vm1 = vcmask 523712  }
0x1ae4   :  { %v2358_v44 = vcvt.s32.f32 %v2356_v8  ;;  %v2385_v58 = vsel %vm137_vm0, %v759_v9, 2147483647  ;;  %v3373_v8 = vld [vmem:[%s6030_s0 + $0x380] sm:$0xff] }
0x1ae5   :  { %vm2902_vm11 = vcmp.lt.s32.totalorder %v2309_v57, 31  ;;  %v2387_v45 = vshra.s32 %v2385_v58, 16 }
0x1ae6   :  { %v2903_v17 = vsel %vm2902_vm11, %v2309_v57, 31 }
0x1ae7   :  { %v3181_v52 = vperm.slane %v2903_v17, %v4880_v23  ;;  %v2389_v53 = vcvt.s32.f32 %v2387_v45 }
0x1ae8   :  { %v2331_v32 = vpop.xlane.xlu1 %2330 }
0x1ae9   :  { %v3182_v12 = vsel %vm6420_vm10, %v3181_v52, %v3180_v56  ;;  %vm2332_vm15 = vcmp.eq.f32.partialorder %v2329_v16, %v2331_v32  ;;  %v2337_v21 = vcvt.f32.s32 %v2331_v32  ;;  %v758_v16 = vsel %vm630_vm9, %v4029_v35, 32 }
0x1aea   :  { %v2333_v48 = vsel %vm2332_vm15, %v2328_v43, inf  ;;  %v2370_v60 = vsel %vm137_vm0, %v758_v16, 2147483647  ;;  %vm6426_vm15 = vcmask 589312   ;;  %v3372_v16 = vld [vmem:[%s6030_s0 + $0x368] sm:$0xff] }
0x1aeb   :  { %2345 = vmin.xlane.f32.xlu0 %v2344_v24  ;;  %2334 = vmin.xlane.f32.xlu2 %v2333_v48  ;;  %v2338_v47 = vshll.u32 %v2337_v21, 16  ;;  %v2372_v61 = vshra.s32 %v2370_v60, 16  ;;  %v2371_v18 = vand.u32 65535, %v2370_v60 }
0x1aed   :  { %v2374_v57 = vcvt.s32.f32 %v2372_v61  ;;  %v6429_v61 = vld [vmem:[#allocation59_spill] sm:$0xff] }
0x1af3   :  { %2360 = vmin.xlane.f32.xlu2 %v2359_v28 }
0x1b56   :  { %v2320_v10 = vpop.xlane.xlu0 %2319 }
0x1b57   :  { %v2321_v13 = vcvt.f32.s32 %v2320_v10 }
0x1b59   :  { %v2324_v49 = vadd.s32 %v2323_v36, %v2321_v13  ;;  %v2373_v13 = vcvt.s32.f32 %v2371_v18 }
0x1b5b   :  { %vm2904_vm3 = vcmp.lt.s32.totalorder %v2324_v49, 31 }
0x1b5c   :  { %v2905_v3 = vsel %vm2904_vm3, %v2324_v49, 31 }
0x1b5d   :  { %v3183_v6 = vperm.slane %v2905_v3, %v4888_v11 }
0x1b5e   :  { %v2335_v26 = vpop.xlane.xlu2 %2334  ;;  %v2346_v40 = vpop.xlane.xlu0 %2345 }
0x1b5f   :  { %v3184_v2 = vsel %vm6422_vm4, %v3183_v6, %v3182_v12  ;;  %v2336_v62 = vcvt.f32.s32 %v2335_v26  ;;  %vm2347_vm13 = vcmp.eq.f32.partialorder %v2344_v24, %v2346_v40  ;;  %v2352_v17 = vcvt.f32.s32 %v2346_v40  ;;  %v3371_v12 = vld [vmem:[%s6030_s0 + $0x360] sm:$0xff]  ;;  %v6425_v24 = vld [vmem:[#allocation77_spill] sm:$0xff] }
0x1b60   :  { %v2348_v37 = vsel %vm2347_vm13, %v2343_v54, inf  ;;  %vm632_vm11 = vcmp.eq.f32.partialorder %v3371_v12, %v6425_v24  ;;  %v6427_v6 = vld [vmem:[#allocation56_spill] sm:$0xff]  ;;  %v2386_v26 = vand.u32 65535, %v2385_v58  ;;  %vm6428_vm13 = vcmask 654912   ;;  %v3376_v12 = vld [vmem:[%s6030_s0 + $0x3c8] sm:$0xff]  ;;  %v6432_v24 = vld [vmem:[#allocation67_spill] sm:$0xff] }
0x1b61   :  { %v2339_v15 = vadd.s32 %v2338_v47, %v2336_v62  ;;  %2349 = vmin.xlane.f32.xlu1 %v2348_v37  ;;  %v2353_v52 = vshll.u32 %v2352_v17, 16  ;;  %vm633_vm3 = vcmp.eq.f32.partialorder %v3372_v16, %v6427_v6  ;;  %v6431_v17 = vld [vmem:[#allocation64_spill] sm:$0xff] }
0x1b62   :  { %v761_v47 = vsel %vm633_vm3, %v4029_v35, 32  ;;  %v2388_v60 = vcvt.s32.f32 %v2386_v26 }
0x1b63   :  { %vm2906_vm2 = vcmp.lt.s32.totalorder %v2339_v15, 31  ;;  %v5631_v59 = vsel %vm137_vm0, %v761_v47, 2147483647 }
0x1b64   :  { %v2907_v5 = vsel %vm2906_vm2, %v2339_v15, 31  ;;  %vm636_vm2 = vcmp.eq.f32.partialorder %v3373_v8, %v6429_v61 }
0x1b65   :  { %v3185_v56 = vperm.slane %v2907_v5, %v4897_v29  ;;  %v2417_v5 = vshra.s32 %v5631_v59, 16  ;;  %v764_v9 = vsel %vm636_vm2, %v4029_v35, 32 }
0x1b66   :  { %v2361_v25 = vpop.xlane.xlu2 %2360 }
0x1b67   :  { %v3186_v31 = vsel %vm6424_vm1, %v3185_v56, %v3184_v2  ;;  %vm2362_vm14 = vcmp.eq.f32.partialorder %v2359_v28, %v2361_v25  ;;  %v2367_v48 = vcvt.f32.s32 %v2361_v25  ;;  %v760_v28 = vsel %vm632_vm11, %v4029_v35, 32 }
0x1b68   :  { %v2363_v34 = vsel %vm2362_vm14, %v2358_v44, inf  ;;  %v5613_v20 = vsel %vm137_vm0, %v760_v28, 2147483647  ;;  %v5640_v56 = vcvt.s32.f32 %v2417_v5  ;;  %v5643_v25 = vsel %vm137_vm0, %v764_v9, 2147483647  ;;  %v3374_v44 = vld [vmem:[%s6030_s0 + $0x398] sm:$0xff] }
0x1b69   :  { %2364 = vmin.xlane.f32.xlu0 %v2363_v34  ;;  %2375 = vmin.xlane.f32.xlu1 %v2374_v57  ;;  %v2368_v49 = vshll.u32 %v2367_v48, 16  ;;  %v2402_v40 = vshra.s32 %v5613_v20, 16  ;;  %vm645_vm11 = vcmp.eq.f32.partialorder %v3376_v12, %v6432_v24  ;;  %v3379_v5 = vld [vmem:[%s6030_s0 + $0x370] sm:$0xff]  ;;  %v6435_v9 = vld [vmem:[#allocation55_spill] sm:$0xff] }
0x1b6a   :  { %v773_v48 = vsel %vm645_vm11, %v4029_v35, 32 }
0x1b6b   :  { %v5628_v15 = vcvt.s32.f32 %v2402_v40  ;;  %v5679_v28 = vsel %vm137_vm0, %v773_v48, 2147483647  ;;  %v3380_v48 = vld [vmem:[%s6030_s0 + $0x388] sm:$0xff] }
0x1b71   :  { %2390 = vmin.xlane.f32.xlu0 %v2389_v53 }
0x1bd4   :  { %v2350_v63 = vpop.xlane.xlu1 %2349 }
0x1bd5   :  { %v2351_v32 = vcvt.f32.s32 %v2350_v63 }
0x1bd7   :  { %v2354_v43 = vadd.s32 %v2353_v52, %v2351_v32 }
0x1bd9   :  { %vm2908_vm10 = vcmp.lt.s32.totalorder %v2354_v43, 31 }
0x1bda   :  { %v2909_v22 = vsel %vm2908_vm10, %v2354_v43, 31 }
0x1bdb   :  { %v3187_v0 = vperm.slane %v2909_v22, %v4916_v1 }
0x1bdc   :  { %v5608_v10 = vpop.xlane.xlu1 %2375  ;;  %v2365_v36 = vpop.xlane.xlu0 %2364 }
0x1bdd   :  { %v3188_v55 = vsel %vm6426_vm15, %v3187_v0, %v3186_v31  ;;  %vm2377_vm9 = vcmp.eq.f32.partialorder %v2374_v57, %v5608_v10  ;;  %v2366_v14 = vcvt.f32.s32 %v2365_v36  ;;  %v6430_v31 = vld [vmem:[#allocation62_spill] sm:$0xff]  ;;  %v2462_v57 = vshra.s32 %v5643_v25, 16  ;;  %v3377_v0 = vld [vmem:[%s6030_s0 + $0x3e0] sm:$0xff] }
0x1bde   :  { %v2378_v21 = vsel %vm2377_vm9, %v2373_v13, inf  ;;  %vm639_vm1 = vcmp.eq.f32.partialorder %v3374_v44, %v6430_v31  ;;  %v6433_v36 = vld [vmem:[#allocation70_spill] sm:$0xff]  ;;  %v2597_v13 = vshra.s32 %v5679_v28, 16  ;;  %vm634_vm9 = vcmp.eq.f32.partialorder %v3379_v5, %v6435_v9  ;;  %v6440_v5 = vld [vmem:[#allocation61_spill] sm:$0xff]  ;;  %v6441_v9 = vld [vmem:[#allocation80_spill] sm:$0xff] }
0x1bdf   :  { %v2369_v3 = vadd.s32 %v2368_v49, %v2366_v14  ;;  %2379 = vmin.xlane.f32.xlu2 %v2378_v21  ;;  %v767_v58 = vsel %vm639_vm1, %v4029_v35, 32  ;;  %v5652_v34 = vcvt.s32.f32 %v2462_v57  ;;  %vm648_vm10 = vcmp.eq.f32.partialorder %v3377_v0, %v6433_v36  ;;  %v3378_v21 = vld [vmem:[%s6030_s0 + $0x3f0] sm:$0xff]  ;;  %v6438_v36 = vld [vmem:[#allocation79_spill] sm:$0xff] }
0x1be0   :  { %v5655_v45 = vsel %vm137_vm0, %v767_v58, 2147483647  ;;  %v776_v49 = vsel %vm648_vm10, %v4029_v35, 32  ;;  %v2401_v44 = vand.u32 65535, %v5613_v20  ;;  %v762_v58 = vsel %vm634_vm9, %v4029_v35, 32  ;;  %v6437_v0 = vld [vmem:[#allocation58_spill] sm:$0xff] }
0x1be1   :  { %vm2910_vm4 = vcmp.lt.s32.totalorder %v2369_v3, 31  ;;  %v2507_v63 = vshra.s32 %v5655_v45, 16  ;;  %v5691_v14 = vsel %vm137_vm0, %v776_v49, 2147483647 }
0x1be2   :  { %v2911_v54 = vsel %vm2910_vm4, %v2369_v3, 31  ;;  %v6434_v3 = vld [vmem:[#allocation83_spill] sm:$0xff]  ;;  %v2642_v16 = vshra.s32 %v5691_v14, 16  ;;  %vm6436_vm4 = vcmask 720512  }
0x1be3   :  { %v3189_v2 = vperm.slane %v2911_v54, %v4927_v39  ;;  %v5664_v32 = vcvt.s32.f32 %v2507_v63  ;;  %vm650_vm15 = vcmp.eq.f32.partialorder %v3378_v21, %v6434_v3  ;;  %v2403_v63 = vcvt.s32.f32 %v2401_v44 }
0x1be4   :  { %v5622_v62 = vpop.xlane.xlu0 %2390  ;;  %v778_v6 = vsel %vm650_vm15, %v4029_v35, 32  ;;  %v5700_v26 = vcvt.s32.f32 %v2642_v16 }
0x1be5   :  { %v5625_v37 = vsel %vm6428_vm13, %v3189_v2, %v3188_v55  ;;  %vm2392_vm12 = vcmp.eq.f32.partialorder %v2389_v53, %v5622_v62  ;;  %v3375_v53 = vld [vmem:[%s6030_s0 + $0x3b0] sm:$0xff]  ;;  %v5688_v55 = vcvt.s32.f32 %v2597_v13  ;;  %v5703_v40 = vsel %vm137_vm0, %v778_v6, 2147483647 }
0x1be6   :  { %v2393_v50 = vsel %vm2392_vm12, %v2388_v60, inf  ;;  %vm642_vm14 = vcmp.eq.f32.partialorder %v3375_v53, %v6431_v17  ;;  %v2672_v54 = vshra.s32 %v5703_v40, 16  ;;  %v2382_v2 = vcvt.f32.s32 %v5608_v10 }
0x1be7   :  { %2405 = vmin.xlane.f32.xlu2 %v5628_v15  ;;  %2394 = vmin.xlane.f32.xlu1 %v2393_v50  ;;  %v770_v52 = vsel %vm642_vm14, %v4029_v35, 32  ;;  %v2397_v31 = vcvt.f32.s32 %v5622_v62  ;;  %v5726_v62 = vsel %vm137_vm0, %v762_v58, 2147483647  ;;  %vm637_vm12 = vcmp.eq.f32.partialorder %v3380_v48, %v6437_v0 }
0x1be8   :  { %v5667_v43 = vsel %vm137_vm0, %v770_v52, 2147483647  ;;  %v5707_v47 = vcvt.s32.f32 %v2672_v54  ;;  %v2383_v50 = vshll.u32 %v2382_v2, 16  ;;  %v2432_v13 = vshra.s32 %v5726_v62, 16 }
0x1be9   :  { %v2552_v18 = vshra.s32 %v5667_v43, 16  ;;  %v2398_v52 = vshll.u32 %v2397_v31, 16  ;;  %v765_v21 = vsel %vm637_vm12, %v4029_v35, 32  ;;  %vm6439_vm14 = vcmask 786112  }
0x1bea   :  { %v2551_v4 = vand.u32 65535, %v5667_v43 }
0x1beb   :  { %v5676_v22 = vcvt.s32.f32 %v2552_v18 }
0x1bef   :  { %2420 = vmin.xlane.f32.xlu1 %v5640_v56 }
0x1bf7   :  { %2465 = vmin.xlane.f32.xlu1 %v5652_v34 }
0x1bff   :  { %2510 = vmin.xlane.f32.xlu1 %v5664_v32 }
0x1c07   :  { %2555 = vmin.xlane.f32.xlu1 %v5676_v22 }
0x1c0f   :  { %2600 = vmin.xlane.f32.xlu1 %v5688_v55 }
0x1c17   :  { %2645 = vmin.xlane.f32.xlu1 %v5700_v26 }
0x1c1f   :  { %2675 = vmin.xlane.f32.xlu1 %v5707_v47 }
0x1c52   :  { %v2380_v60 = vpop.xlane.xlu2 %2379 }
0x1c53   :  { %v2381_v8 = vcvt.f32.s32 %v2380_v60  ;;  %v5751_v60 = vsel %vm137_vm0, %v765_v21, 2147483647 }
0x1c54   :  { %v2477_v31 = vshra.s32 %v5751_v60, 16 }
0x1c55   :  { %v2384_v61 = vadd.s32 %v2383_v50, %v2381_v8 }
0x1c57   :  { %vm2912_vm3 = vcmp.lt.s32.totalorder %v2384_v61, 31 }
0x1c58   :  { %v2913_v57 = vsel %vm2912_vm3, %v2384_v61, 31  ;;  %v3382_v61 = vld [vmem:[%s6030_s0 + $0x3a0] sm:$0xff] }
0x1c59   :  { %v3191_v10 = vperm.slane %v2913_v57, %v4938_v33  ;;  %vm640_vm10 = vcmp.eq.f32.partialorder %v3382_v61, %v6440_v5 }
0x1c5a   :  { %v5719_v53 = vpop.xlane.xlu2 %2405  ;;  %v2395_v17 = vpop.xlane.xlu1 %2394  ;;  %v768_v57 = vsel %vm640_vm10, %v4029_v35, 32 }
0x1c5b   :  { %v3192_v12 = vsel %vm6436_vm4, %v3191_v10, %v5625_v37  ;;  %vm2407_vm13 = vcmp.eq.f32.partialorder %v5628_v15, %v5719_v53  ;;  %v2396_v20 = vcvt.f32.s32 %v2395_v17  ;;  %v3381_v37 = vld [vmem:[%s6030_s0 + $0x390] sm:$0xff]  ;;  %v2416_v15 = vand.u32 65535, %v5631_v59 }
0x1c5c   :  { %v2408_v24 = vsel %vm2407_vm13, %v2403_v63, inf  ;;  %vm638_vm2 = vcmp.eq.f32.partialorder %v3381_v37, %v6438_v36  ;;  %v5748_v59 = vcvt.s32.f32 %v2432_v13  ;;  %v5771_v17 = vcvt.s32.f32 %v2477_v31 }
0x1c5d   :  { %v2399_v18 = vadd.s32 %v2398_v52, %v2396_v20  ;;  %2409 = vmin.xlane.f32.xlu0 %v2408_v24  ;;  %v766_v3 = vsel %vm638_vm2, %v4029_v35, 32  ;;  %v2418_v54 = vcvt.s32.f32 %v2416_v15  ;;  %v5774_v63 = vsel %vm137_vm0, %v768_v57, 2147483647  ;;  %v6442_v20 = vld [vmem:[#allocation63_spill] sm:$0xff]  ;;  %v3385_v24 = vld [vmem:[%s6030_s0 + $0x3c0] sm:$0xff] }
0x1c5e   :  { %v5754_v50 = vsel %vm137_vm0, %v766_v3, 2147483647  ;;  %v2522_v0 = vshra.s32 %v5774_v63, 16  ;;  %v3386_v3 = vld [vmem:[%s6030_s0 + $0x3d0] sm:$0xff] }
0x1c5f   :  { %vm2914_vm1 = vcmp.lt.s32.totalorder %v2399_v18, 31  ;;  %v2492_v44 = vshra.s32 %v5754_v50, 16 }
0x1c60   :  { %v2915_v49 = vsel %vm2914_vm1, %v2399_v18, 31  ;;  %v6443_v18 = vld [vmem:[#allocation81_spill] sm:$0xff]  ;;  %v5795_v13 = vcvt.s32.f32 %v2522_v0 }
0x1c61   :  { %v3193_v16 = vperm.slane %v2915_v49, %v4949_v46  ;;  %v5769_v10 = vcvt.s32.f32 %v2492_v44  ;;  %vm644_vm3 = vcmp.eq.f32.partialorder %v3385_v24, %v6443_v18  ;;  %v3389_v24 = vld [vmem:[%s6030_s0 + $0x378] sm:$0xff]  ;;  %v6447_v18 = vld [vmem:[#allocation78_spill] sm:$0xff] }
0x1c62   :  { %v5741_v6 = vpop.xlane.xlu1 %2420  ;;  %v772_v36 = vsel %vm644_vm3, %v4029_v35, 32  ;;  %vm635_vm2 = vcmp.eq.f32.partialorder %v3389_v24, %v6447_v18  ;;  %vm6449_vm3 = vcmask 851712  }
0x1c63   :  { %v5744_v2 = vsel %vm6439_vm14, %v3193_v16, %v3192_v12  ;;  %vm2422_vm11 = vcmp.eq.f32.partialorder %v5640_v56, %v5741_v6  ;;  %v3383_v56 = vld [vmem:[%s6030_s0 + $0x3a8] sm:$0xff]  ;;  %v3384_v12 = vld [vmem:[%s6030_s0 + $0x3b8] sm:$0xff]  ;;  %v5801_v21 = vsel %vm137_vm0, %v772_v36, 2147483647  ;;  %v6444_v16 = vld [vmem:[#allocation66_spill] sm:$0xff]  ;;  %v763_v36 = vsel %vm635_vm2, %v4029_v35, 32 }
0x1c64   :  { %v2423_v8 = vsel %vm2422_vm11, %v2418_v54, inf  ;;  %vm641_vm15 = vcmp.eq.f32.partialorder %v3383_v56, %v6441_v9  ;;  %vm643_vm9 = vcmp.eq.f32.partialorder %v3384_v12, %v6442_v20  ;;  %vm646_vm4 = vcmp.eq.f32.partialorder %v3386_v3, %v6444_v16  ;;  %v3387_v54 = vld [vmem:[%s6030_s0 + $0x3d8] sm:$0xff]  ;;  %v3388_v12 = vld [vmem:[%s6030_s0 + $0x3e8] sm:$0xff] }
0x1c65   :  { %2435 = vmin.xlane.f32.xlu0 %v5748_v59  ;;  %2424 = vmin.xlane.f32.xlu2 %v2423_v8  ;;  %v769_v58 = vsel %vm641_vm15, %v4029_v35, 32  ;;  %v771_v37 = vsel %vm643_vm9, %v4029_v35, 32  ;;  %v6445_v8 = vld [vmem:[#allocation82_spill] sm:$0xff]  ;;  %v2582_v61 = vshra.s32 %v5801_v21, 16  ;;  %v774_v56 = vsel %vm646_vm4, %v4029_v35, 32  ;;  %v6446_v20 = vld [vmem:[#allocation69_spill] sm:$0xff] }
0x1c66   :  { %v5777_v52 = vsel %vm137_vm0, %v769_v58, 2147483647  ;;  %v5798_v49 = vsel %vm137_vm0, %v771_v37, 2147483647  ;;  %vm647_vm13 = vcmp.eq.f32.partialorder %v3387_v54, %v6445_v8  ;;  %v5822_v57 = vsel %vm137_vm0, %v774_v56, 2147483647 }
0x1c67   :  { %v2537_v48 = vshra.s32 %v5777_v52, 16  ;;  %v2567_v5 = vshra.s32 %v5798_v49, 16  ;;  %v775_v9 = vsel %vm647_vm13, %v4029_v35, 32  ;;  %v5817_v44 = vcvt.s32.f32 %v2582_v61  ;;  %v3390_v61 = vld [vmem:[%s6030_s0 + $0x3f8] sm:$0xff]  ;;  %s3417_s0 = smov [#allocation2]  }
0x1c68   :  { %v5825_v58 = vsel %vm137_vm0, %v775_v9, 2147483647  ;;  %vm649_vm12 = vcmp.eq.f32.partialorder %v3388_v12, %v6446_v20  ;;  %v2612_v0 = vshra.s32 %v5822_v57, 16  ;;  %v5849_v8 = vsel %vm137_vm0, %v763_v36, 2147483647  ;;  %s3254_s19 = sshll.u32 %s3417_s0, 4  ;;  %s3255_s19 = int_to_ptr.vmem [resolvable:$true] %s3254_s19 }
0x1c69   :  { %v5793_v15 = vcvt.s32.f32 %v2537_v48  ;;  %v5819_v31 = vcvt.s32.f32 %v2567_v5  ;;  %v2627_v48 = vshra.s32 %v5825_v58, 16  ;;  %v777_v37 = vsel %vm649_vm12, %v4029_v35, 32  ;;  %v6448_v5 = vld [vmem:[#allocation72_spill] sm:$0xff] }
0x1c6a   :  { %v5843_v16 = vcvt.s32.f32 %v2612_v0  ;;  %v5846_v54 = vsel %vm137_vm0, %v777_v37, 2147483647  ;;  %vm651_vm1 = vcmp.eq.f32.partialorder %v3390_v61, %v6448_v5  ;;  %v5857_v56 = vpop.xlane.xlu1 %2465  ;;  %v2447_v9 = vshra.s32 %v5849_v8, 16 }
0x1c6b   :  { %v5841_v3 = vcvt.s32.f32 %v2627_v48  ;;  %v2657_v12 = vshra.s32 %v5846_v54, 16  ;;  %v779_v20 = vsel %vm651_vm1, %v4029_v35, 32  ;;  %v2461_v0 = vand.u32 65535, %v5643_v25 }
0x1c6c   :  { %v5862_v24 = vcvt.s32.f32 %v2447_v9  ;;  %v5867_v48 = vsel %vm137_vm0, %v779_v20, 2147483647  ;;  %vm2467_vm14 = vcmp.eq.f32.partialorder %v5652_v34, %v5857_v56  ;;  %v2553_v34 = vcvt.s32.f32 %v2551_v4 }
0x1c6d   :  { %2495 = vmin.xlane.f32.xlu0 %v5769_v10  ;;  %2480 = vmin.xlane.f32.xlu2 %v5771_v17  ;;  %v5864_v18 = vcvt.s32.f32 %v2657_v12  ;;  %v2687_v37 = vshra.s32 %v5867_v48, 16  ;;  %v2463_v61 = vcvt.s32.f32 %v2461_v0  ;;  %v2506_v12 = vand.u32 65535, %v5655_v45 }
0x1c6e   :  { %v2596_v45 = vand.u32 65535, %v5679_v28  ;;  %vm6450_vm13 = vcmask 917312  }
0x1c6f   :  { %v5877_v5 = vcvt.s32.f32 %v2687_v37  ;;  %v2468_v9 = vsel %vm2467_vm14, %v2463_v61, inf  ;;  %v2508_v20 = vcvt.s32.f32 %v2506_v12 }
0x1c72   :  { %v5873_v36 = vpop.xlane.xlu1 %2510 }
0x1c73   :  { %vm2512_vm0 = vcmp.eq.f32.partialorder %v5664_v32, %v5873_v36  ;;  %v2598_v32 = vcvt.s32.f32 %v2596_v45 }
0x1c74   :  { %v2513_v42 = vsel %vm2512_vm0, %v2508_v20, inf }
0x1c75   :  { %2540 = vmin.xlane.f32.xlu0 %v5793_v15  ;;  %2525 = vmin.xlane.f32.xlu2 %v5795_v13 }
0x1c7a   :  { %v5883_v25 = vpop.xlane.xlu1 %2555 }
0x1c7b   :  { %vm2557_vm11 = vcmp.eq.f32.partialorder %v5676_v22, %v5883_v25  ;;  %v2412_v22 = vcvt.f32.s32 %v5719_v53  ;;  %v2476_v53 = vand.u32 65535, %v5751_v60 }
0x1c7c   :  { %v2558_v37 = vsel %vm2557_vm11, %v2553_v34, inf }
0x1c7d   :  { %2585 = vmin.xlane.f32.xlu0 %v5817_v44  ;;  %2570 = vmin.xlane.f32.xlu2 %v5819_v31  ;;  %v2413_v28 = vshll.u32 %v2412_v22, 16 }
0x1c82   :  { %v5888_v0 = vpop.xlane.xlu1 %2600 }
0x1c83   :  { %vm2602_vm10 = vcmp.eq.f32.partialorder %v5688_v55, %v5888_v0  ;;  %v2427_v55 = vcvt.f32.s32 %v5741_v6 }
0x1c84   :  { %v2603_v61 = vsel %vm2602_vm10, %v2598_v32, inf }
0x1c85   :  { %2630 = vmin.xlane.f32.xlu0 %v5841_v3  ;;  %2615 = vmin.xlane.f32.xlu2 %v5843_v16 }
0x1c8d   :  { %2450 = vmin.xlane.f32.xlu0 %v5862_v24  ;;  %2660 = vmin.xlane.f32.xlu2 %v5864_v18 }
0x1c95   :  { %2690 = vmin.xlane.f32.xlu2 %v5877_v5  ;;  %2469 = vmin.xlane.f32.xlu0 %v2468_v9  ;;  %v5893_v9 = vpop.xlane.xlu1 %2645 }
0x1c96   :  { %vm2647_vm15 = vcmp.eq.f32.partialorder %v5700_v26, %v5893_v9 }
0x1c9d   :  { %2514 = vmin.xlane.f32.xlu0 %v2513_v42  ;;  %v2641_v42 = vand.u32 65535, %v5691_v14 }
0x1c9f   :  { %v2643_v4 = vcvt.s32.f32 %v2641_v42 }
0x1ca1   :  { %v2648_v43 = vsel %vm2647_vm15, %v2643_v4, inf }
0x1ca5   :  { %2559 = vmin.xlane.f32.xlu0 %v2558_v37 }
0x1cad   :  { %2604 = vmin.xlane.f32.xlu0 %v2603_v61  ;;  %v2428_v61 = vshll.u32 %v2427_v55, 16 }
0x1cb5   :  { %2649 = vmin.xlane.f32.xlu0 %v2648_v43  ;;  %v2491_v43 = vand.u32 65535, %v5754_v50  ;;  %v2521_v50 = vand.u32 65535, %v5774_v63  ;;  %v2566_v63 = vand.u32 65535, %v5798_v49  ;;  %v2611_v49 = vand.u32 65535, %v5822_v57 }
0x1cb6   :  { %v2431_v57 = vand.u32 65535, %v5726_v62 }
0x1cd0   :  { %v2410_v12 = vpop.xlane.xlu0 %2409 }
0x1cd1   :  { %v2411_v20 = vcvt.f32.s32 %v2410_v12 }
0x1cd3   :  { %v2414_v34 = vadd.s32 %v2413_v28, %v2411_v20  ;;  %v2478_v20 = vcvt.s32.f32 %v2476_v53  ;;  %v2568_v53 = vcvt.s32.f32 %v2566_v63 }
0x1cd5   :  { %vm2916_vm9 = vcmp.lt.s32.totalorder %v2414_v34, 31 }
0x1cd6   :  { %v2917_v37 = vsel %vm2916_vm9, %v2414_v34, 31  ;;  %v2493_v34 = vcvt.s32.f32 %v2491_v43 }
0x1cd7   :  { %v3195_v45 = vperm.slane %v2917_v37, %v4960_v38  ;;  %v2536_v37 = vand.u32 65535, %v5777_v52  ;;  %v2581_v52 = vand.u32 65535, %v5801_v21  ;;  %v2626_v21 = vand.u32 65535, %v5825_v58 }
0x1cd8   :  { %v2425_v32 = vpop.xlane.xlu2 %2424  ;;  %v5901_v14 = vpop.xlane.xlu0 %2435  ;;  %v2656_v58 = vand.u32 65535, %v5846_v54 }
0x1cd9   :  { %v3196_v26 = vsel %vm6449_vm3, %v3195_v45, %v5744_v2  ;;  %v2426_v42 = vcvt.f32.s32 %v2425_v32  ;;  %v2583_v43 = vcvt.s32.f32 %v2581_v52  ;;  %vm2437_vm9 = vcmp.eq.f32.partialorder %v5748_v59, %v5901_v14 }
0x1cda   :  { %v2671_v59 = vand.u32 65535, %v5703_v40  ;;  %v2472_v40 = vcvt.f32.s32 %v5857_v56 }
0x1cdb   :  { %v2429_v4 = vadd.s32 %v2428_v61, %v2426_v42  ;;  %v2523_v61 = vcvt.s32.f32 %v2521_v50 }
0x1cdd   :  { %vm2918_vm4 = vcmp.lt.s32.totalorder %v2429_v4, 31 }
0x1cde   :  { %v2919_v22 = vsel %vm2918_vm4, %v2429_v4, 31 }
0x1cdf   :  { %v3197_v6 = vperm.slane %v2919_v22, %v6314_v51 }
0x1ce0   :  { %v5908_v12 = vpop.xlane.xlu2 %2480  ;;  %v5910_v28 = vpop.xlane.xlu0 %2495 }
0x1ce1   :  { %v5913_v55 = vsel %vm6450_vm13, %v3197_v6, %v3196_v26  ;;  %vm2482_vm12 = vcmp.eq.f32.partialorder %v5771_v17, %v5908_v12  ;;  %vm2497_vm2 = vcmp.eq.f32.partialorder %v5769_v10, %v5910_v28  ;;  %v2538_v26 = vcvt.s32.f32 %v2536_v37 }
0x1ce2   :  { %v2483_v2 = vsel %vm2482_vm12, %v2478_v20, inf  ;;  %v2498_v60 = vsel %vm2497_vm2, %v2493_v34, inf  ;;  %v2613_v20 = vcvt.s32.f32 %v2611_v49  ;;  %v2628_v34 = vcvt.s32.f32 %v2626_v21 }
0x1ce3   :  { %2484 = vmin.xlane.f32.xlu1 %v2483_v2  ;;  %2499 = vmin.xlane.f32.xlu2 %v2498_v60  ;;  %v2446_v2 = vand.u32 65535, %v5849_v8  ;;  %v2658_v37 = vcvt.s32.f32 %v2656_v58  ;;  %v5962_v8 = vpop.xlane.xlu1 %2675  ;;  %v2487_v49 = vcvt.f32.s32 %v5908_v12 }
0x1ce4   :  { %vm2677_vm13 = vcmp.eq.f32.partialorder %v5707_v47, %v5962_v8 }
0x1ce8   :  { %v5921_v45 = vpop.xlane.xlu2 %2525  ;;  %v5923_v32 = vpop.xlane.xlu0 %2540 }
0x1ce9   :  { %vm2527_vm1 = vcmp.eq.f32.partialorder %v5795_v13, %v5921_v45  ;;  %vm2542_vm14 = vcmp.eq.f32.partialorder %v5793_v15, %v5923_v32  ;;  %v2532_v12 = vcvt.f32.s32 %v5921_v45 }
0x1cea   :  { %v2528_v10 = vsel %vm2527_vm1, %v2523_v61, inf  ;;  %v2543_v17 = vsel %vm2542_vm14, %v2538_v26, inf  ;;  %v2686_v26 = vand.u32 65535, %v5867_v48  ;;  %v2517_v48 = vcvt.f32.s32 %v5873_v36 }
0x1ceb   :  { %2529 = vmin.xlane.f32.xlu1 %v2528_v10  ;;  %2544 = vmin.xlane.f32.xlu2 %v2543_v17  ;;  %v2533_v45 = vshll.u32 %v2532_v12, 16 }
0x1cec   :  { %v2688_v17 = vcvt.s32.f32 %v2686_v26  ;;  %v2518_v21 = vshll.u32 %v2517_v48, 16 }
0x1cf0   :  { %v5931_v42 = vpop.xlane.xlu2 %2570  ;;  %v5933_v4 = vpop.xlane.xlu0 %2585 }
0x1cf1   :  { %vm2572_vm0 = vcmp.eq.f32.partialorder %v5819_v31, %v5931_v42  ;;  %vm2587_vm11 = vcmp.eq.f32.partialorder %v5817_v44, %v5933_v4 }
0x1cf2   :  { %v2573_v15 = vsel %vm2572_vm0, %v2568_v53, inf  ;;  %v2588_v13 = vsel %vm2587_vm11, %v2583_v43, inf }
0x1cf3   :  { %2574 = vmin.xlane.f32.xlu1 %v2573_v15  ;;  %2589 = vmin.xlane.f32.xlu2 %v2588_v13  ;;  %v2473_v15 = vshll.u32 %v2472_v40, 16 }
0x1cf8   :  { %v5941_v22 = vpop.xlane.xlu2 %2615  ;;  %v5943_v6 = vpop.xlane.xlu0 %2630 }
0x1cf9   :  { %vm2617_vm10 = vcmp.eq.f32.partialorder %v5843_v16, %v5941_v22  ;;  %vm2632_vm15 = vcmp.eq.f32.partialorder %v5841_v3, %v5943_v6  ;;  %v2433_v16 = vcvt.s32.f32 %v2431_v57  ;;  %v2448_v3 = vcvt.s32.f32 %v2446_v2 }
0x1cfa   :  { %v2618_v44 = vsel %vm2617_vm10, %v2613_v20, inf  ;;  %v2633_v31 = vsel %vm2632_vm15, %v2628_v34, inf  ;;  %v2502_v20 = vcvt.f32.s32 %v5910_v28 }
0x1cfb   :  { %2619 = vmin.xlane.f32.xlu1 %v2618_v44  ;;  %2634 = vmin.xlane.f32.xlu2 %v2633_v31  ;;  %v2438_v62 = vsel %vm2437_vm9, %v2433_v16, inf  ;;  %v2562_v44 = vcvt.f32.s32 %v5883_v25  ;;  %v2488_v31 = vshll.u32 %v2487_v49, 16 }
0x1cfc   :  { %v2503_v2 = vshll.u32 %v2502_v20, 16  ;;  %v2592_v20 = vcvt.f32.s32 %v5933_v4 }
0x1d00   :  { %v5954_v60 = vpop.xlane.xlu2 %2660  ;;  %v5956_v50 = vpop.xlane.xlu0 %2450 }
0x1d01   :  { %vm2662_vm3 = vcmp.eq.f32.partialorder %v5864_v18, %v5954_v60  ;;  %vm2452_vm4 = vcmp.eq.f32.partialorder %v5862_v24, %v5956_v50  ;;  %v2673_v18 = vcvt.s32.f32 %v2671_v59 }
0x1d02   :  { %v2663_v54 = vsel %vm2662_vm3, %v2658_v37, inf  ;;  %v2453_v61 = vsel %vm2452_vm4, %v2448_v3, inf  ;;  %vm6454_vm4 = vcmask 589312  }
0x1d03   :  { %2439 = vmin.xlane.f32.xlu1 %v2438_v62  ;;  %2664 = vmin.xlane.f32.xlu2 %v2663_v54  ;;  %v2678_v24 = vsel %vm2677_vm13, %v2673_v18, inf  ;;  %v2547_v62 = vcvt.f32.s32 %v5923_v32  ;;  %v2563_v54 = vshll.u32 %v2562_v44, 16 }
0x1d04   :  { %2454 = vmin.xlane.f32.xlu0 %v2453_v61 }
0x1d08   :  { %v5968_v10 = vpop.xlane.xlu2 %2690  ;;  %v2470_v52 = vpop.xlane.xlu0 %2469 }
0x1d09   :  { %vm2692_vm12 = vcmp.eq.f32.partialorder %v5877_v5, %v5968_v10  ;;  %v2471_v43 = vcvt.f32.s32 %v2470_v52  ;;  %v2607_v52 = vcvt.f32.s32 %v5888_v0  ;;  %v2577_v0 = vcvt.f32.s32 %v5931_v42 }
0x1d0a   :  { %v2693_v63 = vsel %vm2692_vm12, %v2688_v17, inf  ;;  %vm6455_vm12 = vcmask 654912  }
0x1d0b   :  { %2679 = vmin.xlane.f32.xlu1 %v2678_v24  ;;  %2694 = vmin.xlane.f32.xlu2 %v2693_v63  ;;  %v2474_v5 = vadd.s32 %v2473_v15, %v2471_v43 }
0x1d0d   :  { %vm2924_vm2 = vcmp.lt.s32.totalorder %v2474_v5, 31 }
0x1d0e   :  { %v2925_v28 = vsel %vm2924_vm2, %v2474_v5, 31 }
0x1d0f   :  { %v3203_v18 = vperm.slane %v2925_v28, %v4029_v35 }
0x1d10   :  { %v2515_v53 = vpop.xlane.xlu0 %2514 }
0x1d11   :  { %v2516_v47 = vcvt.f32.s32 %v2515_v53  ;;  %v2548_v53 = vshll.u32 %v2547_v62, 16 }
0x1d13   :  { %v2519_v34 = vadd.s32 %v2518_v21, %v2516_v47  ;;  %v2608_v21 = vshll.u32 %v2607_v52, 16 }
0x1d15   :  { %vm2930_vm1 = vcmp.lt.s32.totalorder %v2519_v34, 31 }
0x1d16   :  { %v2931_v25 = vsel %vm2930_vm1, %v2519_v34, 31 }
0x1d17   :  { %v3208_v48 = vperm.slane %v2931_v25, %v4873_v30 }
0x1d18   :  { %v2560_v13 = vpop.xlane.xlu0 %2559 }
0x1d19   :  { %v2561_v16 = vcvt.f32.s32 %v2560_v13 }
0x1d1b   :  { %v2564_v17 = vadd.s32 %v2563_v54, %v2561_v16 }
0x1d1d   :  { %vm2936_vm11 = vcmp.lt.s32.totalorder %v2564_v17, 31 }
0x1d1e   :  { %v2937_v30 = vsel %vm2936_vm11, %v2564_v17, 31  ;;  %vm6458_vm11 = vcmask 851712  }
0x1d1f   :  { %v3214_v42 = vperm.slane %v2937_v30, %v4888_v11 }
0x1d20   :  { %v2605_v61 = vpop.xlane.xlu0 %2604 }
0x1d21   :  { %v2606_v13 = vcvt.f32.s32 %v2605_v61  ;;  %v2637_v61 = vcvt.f32.s32 %v5943_v6 }
0x1d23   :  { %v2609_v5 = vadd.s32 %v2608_v21, %v2606_v13  ;;  %v2638_v52 = vshll.u32 %v2637_v61, 16  ;;  %v2457_v13 = vcvt.f32.s32 %v5956_v50 }
0x1d56   :  { %v2485_v57 = vpop.xlane.xlu1 %2484  ;;  %v2500_v58 = vpop.xlane.xlu2 %2499 }
0x1d57   :  { %v2486_v56 = vcvt.f32.s32 %v2485_v57  ;;  %v2501_v36 = vcvt.f32.s32 %v2500_v58 }
0x1d59   :  { %v2489_v37 = vadd.s32 %v2488_v31, %v2486_v56  ;;  %v2504_v3 = vadd.s32 %v2503_v2, %v2501_v36  ;;  %v2650_v31 = vpop.xlane.xlu0 %2649  ;;  %v2652_v2 = vcvt.f32.s32 %v5893_v9  ;;  %v2578_v56 = vshll.u32 %v2577_v0, 16 }
0x1d5a   :  { %v2593_v36 = vshll.u32 %v2592_v20, 16  ;;  %v2651_v28 = vcvt.f32.s32 %v2650_v31  ;;  %v2622_v9 = vcvt.f32.s32 %v5941_v22  ;;  %v2458_v31 = vshll.u32 %v2457_v13, 16 }
0x1d5b   :  { %vm2926_vm14 = vcmp.lt.s32.totalorder %v2489_v37, 31  ;;  %vm2928_vm0 = vcmp.lt.s32.totalorder %v2504_v3, 31  ;;  %v2653_v25 = vshll.u32 %v2652_v2, 16 }
0x1d5c   :  { %v2927_v59 = vsel %vm2926_vm14, %v2489_v37, 31  ;;  %v2929_v26 = vsel %vm2928_vm0, %v2504_v3, 31  ;;  %vm6456_vm14 = vcmask 720512   ;;  %vm6457_vm0 = vcmask 786112  }
0x1d5d   :  { %v3204_v24 = vperm.slane %v2927_v59, %v4866_v41  ;;  %v3206_v63 = vperm.slane %v2929_v26, %v4870_v19 }
0x1d5e   :  { %v2530_v32 = vpop.xlane.xlu1 %2529  ;;  %v2545_v40 = vpop.xlane.xlu2 %2544 }
0x1d5f   :  { %v3205_v43 = vsel %vm2959_vm5, %v3204_v24, %v3203_v18  ;;  %v2531_v15 = vcvt.f32.s32 %v2530_v32  ;;  %v2546_v47 = vcvt.f32.s32 %v2545_v40  ;;  %vm2942_vm5 = vcmp.lt.s32.totalorder %v2609_v5, 31 }
0x1d60   :  { %v3207_v35 = vsel %vm2963_vm6, %v3206_v63, %v3205_v43  ;;  %vm6451_vm6 = vcmask 392512   ;;  %v2943_v11 = vsel %vm2942_vm5, %v2609_v5, 31  ;;  %v2654_v18 = vadd.s32 %v2653_v25, %v2651_v28 }
0x1d61   :  { %v2534_v49 = vadd.s32 %v2533_v45, %v2531_v15  ;;  %v3209_v41 = vsel %vm2967_vm7, %v3208_v48, %v3207_v35  ;;  %v2549_v19 = vadd.s32 %v2548_v53, %v2546_v47  ;;  %vm6452_vm7 = vcmask 458112  }
0x1d62   :  { %v2623_v63 = vshll.u32 %v2622_v9, 16  ;;  %v3220_v32 = vperm.slane %v2943_v11, %v4927_v39  ;;  %vm2948_vm13 = vcmp.lt.s32.totalorder %v2654_v18, 31 }
0x1d63   :  { %vm2932_vm10 = vcmp.lt.s32.totalorder %v2534_v49, 31  ;;  %vm2934_vm15 = vcmp.lt.s32.totalorder %v2549_v19, 31  ;;  %v2949_v39 = vsel %vm2948_vm13, %v2654_v18, 31  ;;  %vm3246_vm13 = vcmask 1047559  }
0x1d64   :  { %v2933_v34 = vsel %vm2932_vm10, %v2534_v49, 31  ;;  %v2935_v44 = vsel %vm2934_vm15, %v2549_v19, 31  ;;  %v3226_v5 = vperm.slane %v2949_v39, %v4960_v38 }
0x1d65   :  { %v3210_v57 = vperm.slane %v2933_v34, %v4877_v27  ;;  %v3212_v58 = vperm.slane %v2935_v44, %v4880_v23 }
0x1d66   :  { %v2575_v16 = vpop.xlane.xlu1 %2574  ;;  %v2590_v37 = vpop.xlane.xlu2 %2589 }
0x1d67   :  { %v3211_v4 = vsel %vm2971_vm8, %v3210_v57, %v3209_v41  ;;  %v2576_v3 = vcvt.f32.s32 %v2575_v16  ;;  %v2591_v12 = vcvt.f32.s32 %v2590_v37  ;;  %vm6453_vm8 = vcmask 523712  }
0x1d68   :  { %v3213_v62 = vsel %vm6451_vm6, %v3212_v58, %v3211_v4  ;;  %vm3244_vm6 = vcmask 1046534  }
0x1d69   :  { %v2579_v54 = vadd.s32 %v2578_v56, %v2576_v3  ;;  %v3215_v27 = vsel %vm6452_vm7, %v3214_v42, %v3213_v62  ;;  %v2594_v23 = vadd.s32 %v2593_v36, %v2591_v12  ;;  %v2697_v56 = vcvt.f32.s32 %v5968_v10  ;;  %v6459_v62 = vld [vmem:[#allocation7_spill] sm:$0xff] }
0x1d6a   :  { %vm6460_vm7 = vcmask 982912  }
0x1d6b   :  { %vm2938_vm9 = vcmp.lt.s32.totalorder %v2579_v54, 31  ;;  %vm2940_vm3 = vcmp.lt.s32.totalorder %v2594_v23, 31  ;;  %v2698_v12 = vshll.u32 %v2697_v56, 16 }
0x1d6c   :  { %v2939_v59 = vsel %vm2938_vm9, %v2579_v54, 31  ;;  %v2941_v26 = vsel %vm2940_vm3, %v2594_v23, 31  ;;  %vm6461_vm9 = vcmask 917312   ;;  %vm6462_vm3 = vcmask 1048512  }
0x1d6d   :  { %v3216_v17 = vperm.slane %v2939_v59, %v4897_v29  ;;  %v3218_v24 = vperm.slane %v2941_v26, %v4916_v1  ;;  %v2442_v29 = vcvt.f32.s32 %v5901_v14  ;;  %v2667_v1 = vcvt.f32.s32 %v5954_v60 }
0x1d6e   :  { %v2620_v45 = vpop.xlane.xlu1 %2619  ;;  %v2635_v53 = vpop.xlane.xlu2 %2634 }
0x1d6f   :  { %v3217_v22 = vsel %vm6453_vm8, %v3216_v17, %v3215_v27  ;;  %v2621_v6 = vcvt.f32.s32 %v2620_v45  ;;  %v2636_v40 = vcvt.f32.s32 %v2635_v53  ;;  %v2443_v21 = vshll.u32 %v2442_v29, 16 }
0x1d70   :  { %v3219_v48 = vsel %vm6454_vm4, %v3218_v24, %v3217_v22  ;;  %v2668_v0 = vshll.u32 %v2667_v1, 16 }
0x1d71   :  { %v2624_v43 = vadd.s32 %v2623_v63, %v2621_v6  ;;  %v3221_v15 = vsel %vm6455_vm12, %v3220_v32, %v3219_v48  ;;  %v2639_v47 = vadd.s32 %v2638_v52, %v2636_v40  ;;  %vm6464_vm12 = vmmov %vm6460_vm7 }
0x1d73   :  { %vm2944_vm2 = vcmp.lt.s32.totalorder %v2624_v43, 31  ;;  %vm2946_vm1 = vcmp.lt.s32.totalorder %v2639_v47, 31 }
0x1d74   :  { %v2945_v35 = vsel %vm2944_vm2, %v2624_v43, 31  ;;  %v2947_v49 = vsel %vm2946_vm1, %v2639_v47, 31  ;;  %vm6465_vm2 = vmmov %vm6462_vm3 }
0x1d75   :  { %v3222_v41 = vperm.slane %v2945_v35, %v4938_v33  ;;  %v3224_v19 = vperm.slane %v2947_v49, %v4949_v46  ;;  %v2682_v46 = vcvt.f32.s32 %v5962_v8 }
0x1d76   :  { %v2440_v20 = vpop.xlane.xlu1 %2439  ;;  %v2665_v30 = vpop.xlane.xlu2 %2664 }
0x1d77   :  { %v3223_v14 = vsel %vm6456_vm14, %v3222_v41, %v3221_v15  ;;  %v2441_v60 = vcvt.f32.s32 %v2440_v20  ;;  %v2666_v34 = vcvt.f32.s32 %v2665_v30  ;;  %v2455_v44 = vpop.xlane.xlu0 %2454  ;;  %v2683_v3 = vshll.u32 %v2682_v46, 16 }
0x1d78   :  { %v3225_v50 = vsel %vm6457_vm0, %v3224_v19, %v3223_v14  ;;  %v2456_v57 = vcvt.f32.s32 %v2455_v44 }
0x1d79   :  { %v2444_v58 = vadd.s32 %v2443_v21, %v2441_v60  ;;  %v2669_v2 = vadd.s32 %v2668_v0, %v2666_v34  ;;  %v3227_v33 = vsel %vm6458_vm11, %v3226_v5, %v3225_v50 }
0x1d7a   :  { %v2459_v36 = vadd.s32 %v2458_v31, %v2456_v57 }
0x1d7b   :  { %vm2920_vm10 = vcmp.lt.s32.totalorder %v2444_v58, 31  ;;  %vm2950_vm15 = vcmp.lt.s32.totalorder %v2669_v2, 31 }
0x1d7c   :  { %v2921_v38 = vsel %vm2920_vm10, %v2444_v58, 31  ;;  %v2951_v16 = vsel %vm2950_vm15, %v2669_v2, 31  ;;  %vm2922_vm5 = vcmp.lt.s32.totalorder %v2459_v36, 31 }
0x1d7d   :  { %v3199_v37 = vperm.slane %v2921_v38, %v6327_v7  ;;  %v3228_v42 = vperm.slane %v2951_v16, %v6314_v51  ;;  %v2923_v4 = vsel %vm2922_vm5, %v2459_v36, 31  ;;  %v6463_v51 = vld [vmem:[#allocation36_spill] sm:$0xff] }
0x1d7e   :  { %v3201_v28 = vperm.slane %v2923_v4, %v6459_v62  ;;  %v2680_v54 = vpop.xlane.xlu1 %2679  ;;  %v2695_v27 = vpop.xlane.xlu2 %2694 }
0x1d7f   :  { %v3200_v8 = vsel %vm6460_vm7, %v3199_v37, %v5913_v55  ;;  %v3229_v10 = vsel %vm6461_vm9, %v3228_v42, %v3227_v33  ;;  %v2681_v23 = vcvt.f32.s32 %v2680_v54  ;;  %v2696_v9 = vcvt.f32.s32 %v2695_v27 }
0x1d80   :  { %v3202_v61 = vsel %vm6462_vm3, %v3201_v28, %v3200_v8 }
0x1d81   :  { %v2684_v25 = vadd.s32 %v2683_v3, %v2681_v23  ;;  %v2699_v11 = vadd.s32 %v2698_v12, %v2696_v9  ;;  %v3245_v59 = vsel %vm3244_vm6, %v3202_v61, %v6463_v51 }
0x1d83   :  { %vm2952_vm8 = vcmp.lt.s32.totalorder %v2684_v25, 31  ;;  %vm2954_vm4 = vcmp.lt.s32.totalorder %v2699_v11, 31 }
0x1d84   :  { %v2953_v26 = vsel %vm2952_vm8, %v2684_v25, 31  ;;  %v2955_v18 = vsel %vm2954_vm4, %v2699_v11, 31 }
0x1d85   :  { %v3230_v17 = vperm.slane %v2953_v26, %v6327_v7  ;;  %v3232_v24 = vperm.slane %v2955_v18, %v6459_v62 }
0x1d87   :  { %v3231_v55 = vsel %vm6464_vm12, %v3230_v17, %v3229_v10 }
0x1d88   :  { %v3233_v63 = vsel %vm6465_vm2, %v3232_v24, %v3231_v55 }
0x1d89   :  { %v3247_v52 = vsel %vm3246_vm13, %v3233_v63, %v3245_v59 }
0x1d8a   :  { %3248 = vst [vmem:[#allocation2] sm:$0xff] %v3247_v52 }
0x1d8b   :  { %3259 = dma.vmem_to_hbm [thread:$0]  %s3255_s19, 128, %s3257_s22, [#allocation3]  }
0x1d8c   :  { %3415 = dma.done.wait [#allocation3], 128  }
0x1d8d   :  { %3416 = vsyncadd [#allocation3], 4294967168 }
0x1d8e   :  { %3264 = vsyncpa [#allocation3], 1 }

</bundles_post_ra>
